<compile_context>
chip_gen: v7x
topology: tpu7x:2x2x1
jax: 0.10.0
libtpu: 0.0.40
codegen_flags: <defaults>
</compile_context>

<pallas_src>
import functools

import numpy as np
import jax
import jax.numpy as jnp
from jax.experimental import pallas as pl
from jax.experimental.pallas import tpu as pltpu

_LN_EPS = 1e-5


# --------------------------------------------------------------------------- #
# In-kernel math helpers
# --------------------------------------------------------------------------- #
def _erf(x):
    """Abramowitz & Stegun 7.1.26 erf approximation (|err| < 1.5e-7).

    Built only from abs/exp/where/mul/add, which all lower cleanly in Mosaic.
    """
    p = 0.3275911
    a1, a2, a3, a4, a5 = (0.254829592, -0.284496736, 1.421413741,
                          -1.453152027, 1.061405429)
    ax = jnp.abs(x)
    t = 1.0 / (1.0 + p * ax)
    poly = t * (a1 + t * (a2 + t * (a3 + t * (a4 + t * a5))))
    y = 1.0 - poly * jnp.exp(-ax * ax)
    return jnp.where(x < 0, -y, y)


def _gelu_exact(x):
    """erf-based GELU matching PyTorch's default nn.GELU()."""
    return 0.5 * x * (1.0 + _erf(x * 0.7071067811865476))


def _layernorm(x, w, b):
    mean = jnp.mean(x, axis=-1, keepdims=True)
    c = x - mean
    var = jnp.mean(c * c, axis=-1, keepdims=True)
    return c * jax.lax.rsqrt(var + _LN_EPS) * w + b


# --------------------------------------------------------------------------- #
# Kernels
# --------------------------------------------------------------------------- #
def _window_attn_kernel(xw_ref, ln1w_ref, ln1b_ref, wqkv_ref, bqkv_ref,
                        wproj_ref, bproj_ref, bias_ref, mask_ref,
                        out_ref, attn_ref, *, num_heads, head_dim, scale):
    """One tile of windows: LN1 + qkv + windowed MSA + proj."""
    wb, n, c = xw_ref.shape

    # norm1 commutes with the window re-ordering, so it is fused here on the
    # already-windowed rows.
    x2 = xw_ref[...].astype(jnp.float32).reshape(wb * n, c)
    xn = _layernorm(x2, ln1w_ref[...].astype(jnp.float32),
                    ln1b_ref[...].astype(jnp.float32))

    # fused qkv projection: one (wb*n, C) @ (C, 3C) MXU matmul.
    qkv = (jnp.dot(xn, wqkv_ref[...].astype(jnp.float32),
                   preferred_element_type=jnp.float32)
           + bqkv_ref[...].astype(jnp.float32))
    qkv = qkv.reshape(wb, n, 3 * c)
    q = qkv[:, :, 0:c] * scale
    k = qkv[:, :, c:2 * c]
    v = qkv[:, :, 2 * c:3 * c]

    mask = mask_ref[...].astype(jnp.float32)                        # (wb, n, n)

    head_outs = []
    for h in range(num_heads):
        lo = h * head_dim
        hi = lo + head_dim
        a = jnp.einsum("bqd,bkd->bqk", q[:, :, lo:hi], k[:, :, lo:hi],
                       preferred_element_type=jnp.float32)
        a = a + bias_ref[h][None, :, :].astype(jnp.float32) + mask
        a = jax.nn.softmax(a, axis=-1)
        attn_ref[h] = a.astype(attn_ref.dtype)
        head_outs.append(jnp.einsum("bqk,bkd->bqd", a, v[:, :, lo:hi],
                                    preferred_element_type=jnp.float32))

    merged = jnp.concatenate(head_outs, axis=-1).reshape(wb * n, c)
    proj = (jnp.dot(merged, wproj_ref[...].astype(jnp.float32),
                    preferred_element_type=jnp.float32)
            + bproj_ref[...].astype(jnp.float32))
    out_ref[...] = proj.reshape(wb, n, c).astype(out_ref.dtype)


def _mlp_kernel(short_ref, branch_ref, ln2w_ref, ln2b_ref,
                w1_ref, b1_ref, w2_ref, b2_ref, out_ref):
    """Row tile: h = shortcut + attn_branch; out = h + fc2(gelu(fc1(LN2(h))))."""
    h = short_ref[...].astype(jnp.float32) + branch_ref[...].astype(jnp.float32)
    hn = _layernorm(h, ln2w_ref[...].astype(jnp.float32),
                    ln2b_ref[...].astype(jnp.float32))
    m = (jnp.dot(hn, w1_ref[...].astype(jnp.float32),
                 preferred_element_type=jnp.float32)
         + b1_ref[...].astype(jnp.float32))
    m = _gelu_exact(m)
    o = (jnp.dot(m, w2_ref[...].astype(jnp.float32),
                 preferred_element_type=jnp.float32)
         + b2_ref[...].astype(jnp.float32))
    out_ref[...] = (h + o).astype(out_ref.dtype)


# --------------------------------------------------------------------------- #
# Wrapper helpers (layout plumbing, all static / XLA)
# --------------------------------------------------------------------------- #
def _largest_divisor(n, cap, multiple=1):
    best = 0
    for d in range(1, n + 1):
        if n % d == 0 and d <= cap and d % multiple == 0:
            best = d
    return best


def _window_partition(x, ws):
    """(B, H, W, C) -> (B*nW, ws*ws, C), same ordering as the PyTorch helper."""
    B, H, W, C = x.shape
    x = x.reshape(B, H // ws, ws, W // ws, ws, C)
    x = jnp.transpose(x, (0, 1, 3, 2, 4, 5))
    return x.reshape(-1, ws * ws, C)


def _window_reverse(wins, ws, H, W):
    """(B*nW, ws*ws, C) -> (B, H, W, C)."""
    C = wins.shape[-1]
    B = wins.shape[0] // ((H // ws) * (W // ws))
    x = wins.reshape(B, H // ws, W // ws, ws, ws, C)
    x = jnp.transpose(x, (0, 1, 3, 2, 4, 5))
    return x.reshape(B, H, W, C)


def _relative_position_index(ws):
    coords = np.stack(np.meshgrid(np.arange(ws), np.arange(ws), indexing="ij"))
    flat = coords.reshape(2, -1)
    rel = flat[:, :, None] - flat[:, None, :]
    rel = rel.transpose(1, 2, 0).astype(np.int64)
    rel[:, :, 0] += ws - 1
    rel[:, :, 1] += ws - 1
    rel[:, :, 0] *= 2 * ws - 1
    return rel.sum(-1)                                              # (N, N)


def _shift_attn_mask(H, W, ws, shift):
    img = np.zeros((1, H, W, 1), np.float32)
    cnt = 0
    for hs in (slice(0, -ws), slice(-ws, -shift), slice(-shift, None)):
        for vs in (slice(0, -ws), slice(-ws, -shift), slice(-shift, None)):
            img[:, hs, vs, :] = cnt
            cnt += 1
    mw = img.reshape(1, H // ws, ws, W // ws, ws, 1)
    mw = mw.transpose(0, 1, 3, 2, 4, 5).reshape(-1, ws * ws)
    am = mw[:, None, :] - mw[:, :, None]
    return np.where(am != 0, -100.0, 0.0).astype(np.float32)        # (nW, N, N)


# --------------------------------------------------------------------------- #
# One Swin block = two pallas_calls
# --------------------------------------------------------------------------- #
def _swin_block(x, blk, *, H, W, ws, shift, num_heads, rel_bias, attn_mask):
    B, L, C = x.shape
    N = ws * ws
    nW = (H // ws) * (W // ws)
    head_dim = C // num_heads
    scale = head_dim ** -0.5
    out_dtype = x.dtype
    hidden = blk["w1"].shape[1]

    # ----- windowed attention branch (norm1 fused into the kernel) -----
    x_img = x.reshape(B, H, W, C)
    if shift > 0:
        x_img = jnp.roll(x_img, shift=(-shift, -shift), axis=(1, 2))
    xw = _window_partition(x_img, ws)                               # (B*nW, N, C)
    B_ = xw.shape[0]

    WB = _largest_divisor(nW, max(1, 1024 // N)) or 1               # windows/tile
    n_mask_blocks = nW // WB
    grid = (B_ // WB,)

    r2 = lambda a: a.reshape(1, -1)

    attn_cost = pl.CostEstimate(
        flops=int(2 * B_ * N * C * (3 * C + C)
                  + 4 * B_ * num_heads * N * N * head_dim),
        transcendentals=int(B_ * num_heads * N * N),
        bytes_accessed=int(4 * (2 * B_ * N * C + B_ * num_heads * N * N
                                + 4 * C * C + num_heads * N * N + nW * N * N)))

    attn_out, attn_probs = pl.pallas_call(
        functools.partial(_window_attn_kernel, num_heads=num_heads,
                          head_dim=head_dim, scale=scale),
        out_shape=(jax.ShapeDtypeStruct((B_, N, C), out_dtype),
                   jax.ShapeDtypeStruct((num_heads, B_, N, N), jnp.float32)),
        grid_spec=pltpu.PrefetchScalarGridSpec(
            num_scalar_prefetch=0,
            grid=grid,
            in_specs=[
                pl.BlockSpec((WB, N, C), lambda i: (i, 0, 0)),           # x windows
                pl.BlockSpec((1, C), lambda i: (0, 0)),                  # ln1 w
                pl.BlockSpec((1, C), lambda i: (0, 0)),                  # ln1 b
                pl.BlockSpec((C, 3 * C), lambda i: (0, 0)),              # qkv weight
                pl.BlockSpec((1, 3 * C), lambda i: (0, 0)),              # qkv bias
                pl.BlockSpec((C, C), lambda i: (0, 0)),                  # proj weight
                pl.BlockSpec((1, C), lambda i: (0, 0)),                  # proj bias
                pl.BlockSpec((num_heads, N, N), lambda i: (0, 0, 0)),    # rel-pos bias
                pl.BlockSpec((WB, N, N),                                 # shift mask
                             lambda i: (i % n_mask_blocks, 0, 0)),
            ],
            out_specs=[
                pl.BlockSpec((WB, N, C), lambda i: (i, 0, 0)),
                pl.BlockSpec((num_heads, WB, N, N), lambda i: (0, i, 0, 0)),
            ],
        ),
        compiler_params=pltpu.CompilerParams(
            dimension_semantics=("parallel",)),
        cost_estimate=attn_cost,
    )(xw, r2(blk["ln1_w"]), r2(blk["ln1_b"]), blk["w_qkv"], r2(blk["b_qkv"]),
      blk["w_proj"], r2(blk["b_proj"]), rel_bias, attn_mask)

    attn_img = _window_reverse(attn_out, ws, H, W)
    if shift > 0:
        attn_img = jnp.roll(attn_img, shift=(shift, shift), axis=(1, 2))
    branch = attn_img.reshape(B * L, C)
    shortcut = x.reshape(B * L, C)

    # ----- residual + norm2 + MLP + residual, fused -----
    R = B * L
    TM = _largest_divisor(R, 512, multiple=8) or R

    mlp_cost = pl.CostEstimate(
        flops=int(4 * R * C * hidden),
        transcendentals=int(R * hidden),
        bytes_accessed=int(4 * (3 * R * C + 2 * C * hidden)))

    x_new = pl.pallas_call(
        _mlp_kernel,
        out_shape=jax.ShapeDtypeStruct((R, C), out_dtype),
        grid_spec=pltpu.PrefetchScalarGridSpec(
            num_scalar_prefetch=0,
            grid=(R // TM,),
            in_specs=[
                pl.BlockSpec((TM, C), lambda i: (i, 0)),                 # shortcut
                pl.BlockSpec((TM, C), lambda i: (i, 0)),                 # attn branch
                pl.BlockSpec((1, C), lambda i: (0, 0)),                  # ln2 w
                pl.BlockSpec((1, C), lambda i: (0, 0)),                  # ln2 b
                pl.BlockSpec((C, hidden), lambda i: (0, 0)),             # fc1 weight
                pl.BlockSpec((1, hidden), lambda i: (0, 0)),             # fc1 bias
                pl.BlockSpec((hidden, C), lambda i: (0, 0)),             # fc2 weight
                pl.BlockSpec((1, C), lambda i: (0, 0)),                  # fc2 bias
            ],
            out_specs=pl.BlockSpec((TM, C), lambda i: (i, 0)),
        ),
        compiler_params=pltpu.CompilerParams(
            dimension_semantics=("parallel",)),
        cost_estimate=mlp_cost,
    )(shortcut, branch, r2(blk["ln2_w"]), r2(blk["ln2_b"]),
      blk["w1"], r2(blk["b1"]), blk["w2"], r2(blk["b2"]))

    return x_new.reshape(B, L, C), attn_probs                       # attn: (nH, B_, N, N)


# --------------------------------------------------------------------------- #
# BasicLayerDec forward (eval mode)
# --------------------------------------------------------------------------- #
def basic_layer_dec(x, params, *, input_resolution, window_size, num_heads):
    """Pallas forward of BasicLayerDec.  Returns (x, attn_mean).

    attn_mean = mean over blocks of each block's window attention maps,
    shaped (B*nW, num_heads, N, N), matching the PyTorch eval-mode forward.
    """
    H, W = input_resolution
    B, L, C = x.shape
    assert L == H * W

    if min(H, W) <= window_size:                 # same clamp as SwinTransformerBlock
        ws, base_shift = min(H, W), 0
    else:
        ws, base_shift = window_size, window_size // 2
    assert H % ws == 0 and W % ws == 0, "resolution must be divisible by window size"
    N = ws * ws
    nW = (H // ws) * (W // ws)
    depth = len(params["blocks"])

    rel_idx = _relative_position_index(ws).reshape(-1)
    zero_mask = jnp.zeros((nW, N, N), jnp.float32)
    shift_mask = (jnp.asarray(_shift_attn_mask(H, W, ws, base_shift))
                  if base_shift > 0 else zero_mask)

    # TODO(synk): the optional `downsample` module (PatchExpand in the CLAPSep
    # decoder) is not implemented here; the constructor default is None, and
    # the forward below matches downsample=None.  Dropout / drop-path /
    # checkpointing are identities in eval mode with rate 0.

    attn_sum = None
    for bi, blk in enumerate(params["blocks"]):
        shift = 0 if bi % 2 == 0 else base_shift
        mask = shift_mask if shift > 0 else zero_mask
        bias = jnp.take(blk["rel_bias_table"], rel_idx, axis=0)
        bias = bias.reshape(N, N, num_heads).transpose(2, 0, 1).astype(jnp.float32)
        x, attn = _swin_block(x, blk, H=H, W=W, ws=ws, shift=shift,
                              num_heads=num_heads, rel_bias=bias, attn_mask=mask)
        attn_sum = attn if attn_sum is None else attn_sum + attn

    attn_mean = (attn_sum / depth).transpose(1, 0, 2, 3)             # (B_, nH, N, N)
    return x, attn_mean


# --------------------------------------------------------------------------- #
# Pure-JAX reference (mirrors the PyTorch forward)
# --------------------------------------------------------------------------- #
def basic_layer_dec_ref(x, params, *, input_resolution, window_size, num_heads):
    H, W = input_resolution
    B, L, C = x.shape
    if min(H, W) <= window_size:
        ws, base_shift = min(H, W), 0
    else:
        ws, base_shift = window_size, window_size // 2
    N = ws * ws
    nW = (H // ws) * (W // ws)
    hd = C // num_heads
    scale = hd ** -0.5
    rel_idx = _relative_position_index(ws).reshape(-1)

    def ln(v, w, b):
        mu = jnp.mean(v, -1, keepdims=True)
        c = v - mu
        var = jnp.mean(c * c, -1, keepdims=True)
        return c * jax.lax.rsqrt(var + _LN_EPS) * w + b

    attns = []
    for bi, blk in enumerate(params["blocks"]):
        shift = 0 if bi % 2 == 0 else base_shift
        shortcut = x
        xn = ln(x, blk["ln1_w"], blk["ln1_b"])
        xi = xn.reshape(B, H, W, C)
        if shift > 0:
            xi = jnp.roll(xi, shift=(-shift, -shift), axis=(1, 2))
        xw = _window_partition(xi, ws)
        B_ = xw.shape[0]
        qkv = xw @ blk["w_qkv"] + blk["b_qkv"]
        q, k, v = jnp.split(qkv, 3, axis=-1)
        q = q.reshape(B_, N, num_heads, hd).transpose(0, 2, 1, 3) * scale
        k = k.reshape(B_, N, num_heads, hd).transpose(0, 2, 1, 3)
        v = v.reshape(B_, N, num_heads, hd).transpose(0, 2, 1, 3)
        attn = q @ jnp.swapaxes(k, -1, -2)
        bias = jnp.take(blk["rel_bias_table"], rel_idx, axis=0)
        bias = bias.reshape(N, N, num_heads).transpose(2, 0, 1)
        attn = attn + bias[None]
        if shift > 0:
            mask = jnp.asarray(_shift_attn_mask(H, W, ws, shift))
            attn = attn.reshape(B_ // nW, nW, num_heads, N, N) + mask[None, :, None]
            attn = attn.reshape(B_, num_heads, N, N)
        attn = jax.nn.softmax(attn, axis=-1)
        out = (attn @ v).transpose(0, 2, 1, 3).reshape(B_, N, C)
        out = out @ blk["w_proj"] + blk["b_proj"]
        out = _window_reverse(out, ws, H, W)
        if shift > 0:
            out = jnp.roll(out, shift=(shift, shift), axis=(1, 2))
        x = shortcut + out.reshape(B, L, C)
        h = ln(x, blk["ln2_w"], blk["ln2_b"])
        m = jax.nn.gelu(h @ blk["w1"] + blk["b1"], approximate=False)
        x = x + (m @ blk["w2"] + blk["b2"])
        attns.append(attn)
    attn_mean = jnp.mean(jnp.stack(attns, 0), axis=0)
    return x, attn_mean


# --------------------------------------------------------------------------- #
# Demo / self-test
# --------------------------------------------------------------------------- #
if __name__ == "__main__":
    jax.config.update("jax_default_matmul_precision", "highest")

    B = 2
    H = W = 8
    dim = 32
    num_heads = 4
    window_size = 4
    depth = 2
    mlp_ratio = 4.0
    L = H * W
    hidden = int(dim * mlp_ratio)

    eff_ws = window_size if min(H, W) > window_size else min(H, W)
    table_len = (2 * eff_ws - 1) ** 2

    key = jax.random.PRNGKey(0)
    keys = iter(jax.random.split(key, 64))

    def rand(shape, s=0.1):
        return jax.random.normal(next(keys), shape, jnp.float32) * s

    blocks = []
    for _ in range(depth):
        blocks.append(dict(
            ln1_w=1.0 + rand((dim,)), ln1_b=rand((dim,)),
            w_qkv=rand((dim, 3 * dim)), b_qkv=rand((3 * dim,)),
            w_proj=rand((dim, dim)), b_proj=rand((dim,)),
            rel_bias_table=rand((table_len, num_heads)),
            ln2_w=1.0 + rand((dim,)), ln2_b=rand((dim,)),
            w1=rand((dim, hidden)), b1=rand((hidden,)),
            w2=rand((hidden, dim)), b2=rand((dim,)),
        ))
    params = {"blocks": blocks}
    x = rand((B, L, dim), 1.0)

    out, attn = basic_layer_dec(x, params, input_resolution=(H, W),
                                window_size=window_size, num_heads=num_heads)
    out = jax.block_until_ready(out)
    attn = jax.block_until_ready(attn)

    ref_out, ref_attn = basic_layer_dec_ref(x, params, input_resolution=(H, W),
                                            window_size=window_size,
                                            num_heads=num_heads)
    assert out.shape == ref_out.shape and attn.shape == ref_attn.shape
    err_x = float(jnp.max(jnp.abs(out - ref_out)))
    err_a = float(jnp.max(jnp.abs(attn - ref_attn)))
    assert jnp.allclose(out, ref_out, atol=2e-3, rtol=2e-3), f"x mismatch: {err_x}"
    assert jnp.allclose(attn, ref_attn, atol=2e-3, rtol=2e-3), f"attn mismatch: {err_a}"

    print("KERNEL_OK")
</pallas_src>

<mosaic_0001>
module attributes {stable_mosaic.version = 11 : i64} {
  func.func @_window_attn_kernel(%arg0: i32, %arg1: memref<4x16x32xf32, #tpu.memory_space<vmem>>, %arg2: memref<1x32xf32, #tpu.memory_space<vmem>>, %arg3: memref<1x32xf32, #tpu.memory_space<vmem>>, %arg4: memref<32x96xf32, #tpu.memory_space<vmem>>, %arg5: memref<1x96xf32, #tpu.memory_space<vmem>>, %arg6: memref<32x32xf32, #tpu.memory_space<vmem>>, %arg7: memref<1x32xf32, #tpu.memory_space<vmem>>, %arg8: memref<4x16x16xf32, #tpu.memory_space<vmem>>, %arg9: memref<4x16x16xf32, #tpu.memory_space<vmem>>, %arg10: memref<4x16x32xf32, #tpu.memory_space<vmem>>, %arg11: memref<4x4x16x16xf32, #tpu.memory_space<vmem>>) attributes {dimension_semantics = [#tpu.dimension_semantics<parallel>], iteration_bounds = array<i64: 2>, scalar_prefetch = 0 : i64, scratch_operands = 0 : i64, tpu.core_type = #tpu.core_type<tc>, window_params = [{transform_indices = @transform_0, window_bounds = array<i64: 4, 16, 32>}, {pipeline_mode = #tpu.pipeline_mode<synchronous>, transform_indices = @transform_1, window_bounds = array<i64: 1, 32>}, {pipeline_mode = #tpu.pipeline_mode<synchronous>, transform_indices = @transform_2, window_bounds = array<i64: 1, 32>}, {pipeline_mode = #tpu.pipeline_mode<synchronous>, transform_indices = @transform_3, window_bounds = array<i64: 32, 96>}, {pipeline_mode = #tpu.pipeline_mode<synchronous>, transform_indices = @transform_4, window_bounds = array<i64: 1, 96>}, {pipeline_mode = #tpu.pipeline_mode<synchronous>, transform_indices = @transform_5, window_bounds = array<i64: 32, 32>}, {pipeline_mode = #tpu.pipeline_mode<synchronous>, transform_indices = @transform_6, window_bounds = array<i64: 1, 32>}, {pipeline_mode = #tpu.pipeline_mode<synchronous>, transform_indices = @transform_7, window_bounds = array<i64: 4, 16, 16>}, {transform_indices = @transform_8, window_bounds = array<i64: 4, 16, 16>}, {transform_indices = @transform_9, window_bounds = array<i64: 4, 16, 32>}, {transform_indices = @transform_10, window_bounds = array<i64: 4, 4, 16, 16>}]} {
    %c0 = arith.constant 0 : index
    %c0_0 = arith.constant 0 : index
    %c0_1 = arith.constant 0 : index
    %0 = vector.load %arg1[%c0, %c0_0, %c0_1] : memref<4x16x32xf32, #tpu.memory_space<vmem>>, vector<4x16x32xf32>
    %1 = vector.shape_cast %0 : vector<4x16x32xf32> to vector<64x32xf32>
    %c0_2 = arith.constant 0 : index
    %c0_3 = arith.constant 0 : index
    %2 = vector.load %arg2[%c0_2, %c0_3] : memref<1x32xf32, #tpu.memory_space<vmem>>, vector<1x32xf32>
    %c0_4 = arith.constant 0 : index
    %c0_5 = arith.constant 0 : index
    %3 = vector.load %arg3[%c0_4, %c0_5] : memref<1x32xf32, #tpu.memory_space<vmem>>, vector<1x32xf32>
    %cst = arith.constant dense<0.000000e+00> : vector<64xf32>
    %4 = vector.multi_reduction <add>, %1, %cst [1] : vector<64x32xf32> to vector<64xf32>
    %5 = vector.shape_cast %4 : vector<64xf32> to vector<64x1xf32>
    %cst_6 = arith.constant 3.200000e+01 : f32
    %6 = vector.broadcast %cst_6 : f32 to vector<64x1xf32>
    %7 = arith.divf %5, %6 : vector<64x1xf32>
    %8 = vector.broadcast %7 : vector<64x1xf32> to vector<64x32xf32>
    %9 = arith.subf %1, %8 : vector<64x32xf32>
    %10 = arith.mulf %9, %9 : vector<64x32xf32>
    %cst_7 = arith.constant dense<0.000000e+00> : vector<64xf32>
    %11 = vector.multi_reduction <add>, %10, %cst_7 [1] : vector<64x32xf32> to vector<64xf32>
    %12 = vector.shape_cast %11 : vector<64xf32> to vector<64x1xf32>
    %cst_8 = arith.constant 3.200000e+01 : f32
    %13 = vector.broadcast %cst_8 : f32 to vector<64x1xf32>
    %14 = arith.divf %12, %13 : vector<64x1xf32>
    %cst_9 = arith.constant 9.99999974E-6 : f32
    %15 = vector.broadcast %cst_9 : f32 to vector<64x1xf32>
    %16 = arith.addf %14, %15 : vector<64x1xf32>
    %17 = math.rsqrt %16 : vector<64x1xf32>
    %18 = vector.broadcast %17 : vector<64x1xf32> to vector<64x32xf32>
    %19 = arith.mulf %9, %18 : vector<64x32xf32>
    %20 = vector.broadcast %2 : vector<1x32xf32> to vector<64x32xf32>
    %21 = arith.mulf %19, %20 : vector<64x32xf32>
    %22 = vector.broadcast %3 : vector<1x32xf32> to vector<64x32xf32>
    %23 = arith.addf %21, %22 : vector<64x32xf32>
    %c0_10 = arith.constant 0 : index
    %c0_11 = arith.constant 0 : index
    %24 = vector.load %arg4[%c0_10, %c0_11] : memref<32x96xf32, #tpu.memory_space<vmem>>, vector<32x96xf32>
    %cst_12 = arith.constant dense<0.000000e+00> : vector<64x96xf32>
    %25 = tpu.matmul %23, %24, %cst_12 {dimension_numbers = #tpu.dot_dimension_numbers<[1], [0], [0], [1], [0, 0, 1, 1], [], []>, precision = #tpu.contract_precision<fp32>} : vector<64x32xf32>, vector<32x96xf32>, vector<64x96xf32> -> vector<64x96xf32>
    %c0_13 = arith.constant 0 : index
    %c0_14 = arith.constant 0 : index
    %26 = vector.load %arg5[%c0_13, %c0_14] : memref<1x96xf32, #tpu.memory_space<vmem>>, vector<1x96xf32>
    %27 = vector.broadcast %26 : vector<1x96xf32> to vector<64x96xf32>
    %28 = arith.addf %25, %27 : vector<64x96xf32>
    %29 = vector.shape_cast %28 : vector<64x96xf32> to vector<4x16x96xf32>
    %30 = vector.extract_strided_slice %29 {offsets = [0, 0, 0], sizes = [4, 16, 32], strides = [1, 1, 1]} : vector<4x16x96xf32> to vector<4x16x32xf32>
    %cst_15 = arith.constant 0.353553385 : f32
    %31 = vector.broadcast %cst_15 : f32 to vector<4x16x32xf32>
    %32 = arith.mulf %30, %31 : vector<4x16x32xf32>
    %33 = vector.extract_strided_slice %29 {offsets = [0, 0, 32], sizes = [4, 16, 32], strides = [1, 1, 1]} : vector<4x16x96xf32> to vector<4x16x32xf32>
    %34 = vector.extract_strided_slice %29 {offsets = [0, 0, 64], sizes = [4, 16, 32], strides = [1, 1, 1]} : vector<4x16x96xf32> to vector<4x16x32xf32>
    %c0_16 = arith.constant 0 : index
    %c0_17 = arith.constant 0 : index
    %c0_18 = arith.constant 0 : index
    %35 = vector.load %arg9[%c0_16, %c0_17, %c0_18] : memref<4x16x16xf32, #tpu.memory_space<vmem>>, vector<4x16x16xf32>
    %36 = vector.extract_strided_slice %32 {offsets = [0, 0, 0], sizes = [4, 16, 8], strides = [1, 1, 1]} : vector<4x16x32xf32> to vector<4x16x8xf32>
    %37 = vector.extract_strided_slice %33 {offsets = [0, 0, 0], sizes = [4, 16, 8], strides = [1, 1, 1]} : vector<4x16x32xf32> to vector<4x16x8xf32>
    "tpu.trace_start"() <{level = 10 : i32, message = "bqd,bkd->bqk"}> : () -> ()
    %cst_19 = arith.constant dense<0.000000e+00> : vector<4x16x16xf32>
    %38 = tpu.matmul %36, %37, %cst_19 {dimension_numbers = #tpu.dot_dimension_numbers<[2], [2], [1], [1], [0, 0, 0, 1, 1, 1], [0], [0]>, precision = #tpu.contract_precision<fp32>} : vector<4x16x8xf32>, vector<4x16x8xf32>, vector<4x16x16xf32> -> vector<4x16x16xf32>
    "tpu.trace_stop"() : () -> ()
    %c0_20 = arith.constant 0 : index
    %c0_21 = arith.constant 0 : index
    %c0_22 = arith.constant 0 : index
    %39 = vector.load %arg8[%c0_20, %c0_21, %c0_22] : memref<4x16x16xf32, #tpu.memory_space<vmem>>, vector<1x16x16xf32>
    %40 = vector.shape_cast %39 : vector<1x16x16xf32> to vector<16x16xf32>
    %41 = vector.shape_cast %40 : vector<16x16xf32> to vector<1x16x16xf32>
    %42 = vector.broadcast %41 : vector<1x16x16xf32> to vector<4x16x16xf32>
    %43 = arith.addf %38, %42 : vector<4x16x16xf32>
    %44 = arith.addf %43, %35 : vector<4x16x16xf32>
    %cst_23 = arith.constant dense<0xFF800000> : vector<4x16xf32>
    %45 = vector.multi_reduction <maximumf>, %44, %cst_23 [2] : vector<4x16x16xf32> to vector<4x16xf32>
    %cst_24 = arith.constant 0xFF800000 : f32
    %46 = vector.broadcast %cst_24 : f32 to vector<4x16xf32>
    %47 = arith.maximumf %46, %45 : vector<4x16xf32>
    %48 = vector.shape_cast %47 : vector<4x16xf32> to vector<4x16x1xf32>
    %49 = vector.broadcast %48 : vector<4x16x1xf32> to vector<4x16x16xf32>
    %50 = arith.subf %44, %49 : vector<4x16x16xf32>
    %51 = math.exp %50 : vector<4x16x16xf32>
    %cst_25 = arith.constant dense<0.000000e+00> : vector<4x16xf32>
    %52 = vector.multi_reduction <add>, %51, %cst_25 [2] : vector<4x16x16xf32> to vector<4x16xf32>
    %53 = vector.shape_cast %52 : vector<4x16xf32> to vector<4x16x1xf32>
    %54 = vector.broadcast %53 : vector<4x16x1xf32> to vector<4x16x16xf32>
    %55 = arith.divf %51, %54 : vector<4x16x16xf32>
    %c0_26 = arith.constant 0 : index
    %c0_27 = arith.constant 0 : index
    %c0_28 = arith.constant 0 : index
    %c0_29 = arith.constant 0 : index
    %56 = vector.load %arg11[%c0_26, %c0_27, %c0_28, %c0_29] : memref<4x4x16x16xf32, #tpu.memory_space<vmem>>, vector<1x4x16x16xf32>
    %57 = vector.shape_cast %56 : vector<1x4x16x16xf32> to vector<4x16x16xf32>
    %58 = vector.shape_cast %55 : vector<4x16x16xf32> to vector<1x4x16x16xf32>
    tpu.vector_store %arg11[%c0_26, %c0_27, %c0_28, %c0_29], %58 {strides = array<i32>} : memref<4x4x16x16xf32, #tpu.memory_space<vmem>>, vector<1x4x16x16xf32>,
    %59 = vector.extract_strided_slice %34 {offsets = [0, 0, 0], sizes = [4, 16, 8], strides = [1, 1, 1]} : vector<4x16x32xf32> to vector<4x16x8xf32>
    "tpu.trace_start"() <{level = 10 : i32, message = "bqk,bkd->bqd"}> : () -> ()
    %cst_30 = arith.constant dense<0.000000e+00> : vector<4x16x8xf32>
    %60 = tpu.matmul %55, %59, %cst_30 {dimension_numbers = #tpu.dot_dimension_numbers<[2], [1], [1], [2], [0, 0, 0, 1, 1, 2], [0], [0]>, precision = #tpu.contract_precision<fp32>} : vector<4x16x16xf32>, vector<4x16x8xf32>, vector<4x16x8xf32> -> vector<4x16x8xf32>
    "tpu.trace_stop"() : () -> ()
    %61 = vector.extract_strided_slice %32 {offsets = [0, 0, 8], sizes = [4, 16, 8], strides = [1, 1, 1]} : vector<4x16x32xf32> to vector<4x16x8xf32>
    %62 = vector.extract_strided_slice %33 {offsets = [0, 0, 8], sizes = [4, 16, 8], strides = [1, 1, 1]} : vector<4x16x32xf32> to vector<4x16x8xf32>
    "tpu.trace_start"() <{level = 10 : i32, message = "bqd,bkd->bqk"}> : () -> ()
    %cst_31 = arith.constant dense<0.000000e+00> : vector<4x16x16xf32>
    %63 = tpu.matmul %61, %62, %cst_31 {dimension_numbers = #tpu.dot_dimension_numbers<[2], [2], [1], [1], [0, 0, 0, 1, 1, 1], [0], [0]>, precision = #tpu.contract_precision<fp32>} : vector<4x16x8xf32>, vector<4x16x8xf32>, vector<4x16x16xf32> -> vector<4x16x16xf32>
    "tpu.trace_stop"() : () -> ()
    %c1 = arith.constant 1 : index
    %c0_32 = arith.constant 0 : index
    %c0_33 = arith.constant 0 : index
    %64 = vector.load %arg8[%c1, %c0_32, %c0_33] : memref<4x16x16xf32, #tpu.memory_space<vmem>>, vector<1x16x16xf32>
    %65 = vector.shape_cast %64 : vector<1x16x16xf32> to vector<16x16xf32>
    %66 = vector.shape_cast %65 : vector<16x16xf32> to vector<1x16x16xf32>
    %67 = vector.broadcast %66 : vector<1x16x16xf32> to vector<4x16x16xf32>
    %68 = arith.addf %63, %67 : vector<4x16x16xf32>
    %69 = arith.addf %68, %35 : vector<4x16x16xf32>
    %cst_34 = arith.constant dense<0xFF800000> : vector<4x16xf32>
    %70 = vector.multi_reduction <maximumf>, %69, %cst_34 [2] : vector<4x16x16xf32> to vector<4x16xf32>
    %cst_35 = arith.constant 0xFF800000 : f32
    %71 = vector.broadcast %cst_35 : f32 to vector<4x16xf32>
    %72 = arith.maximumf %71, %70 : vector<4x16xf32>
    %73 = vector.shape_cast %72 : vector<4x16xf32> to vector<4x16x1xf32>
    %74 = vector.broadcast %73 : vector<4x16x1xf32> to vector<4x16x16xf32>
    %75 = arith.subf %69, %74 : vector<4x16x16xf32>
    %76 = math.exp %75 : vector<4x16x16xf32>
    %cst_36 = arith.constant dense<0.000000e+00> : vector<4x16xf32>
    %77 = vector.multi_reduction <add>, %76, %cst_36 [2] : vector<4x16x16xf32> to vector<4x16xf32>
    %78 = vector.shape_cast %77 : vector<4x16xf32> to vector<4x16x1xf32>
    %79 = vector.broadcast %78 : vector<4x16x1xf32> to vector<4x16x16xf32>
    %80 = arith.divf %76, %79 : vector<4x16x16xf32>
    %c1_37 = arith.constant 1 : index
    %c0_38 = arith.constant 0 : index
    %c0_39 = arith.constant 0 : index
    %c0_40 = arith.constant 0 : index
    %81 = vector.load %arg11[%c1_37, %c0_38, %c0_39, %c0_40] : memref<4x4x16x16xf32, #tpu.memory_space<vmem>>, vector<1x4x16x16xf32>
    %82 = vector.shape_cast %81 : vector<1x4x16x16xf32> to vector<4x16x16xf32>
    %83 = vector.shape_cast %80 : vector<4x16x16xf32> to vector<1x4x16x16xf32>
    tpu.vector_store %arg11[%c1_37, %c0_38, %c0_39, %c0_40], %83 {strides = array<i32>} : memref<4x4x16x16xf32, #tpu.memory_space<vmem>>, vector<1x4x16x16xf32>,
    %84 = vector.extract_strided_slice %34 {offsets = [0, 0, 8], sizes = [4, 16, 8], strides = [1, 1, 1]} : vector<4x16x32xf32> to vector<4x16x8xf32>
    "tpu.trace_start"() <{level = 10 : i32, message = "bqk,bkd->bqd"}> : () -> ()
    %cst_41 = arith.constant dense<0.000000e+00> : vector<4x16x8xf32>
    %85 = tpu.matmul %80, %84, %cst_41 {dimension_numbers = #tpu.dot_dimension_numbers<[2], [1], [1], [2], [0, 0, 0, 1, 1, 2], [0], [0]>, precision = #tpu.contract_precision<fp32>} : vector<4x16x16xf32>, vector<4x16x8xf32>, vector<4x16x8xf32> -> vector<4x16x8xf32>
    "tpu.trace_stop"() : () -> ()
    %86 = vector.extract_strided_slice %32 {offsets = [0, 0, 16], sizes = [4, 16, 8], strides = [1, 1, 1]} : vector<4x16x32xf32> to vector<4x16x8xf32>
    %87 = vector.extract_strided_slice %33 {offsets = [0, 0, 16], sizes = [4, 16, 8], strides = [1, 1, 1]} : vector<4x16x32xf32> to vector<4x16x8xf32>
    "tpu.trace_start"() <{level = 10 : i32, message = "bqd,bkd->bqk"}> : () -> ()
    %cst_42 = arith.constant dense<0.000000e+00> : vector<4x16x16xf32>
    %88 = tpu.matmul %86, %87, %cst_42 {dimension_numbers = #tpu.dot_dimension_numbers<[2], [2], [1], [1], [0, 0, 0, 1, 1, 1], [0], [0]>, precision = #tpu.contract_precision<fp32>} : vector<4x16x8xf32>, vector<4x16x8xf32>, vector<4x16x16xf32> -> vector<4x16x16xf32>
    "tpu.trace_stop"() : () -> ()
    %c2 = arith.constant 2 : index
    %c0_43 = arith.constant 0 : index
    %c0_44 = arith.constant 0 : index
    %89 = vector.load %arg8[%c2, %c0_43, %c0_44] : memref<4x16x16xf32, #tpu.memory_space<vmem>>, vector<1x16x16xf32>
    %90 = vector.shape_cast %89 : vector<1x16x16xf32> to vector<16x16xf32>
    %91 = vector.shape_cast %90 : vector<16x16xf32> to vector<1x16x16xf32>
    %92 = vector.broadcast %91 : vector<1x16x16xf32> to vector<4x16x16xf32>
    %93 = arith.addf %88, %92 : vector<4x16x16xf32>
    %94 = arith.addf %93, %35 : vector<4x16x16xf32>
    %cst_45 = arith.constant dense<0xFF800000> : vector<4x16xf32>
    %95 = vector.multi_reduction <maximumf>, %94, %cst_45 [2] : vector<4x16x16xf32> to vector<4x16xf32>
    %cst_46 = arith.constant 0xFF800000 : f32
    %96 = vector.broadcast %cst_46 : f32 to vector<4x16xf32>
    %97 = arith.maximumf %96, %95 : vector<4x16xf32>
    %98 = vector.shape_cast %97 : vector<4x16xf32> to vector<4x16x1xf32>
    %99 = vector.broadcast %98 : vector<4x16x1xf32> to vector<4x16x16xf32>
    %100 = arith.subf %94, %99 : vector<4x16x16xf32>
    %101 = math.exp %100 : vector<4x16x16xf32>
    %cst_47 = arith.constant dense<0.000000e+00> : vector<4x16xf32>
    %102 = vector.multi_reduction <add>, %101, %cst_47 [2] : vector<4x16x16xf32> to vector<4x16xf32>
    %103 = vector.shape_cast %102 : vector<4x16xf32> to vector<4x16x1xf32>
    %104 = vector.broadcast %103 : vector<4x16x1xf32> to vector<4x16x16xf32>
    %105 = arith.divf %101, %104 : vector<4x16x16xf32>
    %c2_48 = arith.constant 2 : index
    %c0_49 = arith.constant 0 : index
    %c0_50 = arith.constant 0 : index
    %c0_51 = arith.constant 0 : index
    %106 = vector.load %arg11[%c2_48, %c0_49, %c0_50, %c0_51] : memref<4x4x16x16xf32, #tpu.memory_space<vmem>>, vector<1x4x16x16xf32>
    %107 = vector.shape_cast %106 : vector<1x4x16x16xf32> to vector<4x16x16xf32>
    %108 = vector.shape_cast %105 : vector<4x16x16xf32> to vector<1x4x16x16xf32>
    tpu.vector_store %arg11[%c2_48, %c0_49, %c0_50, %c0_51], %108 {strides = array<i32>} : memref<4x4x16x16xf32, #tpu.memory_space<vmem>>, vector<1x4x16x16xf32>,
    %109 = vector.extract_strided_slice %34 {offsets = [0, 0, 16], sizes = [4, 16, 8], strides = [1, 1, 1]} : vector<4x16x32xf32> to vector<4x16x8xf32>
    "tpu.trace_start"() <{level = 10 : i32, message = "bqk,bkd->bqd"}> : () -> ()
    %cst_52 = arith.constant dense<0.000000e+00> : vector<4x16x8xf32>
    %110 = tpu.matmul %105, %109, %cst_52 {dimension_numbers = #tpu.dot_dimension_numbers<[2], [1], [1], [2], [0, 0, 0, 1, 1, 2], [0], [0]>, precision = #tpu.contract_precision<fp32>} : vector<4x16x16xf32>, vector<4x16x8xf32>, vector<4x16x8xf32> -> vector<4x16x8xf32>
    "tpu.trace_stop"() : () -> ()
    %111 = vector.extract_strided_slice %32 {offsets = [0, 0, 24], sizes = [4, 16, 8], strides = [1, 1, 1]} : vector<4x16x32xf32> to vector<4x16x8xf32>
    %112 = vector.extract_strided_slice %33 {offsets = [0, 0, 24], sizes = [4, 16, 8], strides = [1, 1, 1]} : vector<4x16x32xf32> to vector<4x16x8xf32>
    "tpu.trace_start"() <{level = 10 : i32, message = "bqd,bkd->bqk"}> : () -> ()
    %cst_53 = arith.constant dense<0.000000e+00> : vector<4x16x16xf32>
    %113 = tpu.matmul %111, %112, %cst_53 {dimension_numbers = #tpu.dot_dimension_numbers<[2], [2], [1], [1], [0, 0, 0, 1, 1, 1], [0], [0]>, precision = #tpu.contract_precision<fp32>} : vector<4x16x8xf32>, vector<4x16x8xf32>, vector<4x16x16xf32> -> vector<4x16x16xf32>
    "tpu.trace_stop"() : () -> ()
    %c3 = arith.constant 3 : index
    %c0_54 = arith.constant 0 : index
    %c0_55 = arith.constant 0 : index
    %114 = vector.load %arg8[%c3, %c0_54, %c0_55] : memref<4x16x16xf32, #tpu.memory_space<vmem>>, vector<1x16x16xf32>
    %115 = vector.shape_cast %114 : vector<1x16x16xf32> to vector<16x16xf32>
    %116 = vector.shape_cast %115 : vector<16x16xf32> to vector<1x16x16xf32>
    %117 = vector.broadcast %116 : vector<1x16x16xf32> to vector<4x16x16xf32>
    %118 = arith.addf %113, %117 : vector<4x16x16xf32>
    %119 = arith.addf %118, %35 : vector<4x16x16xf32>
    %cst_56 = arith.constant dense<0xFF800000> : vector<4x16xf32>
    %120 = vector.multi_reduction <maximumf>, %119, %cst_56 [2] : vector<4x16x16xf32> to vector<4x16xf32>
    %cst_57 = arith.constant 0xFF800000 : f32
    %121 = vector.broadcast %cst_57 : f32 to vector<4x16xf32>
    %122 = arith.maximumf %121, %120 : vector<4x16xf32>
    %123 = vector.shape_cast %122 : vector<4x16xf32> to vector<4x16x1xf32>
    %124 = vector.broadcast %123 : vector<4x16x1xf32> to vector<4x16x16xf32>
    %125 = arith.subf %119, %124 : vector<4x16x16xf32>
    %126 = math.exp %125 : vector<4x16x16xf32>
    %cst_58 = arith.constant dense<0.000000e+00> : vector<4x16xf32>
    %127 = vector.multi_reduction <add>, %126, %cst_58 [2] : vector<4x16x16xf32> to vector<4x16xf32>
    %128 = vector.shape_cast %127 : vector<4x16xf32> to vector<4x16x1xf32>
    %129 = vector.broadcast %128 : vector<4x16x1xf32> to vector<4x16x16xf32>
    %130 = arith.divf %126, %129 : vector<4x16x16xf32>
    %c3_59 = arith.constant 3 : index
    %c0_60 = arith.constant 0 : index
    %c0_61 = arith.constant 0 : index
    %c0_62 = arith.constant 0 : index
    %131 = vector.load %arg11[%c3_59, %c0_60, %c0_61, %c0_62] : memref<4x4x16x16xf32, #tpu.memory_space<vmem>>, vector<1x4x16x16xf32>
    %132 = vector.shape_cast %131 : vector<1x4x16x16xf32> to vector<4x16x16xf32>
    %133 = vector.shape_cast %130 : vector<4x16x16xf32> to vector<1x4x16x16xf32>
    tpu.vector_store %arg11[%c3_59, %c0_60, %c0_61, %c0_62], %133 {strides = array<i32>} : memref<4x4x16x16xf32, #tpu.memory_space<vmem>>, vector<1x4x16x16xf32>,
    %134 = vector.extract_strided_slice %34 {offsets = [0, 0, 24], sizes = [4, 16, 8], strides = [1, 1, 1]} : vector<4x16x32xf32> to vector<4x16x8xf32>
    "tpu.trace_start"() <{level = 10 : i32, message = "bqk,bkd->bqd"}> : () -> ()
    %cst_63 = arith.constant dense<0.000000e+00> : vector<4x16x8xf32>
    %135 = tpu.matmul %130, %134, %cst_63 {dimension_numbers = #tpu.dot_dimension_numbers<[2], [1], [1], [2], [0, 0, 0, 1, 1, 2], [0], [0]>, precision = #tpu.contract_precision<fp32>} : vector<4x16x16xf32>, vector<4x16x8xf32>, vector<4x16x8xf32> -> vector<4x16x8xf32>
    "tpu.trace_stop"() : () -> ()
    %136 = tpu.concatenate %60, %85, %110, %135 in 2 : vector<4x16x8xf32>, vector<4x16x8xf32>, vector<4x16x8xf32>, vector<4x16x8xf32> -> vector<4x16x32xf32>
    %137 = vector.shape_cast %136 : vector<4x16x32xf32> to vector<64x32xf32>
    %c0_64 = arith.constant 0 : index
    %c0_65 = arith.constant 0 : index
    %138 = vector.load %arg6[%c0_64, %c0_65] : memref<32x32xf32, #tpu.memory_space<vmem>>, vector<32x32xf32>
    %cst_66 = arith.constant dense<0.000000e+00> : vector<64x32xf32>
    %139 = tpu.matmul %137, %138, %cst_66 {dimension_numbers = #tpu.dot_dimension_numbers<[1], [0], [0], [1], [0, 0, 1, 1], [], []>, precision = #tpu.contract_precision<fp32>} : vector<64x32xf32>, vector<32x32xf32>, vector<64x32xf32> -> vector<64x32xf32>
    %c0_67 = arith.constant 0 : index
    %c0_68 = arith.constant 0 : index
    %140 = vector.load %arg7[%c0_67, %c0_68] : memref<1x32xf32, #tpu.memory_space<vmem>>, vector<1x32xf32>
    %141 = vector.broadcast %140 : vector<1x32xf32> to vector<64x32xf32>
    %142 = arith.addf %139, %141 : vector<64x32xf32>
    %143 = vector.shape_cast %142 : vector<64x32xf32> to vector<4x16x32xf32>
    %c0_69 = arith.constant 0 : index
    %c0_70 = arith.constant 0 : index
    %c0_71 = arith.constant 0 : index
    %144 = vector.load %arg10[%c0_69, %c0_70, %c0_71] : memref<4x16x32xf32, #tpu.memory_space<vmem>>, vector<4x16x32xf32>
    tpu.vector_store %arg10[%c0_69, %c0_70, %c0_71], %143 {strides = array<i32>} : memref<4x16x32xf32, #tpu.memory_space<vmem>>, vector<4x16x32xf32>,
    return
  }
  func.func @transform_0(%arg0: i32) -> (i32, i32, i32) {
    %c0_i32 = arith.constant 0 : i32
    %c0_i32_0 = arith.constant 0 : i32
    %c0_i32_1 = arith.constant 0 : i32
    return %arg0, %c0_i32, %c0_i32_0 : i32, i32, i32
  }
  func.func @transform_1(%arg0: i32) -> (i32, i32) {
    %c0_i32 = arith.constant 0 : i32
    %c0_i32_0 = arith.constant 0 : i32
    %c0_i32_1 = arith.constant 0 : i32
    return %c0_i32, %c0_i32_0 : i32, i32
  }
  func.func @transform_2(%arg0: i32) -> (i32, i32) {
    %c0_i32 = arith.constant 0 : i32
    %c0_i32_0 = arith.constant 0 : i32
    %c0_i32_1 = arith.constant 0 : i32
    return %c0_i32, %c0_i32_0 : i32, i32
  }
  func.func @transform_3(%arg0: i32) -> (i32, i32) {
    %c0_i32 = arith.constant 0 : i32
    %c0_i32_0 = arith.constant 0 : i32
    %c0_i32_1 = arith.constant 0 : i32
    return %c0_i32, %c0_i32_0 : i32, i32
  }
  func.func @transform_4(%arg0: i32) -> (i32, i32) {
    %c0_i32 = arith.constant 0 : i32
    %c0_i32_0 = arith.constant 0 : i32
    %c0_i32_1 = arith.constant 0 : i32
    return %c0_i32, %c0_i32_0 : i32, i32
  }
  func.func @transform_5(%arg0: i32) -> (i32, i32) {
    %c0_i32 = arith.constant 0 : i32
    %c0_i32_0 = arith.constant 0 : i32
    %c0_i32_1 = arith.constant 0 : i32
    return %c0_i32, %c0_i32_0 : i32, i32
  }
  func.func @transform_6(%arg0: i32) -> (i32, i32) {
    %c0_i32 = arith.constant 0 : i32
    %c0_i32_0 = arith.constant 0 : i32
    %c0_i32_1 = arith.constant 0 : i32
    return %c0_i32, %c0_i32_0 : i32, i32
  }
  func.func @transform_7(%arg0: i32) -> (i32, i32, i32) {
    %c0_i32 = arith.constant 0 : i32
    %c0_i32_0 = arith.constant 0 : i32
    %c0_i32_1 = arith.constant 0 : i32
    %c0_i32_2 = arith.constant 0 : i32
    return %c0_i32, %c0_i32_0, %c0_i32_1 : i32, i32, i32
  }
  func.func @transform_8(%arg0: i32) -> (i32, i32, i32) {
    %c1_i32 = arith.constant 1 : i32
    %c0_i32 = arith.constant 0 : i32
    %0 = arith.cmpi eq, %c1_i32, %c0_i32 : i32
    %c1_i32_0 = arith.constant 1 : i32
    %1 = arith.select %0, %c1_i32_0, %c1_i32 : i32
    %2 = arith.remsi %arg0, %1 : i32
    %c0_i32_1 = arith.constant 0 : i32
    %3 = arith.cmpi ne, %2, %c0_i32_1 : i32
    %c0_i32_2 = arith.constant 0 : i32
    %4 = arith.cmpi slt, %2, %c0_i32_2 : i32
    %c0_i32_3 = arith.constant 0 : i32
    %5 = arith.cmpi slt, %1, %c0_i32_3 : i32
    %6 = arith.xori %4, %5 : i1
    %7 = arith.andi %6, %3 : i1
    %8 = arith.addi %2, %1 : i32
    %9 = arith.select %7, %8, %2 : i32
    %c0_i32_4 = arith.constant 0 : i32
    %c0_i32_5 = arith.constant 0 : i32
    %c0_i32_6 = arith.constant 0 : i32
    return %9, %c0_i32_4, %c0_i32_5 : i32, i32, i32
  }
  func.func @transform_9(%arg0: i32) -> (i32, i32, i32) {
    %c0_i32 = arith.constant 0 : i32
    %c0_i32_0 = arith.constant 0 : i32
    %c0_i32_1 = arith.constant 0 : i32
    return %arg0, %c0_i32, %c0_i32_0 : i32, i32, i32
  }
  func.func @transform_10(%arg0: i32) -> (i32, i32, i32, i32) {
    %c0_i32 = arith.constant 0 : i32
    %c0_i32_0 = arith.constant 0 : i32
    %c0_i32_1 = arith.constant 0 : i32
    %c0_i32_2 = arith.constant 0 : i32
    return %c0_i32, %arg0, %c0_i32_0, %c0_i32_1 : i32, i32, i32, i32
  }
}

</mosaic_0001>

<bundles_post_ra>
// kernel: tpu_custom_call.1
= control target key start
LH: loop header
LB: loop body
LE: loop exit
PB: predicated region body
PF: predicated region fallthrough
CT: control target
= control target key end

     0   :  { %s26737_s0 = inlined_call_operand.hbm [shape: f32[8,16,32], index: 0, kind: input, shape index: {}]   ;;  %s26738_s1 = inlined_call_operand.vmem [shape: f32[1,32], index: 1, kind: input, shape index: {}]   ;;  %s26739_s2 = inlined_call_operand.vmem [shape: f32[1,32], index: 2, kind: input, shape index: {}]   ;;  %s26740_s3 = inlined_call_operand.hbm [shape: f32[32,96], index: 3, kind: input, shape index: {}]   ;;  %s26741_s4 = inlined_call_operand.vmem [shape: f32[1,96], index: 4, kind: input, shape index: {}]   ;;  %s26742_s5 = inlined_call_operand.hbm [shape: f32[32,32], index: 5, kind: input, shape index: {}]   ;;  %s26743_s6 = inlined_call_operand.vmem [shape: f32[1,32], index: 6, kind: input, shape index: {}]   ;;  %s26744_s7 = inlined_call_operand.hbm [shape: f32[4,16,16], index: 7, kind: input, shape index: {}]   ;;  %s26745_s8 = inlined_call_operand.hbm [shape: f32[4,16,16], index: 8, kind: input, shape index: {}]   ;;  %s26746_s9 = inlined_call_operand.hbm [shape: f32[8,16,32], index: 9, kind: output, shape index: {0}]   ;;  %s26747_s10 = inlined_call_operand.hbm [shape: f32[4,8,16,16], index: 10, kind: output, shape index: {1}]  }
   0x1   :  { %26755 = sst [smem:[#allocation23_spill]] %s26737_s0 }
   0x2   :  { %26756 = sst [smem:[#allocation24_spill]] %s26746_s9 }
   0x3   :  { %26757 = sst [smem:[#allocation25_spill]] %s26747_s10 }
   0x4   :  { %16 = vsyncpa [#allocation3], 0 }
   0x5   :  { %18 = vsyncpa [#allocation3 + $0x1], 0 }
   0x6   :  { %19 = vsyncpa [#allocation6], 0 }
   0x7   :  { %20 = vsyncpa [#allocation9], 0 }
   0x8   :  { %21 = vsyncpa [#allocation4], 0 }
   0x9   :  { %23 = vsyncpa [#allocation4 + $0x1], 0 }
   0xa   :  { %24 = vsyncpa [#allocation13], 0 }
   0xb   :  { %26 = vsyncpa [#allocation13 + $0x1], 0  ;;  %s24001_s13 = smov 0   ;;  %s24003_s14 = smov 0  }
   0xc   :  { %s24005_s15 = smov 0   ;;  %s24007_s16 = smov 0  }
   0xd LB: > { %26758 = sst [smem:[#allocation21_spill]] %s23903_s13  ;;  %s24022_s17 = sadd.s32 4294967295, %s23915_s16   ;;  %s23915_s16 = sphi %s24007_s16, %s26785_s16   ;;  %s23911_s15 = sphi %s24005_s15, %s26784_s15   ;;  %s23907_s14 = sphi %s24003_s14, %s26783_s14   ;;  %s23903_s13 = sphi %s24001_s13, %s26782_s13  }
   0xe   : > { %s19535_s18 = sadd.s32 4294967294, %s23915_s16   ;;  %p52_p0 = scmp.ne.s32.totalorder %s23907_s14, %s23903_s13 }
   0xf   : > { %p26748_p1 = scmp.eq.s32.totalorder %s24022_s17, 0  ;;  %p250_p3 = scmp.eq.s32.totalorder %s19535_s18, 1 }
  0x10   : > { %p19536_p5 = scmp.ge.s32.totalorder %s23915_s16, 1  ;;  %p283_p7 = scmp.lt.s32.totalorder %s23915_s16, 3 }
  0x11   : > { %p24031_p4 = por %p26748_p1, %p52_p0  ;;  %p24036_p6 = por %p250_p3, %p52_p0 }
  0x12   : > { %p24041_p8 = pnand %p19536_p5, %p283_p7  ;;  %s23917_s22 = smov [#allocation5]  }
  0x13   : > { %s26759_s19 = scalar_select %p24031_p4, 1, 0 }
  0x14   : > { %s26760_s20 = scalar_select %p24036_p6, 1, 0 }
  0x15   : > { %s26762_s21 = scalar_select %p24041_p8, 1, 0 }
  0x16   : > { %26761 = sst [smem:[#allocation22_spill]] %s26760_s20  ;;  %s301_s23 = sshll.u32 %s23917_s22, 4  ;;  %s24045_s23 = int_to_ptr.vmem [resolvable:$true] %s301_s23 }
  0x17   : > { %p23434_p9 = pneg %p24041_p8  ;;  %s23918_s25 = smov [#allocation8]  }
  0x18   : > { %s333_s26 = sshll.u32 %s23918_s25, 4  ;;  %s23919_s27 = smov [#allocation7]   ;;  %s24056_s26 = int_to_ptr.vmem [resolvable:$true] %s333_s26 }
  0x19   : > { %p24052_p11 = pnand %p23434_p9, %p26748_p1  ;;  %s24058_s28 = sshll.u32 %s23919_s27, 4  ;;  %s318_s28 = int_to_ptr.vmem [resolvable:$true] %s24058_s28 }
  0x1a   : > { %s23695_s11 = scalar_lea.hbm %s26740_s3, 512 }
  0x1b   : > { %p23696_p12 = scmp.ne.s32.totalorder %s26740_s3, %s23695_s11  ;;  %p24068_p13 = pneg %p24052_p11 }
  0x1c   : > { %p23702_p5 = scmp.lt.u32.totalorder %s23695_s11, %s26740_s3 }
  0x1d   : > { %p23698_p0 = pnand %p24068_p13, %p23696_p12 }
  0x1f   : > { %p23699_p3 = pneg %p23698_p0 }
  0x21   : > { %p23704_p7 = pnand %p23702_p5, %p23699_p3 }
  0x23   : > { %23707 = shalt.err (!%p23704_p7)
}
  0x24   : > { %s23708_s29 = scalar_lea.vmem %s24045_s23, 512  ;;  %p23716_p2 = scmp.lt.s32.totalorder %s24045_s23, %s24045_s23 }
  0x25   : > { %p23709_p9 = scmp.ne.s32.totalorder %s24045_s23, %s23708_s29  ;;  %p23717_p6 = scmp.lt.s32.totalorder %s23708_s29, %s23708_s29 }
  0x27   : > { %p23711_p10 = pnand %p23709_p9, %p24068_p13  ;;  %p23718_p12 = por %p23717_p6, %p23716_p2 }
  0x29   : > { %p23712_p1 = pneg %p23711_p10 }
  0x2b   : > { %p23719_p0 = pnand %p23718_p12, %p23712_p1 }
  0x2d   : > { %23722 = shalt.err (!%p23719_p0)
}
  0x2e   : > { %s23920_s30 = smov 128   ;;  %s23921_s11 = smov 8  }
  0x2f   : > { %23437 = dma.hbm_to_vmem [thread:$0]  (!%p24052_p11), %s26740_s3, 512, %s24045_s23, [#allocation6], %s23920_s30, %s23920_s30, %s23921_s11  }
  0x30   : > { %s23723_s29 = scalar_lea.hbm %s26744_s7, 1024 }
  0x31   : > { %p23724_p1 = scmp.ne.s32.totalorder %s26744_s7, %s23723_s29  ;;  %p23730_p10 = scmp.lt.u32.totalorder %s23723_s29, %s26744_s7 }
  0x33   : > { %p23726_p2 = pnand %p23724_p1, %p24068_p13 }
  0x35   : > { %p23727_p6 = pneg %p23726_p2 }
  0x37   : > { %p23732_p3 = pnand %p23730_p10, %p23727_p6 }
  0x39   : > { %23735 = shalt.err (!%p23732_p3)
}
  0x3a   : > { %s23736_s23 = scalar_lea.vmem %s24056_s26, 1024  ;;  %p23744_p12 = scmp.lt.s32.totalorder %s24056_s26, %s24056_s26 }
  0x3b   : > { %p23737_p5 = scmp.ne.s32.totalorder %s24056_s26, %s23736_s23  ;;  %p23745_p0 = scmp.lt.s32.totalorder %s23736_s23, %s23736_s23 }
  0x3d   : > { %p23739_p7 = pnand %p23737_p5, %p24068_p13  ;;  %p23746_p1 = por %p23745_p0, %p23744_p12 }
  0x3f   : > { %p23740_p9 = pneg %p23739_p7 }
  0x41   : > { %p23747_p2 = pnand %p23746_p1, %p23740_p9 }
  0x43   : > { %23750 = shalt.err (!%p23747_p2)
}
  0x44   : > { %23443 = dma.hbm_to_vmem [thread:$0]  (!%p24052_p11), %s26744_s7, 1024, %s24056_s26, [#allocation9], %s23920_s30, %s23920_s30, %s23921_s11  }
  0x45   : > { %s23751_s12 = scalar_lea.hbm %s26742_s5, 512 }
  0x46   : > { %p23752_p6 = scmp.ne.s32.totalorder %s26742_s5, %s23751_s12  ;;  %p23758_p5 = scmp.lt.u32.totalorder %s23751_s12, %s26742_s5 }
  0x48   : > { %p23754_p10 = pnand %p23752_p6, %p24068_p13 }
  0x4a   : > { %p23755_p3 = pneg %p23754_p10 }
  0x4c   : > { %p23760_p7 = pnand %p23758_p5, %p23755_p3 }
  0x4e   : > { %23763 = shalt.err (!%p23760_p7)
}
  0x4f   : > { %s23764_s23 = scalar_lea.vmem %s318_s28, 512  ;;  %p23772_p1 = scmp.lt.s32.totalorder %s318_s28, %s318_s28 }
  0x50   : > { %p23765_p9 = scmp.ne.s32.totalorder %s318_s28, %s23764_s23  ;;  %p23773_p2 = scmp.lt.s32.totalorder %s23764_s23, %s23764_s23 }
  0x52   : > { %p23767_p12 = pnand %p23765_p9, %p24068_p13  ;;  %p23774_p4 = por %p23773_p2, %p23772_p1 }
  0x54   : > { %p23768_p0 = pneg %p23767_p12 }
  0x56   : > { %p23775_p8 = pnand %p23774_p4, %p23768_p0 }
  0x58   : > { %23778 = shalt.err (!%p23775_p8)
}
  0x59   : > { %23440 = dma.hbm_to_vmem [thread:$0]  (!%p24052_p11), %s26742_s5, 512, %s318_s28, [#allocation6], %s23920_s30, %s23920_s30, %s23921_s11  }
  0x5a   : > { %s23922_s10 = smov [#allocation10]   ;;  %s23779_s18 = scalar_lea.hbm %s26745_s8, 1024 }
  0x5b   : > { %s346_s13 = sshll.u32 %s23922_s10, 4  ;;  %p23780_p4 = scmp.ne.s32.totalorder %s26745_s8, %s23779_s18  ;;  %s347_s13 = int_to_ptr.vmem [resolvable:$true] %s346_s13 }
  0x5c   : > { %p23786_p10 = scmp.lt.u32.totalorder %s23779_s18, %s26745_s8 }
  0x5d   : > { %p23782_p8 = pnand %p23780_p4, %p24068_p13 }
  0x5f   : > { %p23783_p6 = pneg %p23782_p8 }
  0x61   : > { %p23788_p3 = pnand %p23786_p10, %p23783_p6 }
  0x63   : > { %23791 = shalt.err (!%p23788_p3)
}
  0x64   : > { %s23792_s28 = scalar_lea.vmem %s347_s13, 1024  ;;  %p23800_p12 = scmp.lt.s32.totalorder %s347_s13, %s347_s13 }
  0x65   : > { %p23793_p5 = scmp.ne.s32.totalorder %s347_s13, %s23792_s28  ;;  %p23801_p0 = scmp.lt.s32.totalorder %s23792_s28, %s23792_s28 }
  0x67   : > { %p23795_p7 = pnand %p23793_p5, %p24068_p13  ;;  %p23802_p1 = por %p23801_p0, %p23800_p12 }
  0x69   : > { %p23796_p9 = pneg %p23795_p7 }
  0x6b   : > { %p23803_p2 = pnand %p23802_p1, %p23796_p9 }
  0x6d   : > { %23806 = shalt.err (!%p23803_p2)
}
  0x6e   : > { %23446 = dma.hbm_to_vmem [thread:$0]  (!%p24052_p11), %s26745_s8, 1024, %s347_s13, [#allocation9], %s23920_s30, %s23920_s30, %s23921_s11  }
  0x6f   : > { %s24162_s22 = sadd.s32 1, %s23915_s16   ;;  %s39_s24 = sadd.s32 1, %s23911_s15 }
  0x70   : > { %s36_s10 = ssub.s32 %s23915_s16, %s24162_s22  ;;  %p46_p13 = scmp.ne.s32.totalorder %s23911_s15, %s23907_s14 }
  0x71   : > { %p37_p4 = scmp.eq.s32.totalorder %s36_s10, 0  ;;  %p47_p8 = scmp.eq.s32.totalorder %s23915_s16, 0 }
  0x72   : > { %p26765_p6 = scmp.eq.s32.totalorder %s24022_s17, 1  ;;  %p23462_p3 = scmp.lt.s32.totalorder %s23915_s16, 2 }
  0x73   : > { %s24178_s12 = scalar_select %p37_p4, %s23911_s15, %s39_s24  }
  0x74   : > { %p24172_p10 = por %p26765_p6, %p46_p13  ;;  %p48_p5 = por %p47_p8, %p46_p13 }
  0x75   : > { %s360_s18 = sand.u32 1, %s23911_s15   ;;  %s19593_s13 = sshll.u32 %s23915_s16, 10 }
  0x76   : > { %s19542_s25 = sshll.u32 %s360_s18, 6  ;;  %s26767_s0 = sld [smem:[#allocation23_spill]] }
  0x77   : > { %s364_s28 = scalar_lea.vmem [#allocation2], %s19542_s25  ;;  %p24189_p11 = pnand %p23462_p3, %p48_p5 }
  0x78   : > { %s372_s26 = sshll.u32 %s364_s28, 4  ;;  %s24193_s24 = scalar_lea.sflag [#allocation3], %s360_s18  ;;  %s24187_s26 = int_to_ptr.vmem [resolvable:$true] %s372_s26 }
  0x79   : > { %p23809_p9 = pneg %p24189_p11 }
  0x7c   : > { %s24185_s23 = scalar_lea.hbm %s26767_s0, %s19593_s13  ;;  %s23812_s27 = scalar_lea.hbm %s26767_s0, 2048 }
  0x7d   : > { %s23807_s10 = scalar_lea.hbm %s24185_s23, 1024  ;;  %p23813_p1 = scmp.lt.u32.totalorder %s24185_s23, %s26767_s0 }
  0x7e   : > { %p23808_p7 = scmp.ne.s32.totalorder %s24185_s23, %s23807_s10  ;;  %p23814_p2 = scmp.lt.u32.totalorder %s23812_s27, %s23807_s10 }
  0x7f   : > { %p23816_p4 = scmp.lt.u32.totalorder %s23807_s10, %s24185_s23 }
  0x80   : > { %p23810_p12 = pnand %p23809_p9, %p23808_p7  ;;  %p23815_p13 = por %p23814_p2, %p23813_p1 }
  0x82   : > { %p23811_p0 = pneg %p23810_p12  ;;  %p23817_p8 = por %p23816_p4, %p23815_p13 }
  0x84   : > { %p23818_p6 = pnand %p23817_p8, %p23811_p0 }
  0x86   : > { %23821 = shalt.err (!%p23818_p6)
}
  0x87   : > { %s23822_s18 = scalar_lea.vmem %s24187_s26, 1024  ;;  %s23923_s25 = smov [#allocation2]  }
  0x88   : > { %p23823_p3 = scmp.ne.s32.totalorder %s24187_s26, %s23822_s18  ;;  %s23827_s13 = sshll.u32 %s23923_s25, 4  ;;  %s23828_s13 = int_to_ptr.vmem [resolvable:$false] %s23827_s13 }
  0x89   : > { %s23829_s29 = scalar_lea.vmem %s23828_s13, 2048  ;;  %p23830_p12 = scmp.lt.s32.totalorder %s24187_s26, %s23828_s13 }
  0x8a   : > { %p23825_p5 = pnand %p23823_p3, %p23809_p9  ;;  %p23831_p1 = scmp.lt.s32.totalorder %s23829_s29, %s23822_s18 }
  0x8c   : > { %p23826_p7 = pneg %p23825_p5  ;;  %p23832_p2 = por %p23831_p1, %p23830_p12 }
  0x8e   : > { %p23833_p13 = pnand %p23832_p2, %p23826_p7 }
  0x90   : > { %23836 = shalt.err (!%p23833_p13)
}
  0x91   : > { %23450 = dma.hbm_to_vmem [thread:$0]  (!%p24189_p11), %s24185_s23, 1024, %s24187_s26, %s24193_s24, %s23920_s30, %s23920_s30, %s23921_s11  }
  0x92   : > { %p26769_p9 = scmp.ne.s32.totalorder %s26762_s21, 0 }
  0x93   : > { %s24227_s10 = sand.u32 (!%p26769_p9), 1, %s23907_s14   ;;  %p26770_p0 = scmp.ne.s32.totalorder (!%p26769_p9), %s26759_s19, 0 }
  0x94   : > { %384 = sbr.rel (%p26769_p9) target bundleno = 4377 (0x1119), region = 56  ;;  %s19547_s27 = sshll.u32 (!%p26769_p9), %s24227_s10, 6 }
  0x95   : > { %s387_s28 = scalar_lea.sflag (!%p26769_p9), [#allocation3], %s24227_s10  ;;  %s390_s9 = scalar_lea.vmem (!%p26769_p9), [#allocation2], %s19547_s27 }
  0x9b   : > { %23882 = dma.done.wait (%p26770_p0), %s387_s28, 1024  }
  0x9c   : > { %23884 = vsyncadd (%p26770_p0), %s387_s28, 4294966272  ;;  %p26771_p11 = scmp.eq.s32.totalorder %s24022_s17, 0 }
  0x9e   : > { %23886 = dma.done.wait (%p26771_p11), [#allocation6], 1024   ;;  %p26772_p4 = pmov %p26771_p11 }
  0xa0   : > { %23888 = vsyncadd (%p26772_p4), [#allocation6], 4294966272  ;;  %p26773_p8 = pmov %p26772_p4 }
  0xa1   : > { %p26774_p6 = pmov %p26772_p4 }
  0xa2   : > { %23890 = dma.done.wait (%p26773_p8), [#allocation9], 2048  }
  0xa3   : > { %23892 = vsyncadd (%p26774_p6), [#allocation9], 4294965248  ;;  %vm461_vm0 = vcmask 261120   ;;  %v451_v0 = vld [vmem:[%s390_s9] sm:$0xff]  ;;  %v453_v1 = vld [vmem:[%s390_s9 + $0x10] sm:$0xff]  ;;  %s23924_s24 = smov 96  }
  0xa4   : > { %v452_v2 = vld [vmem:[%s390_s9 + $0x8] sm:$0xff]  ;;  %v462_v3 = vsel %vm461_vm0, %v451_v0, 0.0  ;;  %v468_v4 = vsel %vm461_vm0, %v453_v1, 0.0  ;;  %v454_v5 = vld [vmem:[%s390_s9 + $0x18] sm:$0xff]  ;;  %v455_v8 = vld [vmem:[%s390_s9 + $0x20] sm:$0xff]  ;;  %vm1440_vm1 = vcmask 64512  }
  0xa5   : > { %463 = vadd.xlane.f32.xlu0 %v462_v3  ;;  %469 = vadd.xlane.f32.xlu1 %v468_v4  ;;  %v465_v6 = vsel %vm461_vm0, %v452_v2, 0.0  ;;  %v471_v7 = vsel %vm461_vm0, %v454_v5, 0.0  ;;  %v456_v9 = vld [vmem:[%s390_s9 + $0x28] sm:$0xff]  ;;  %v474_v10 = vsel %vm461_vm0, %v455_v8, 0.0  ;;  %v457_v12 = vld [vmem:[%s390_s9 + $0x30] sm:$0xff]  ;;  %v458_v13 = vld [vmem:[%s390_s9 + $0x38] sm:$0xff] }
  0xa6   : > { %v477_v11 = vsel %vm461_vm0, %v456_v9, 0.0  ;;  %v480_v14 = vsel %vm461_vm0, %v457_v12, 0.0  ;;  %v483_v15 = vsel %vm461_vm0, %v458_v13, 0.0  ;;  %v595_v56 = vld [vmem:[#allocation5] sm:$0xff]  ;;  %v596_v57 = vld [vmem:[#allocation5 + $0x8] sm:$0xff]  ;;  %v597_v61 = vld [vmem:[#allocation5 + $0x10] sm:$0xff] }
  0xa7   : > { %v631_v58 = vand.u32 4294901760, %v595_v56  ;;  %v634_v59 = vand.u32 4294901760, %v596_v57  ;;  %v598_v62 = vld [vmem:[#allocation5 + $0x18] sm:$0xff]  ;;  %v637_v63 = vand.u32 4294901760, %v597_v61  ;;  %vm3515_vm2 = vcmask 130048   ;;  %s23925_s18 = smov 64  }
  0xa8   : > { %s23926_s25 = smov 88   ;;  %s23927_s13 = smov 120   ;;  %vm18488_vm3 = vcmask 195584  }
  0xa9   : > { %466 = vadd.xlane.f32.xlu0 %v465_v6  ;;  %472 = vadd.xlane.f32.xlu1 %v471_v7  ;;  %v24293_v60 = vpack.c.bf16 %v634_v59, %v631_v58  ;;  %v788_v3 = vsub.f32 %v596_v57, %v634_v59  ;;  %s19553_s29 = sshll.u32 %s24227_s10, 8  ;;  %s23928_s9 = smov 56  }
  0xaa   : > { %s24704_s28 = scalar_lea.vmem [#allocation12], %s19553_s29  ;;  %s23929_s19 = smov 80  }
  0xab   : > { %22119 = vmatprep.subr.bf16.mxu0 %v24293_v60  ;;  %22095 = vmatprep.subr.bf16.mxu1 %v24293_v60  ;;  %s23930_s21 = smov 112   ;;  %s23931_s30 = smov 48  }
  0xac   : > { %22121 = vmatpush3.bf16.msra.mxu0 %v24293_v60  ;;  %22097 = vmatpush3.bf16.msra.mxu1 %v24293_v60  ;;  %s23932_s11 = smov 72   ;;  %s23933_s23 = smov 104  }
  0xad   : > { %475 = vadd.xlane.f32.xlu0 %v474_v10  ;;  %478 = vadd.xlane.f32.xlu1 %v477_v11  ;;  %s23934_s26 = smov 40  }
  0xb1   : > { %481 = vadd.xlane.f32.xlu0 %v480_v14  ;;  %484 = vadd.xlane.f32.xlu1 %v483_v15 }
 0x132   : > { %v464_v16 = vpop.xlane.xlu0 %463  ;;  %v470_v17 = vpop.xlane.xlu1 %469 }
 0x133   : > { %v487_v18 = vmul.f32 0.03125, %v464_v16  ;;  %v489_v19 = vmul.f32 0.03125, %v470_v17 }
 0x135   : > { %v24253_v20 = vsub.f32 %v451_v0, %v487_v18  ;;  %v24255_v21 = vsub.f32 %v453_v1, %v489_v19  ;;  %v640_v0 = vand.u32 4294901760, %v598_v62 }
 0x136   : > { %v467_v22 = vpop.xlane.xlu0 %466  ;;  %v473_v23 = vpop.xlane.xlu1 %472 }
 0x137   : > { %v488_v24 = vmul.f32 0.03125, %v467_v22  ;;  %v490_v25 = vmul.f32 0.03125, %v473_v23  ;;  %v503_v26 = vmul.f32 %v24253_v20, %v24253_v20  ;;  %v505_v27 = vmul.f32 %v24255_v21, %v24255_v21 }
 0x138   : > { %v24299_v1 = vpack.c.bf16 %v640_v0, %v637_v63  ;;  %v802_v10 = vsub.f32 %v598_v62, %v640_v0 }
 0x139   : > { %v24261_v28 = vsub.f32 %v452_v2, %v488_v24  ;;  %v24263_v29 = vsub.f32 %v454_v5, %v490_v25  ;;  %v511_v30 = vsel %vm461_vm0, %v503_v26, 0.0  ;;  %v517_v33 = vsel %vm461_vm0, %v505_v27, 0.0 }
 0x13a   : > { %512 = vadd.xlane.f32.xlu0 %v511_v30  ;;  %v476_v31 = vpop.xlane.xlu0 %475  ;;  %v479_v32 = vpop.xlane.xlu1 %478  ;;  %22123 = vmatprep.subr.bf16.mxu0 %v24299_v1  ;;  %v781_v2 = vsub.f32 %v595_v56, %v631_v58  ;;  %v789_v5 = vand.u32 4294901760, %v788_v3  ;;  %v803_v14 = vand.u32 4294901760, %v802_v10  ;;  %v24328_v58 = vld [vmem:[%s26739_s2] ss:$0 sm:$0xff] }
 0x13b   : > { %v491_v34 = vmul.f32 0.03125, %v476_v31  ;;  %v492_v35 = vmul.f32 0.03125, %v479_v32  ;;  %v504_v36 = vmul.f32 %v24261_v28, %v24261_v28  ;;  %v506_v37 = vmul.f32 %v24263_v29, %v24263_v29  ;;  %22099 = vmatprep.subr.bf16.mxu1 %v24299_v1  ;;  %22125 = vmatpush3.bf16.msra.mxu0 %v24299_v1 }
 0x13c   : > { %22101 = vmatpush3.bf16.msra.mxu1 %v24299_v1  ;;  %v782_v4 = vand.u32 4294901760, %v781_v2  ;;  %v804_v18 = vsub.f32 %v802_v10, %v803_v14  ;;  %v24315_v24 = vpack.c.bf16 %v788_v3, %v781_v2 }
 0x13d   : > { %v24271_v38 = vsub.f32 %v455_v8, %v491_v34  ;;  %v24273_v39 = vsub.f32 %v456_v9, %v492_v35  ;;  %v514_v40 = vsel %vm461_vm0, %v504_v36, 0.0  ;;  %v520_v43 = vsel %vm461_vm0, %v506_v37, 0.0 }
 0x13e   : > { %518 = vadd.xlane.f32.xlu0 %v517_v33  ;;  %515 = vadd.xlane.f32.xlu1 %v514_v40  ;;  %v482_v41 = vpop.xlane.xlu0 %481  ;;  %v485_v42 = vpop.xlane.xlu1 %484  ;;  %v24305_v6 = vpack.c.bf16 %v789_v5, %v782_v4  ;;  %v783_v7 = vsub.f32 %v781_v2, %v782_v4  ;;  %v790_v8 = vsub.f32 %v788_v3, %v789_v5  ;;  %v805_v22 = vand.u32 4294901760, %v804_v18 }
 0x13f   : > { %v493_v44 = vmul.f32 0.03125, %v482_v41  ;;  %v494_v45 = vmul.f32 0.03125, %v485_v42  ;;  %v507_v46 = vmul.f32 %v24271_v38, %v24271_v38  ;;  %v508_v47 = vmul.f32 %v24273_v39, %v24273_v39 }
 0x140   : > { %22127 = vmatprep.subr.bf16.mxu0 %v24305_v6  ;;  %v795_v9 = vsub.f32 %v597_v61, %v637_v63  ;;  %v784_v11 = vand.u32 4294901760, %v783_v7 }
 0x141   : > { %v24281_v48 = vsub.f32 %v457_v12, %v493_v44  ;;  %v24283_v49 = vsub.f32 %v458_v13, %v494_v45  ;;  %v523_v50 = vsel %vm461_vm0, %v507_v46, 0.0  ;;  %v526_v51 = vsel %vm461_vm0, %v508_v47, 0.0 }
 0x142   : > { %521 = vadd.xlane.f32.xlu1 %v520_v43  ;;  %524 = vadd.xlane.f32.xlu0 %v523_v50  ;;  %v791_v12 = vand.u32 4294901760, %v790_v8  ;;  %v796_v13 = vand.u32 4294901760, %v795_v9  ;;  %v24317_v25 = vpack.c.bf16 %v802_v10, %v795_v9 }
 0x143   : > { %v509_v52 = vmul.f32 %v24281_v48, %v24281_v48  ;;  %v510_v53 = vmul.f32 %v24283_v49, %v24283_v49 }
 0x144   : > { %v24308_v15 = vpack.c.bf16 %v791_v12, %v784_v11  ;;  %v24310_v16 = vpack.c.bf16 %v803_v14, %v796_v13  ;;  %v797_v17 = vsub.f32 %v795_v9, %v796_v13 }
 0x145   : > { %v529_v54 = vsel %vm461_vm0, %v509_v52, 0.0  ;;  %v532_v55 = vsel %vm461_vm0, %v510_v53, 0.0 }
 0x146   : > { %527 = vadd.xlane.f32.xlu1 %v526_v51  ;;  %530 = vadd.xlane.f32.xlu0 %v529_v54  ;;  %v798_v19 = vand.u32 4294901760, %v797_v17  ;;  %v24322_v54 = vld [vmem:[%s26738_s1] ss:$0 sm:$0xff] }
 0x147   : > { %22103 = vmatprep.subr.bf16.mxu1 %v24308_v15 }
 0x148   : > { %v24313_v23 = vpack.c.bf16 %v805_v22, %v798_v19 }
 0x14a   : > { %533 = vadd.xlane.f32.xlu1 %v532_v55 }
 0x1c7   : > { %v513_v26 = vpop.xlane.xlu0 %512 }
 0x1c8   : > { %v535_v27 = vmul.f32 0.03125, %v513_v26 }
 0x1ca   : > { %v543_v30 = vadd.f32 1e-05, %v535_v27 }
 0x1cb   : > { %v516_v31 = vpop.xlane.xlu1 %515  ;;  %v519_v32 = vpop.xlane.xlu0 %518 }
 0x1cc   : > { %23527 = vrsqrt.f32 %v543_v30  ;;  %v536_v33 = vmul.f32 0.03125, %v516_v31  ;;  %v537_v34 = vmul.f32 0.03125, %v519_v32 }
 0x1ce   : > { %v544_v35 = vadd.f32 1e-05, %v536_v33  ;;  %v545_v36 = vadd.f32 1e-05, %v537_v34 }
 0x1cf   : > { %v522_v37 = vpop.xlane.xlu1 %521  ;;  %v525_v40 = vpop.xlane.xlu0 %524 }
 0x1d0   : > { %23529 = vrsqrt.f32 %v544_v35  ;;  %v538_v41 = vmul.f32 0.03125, %v522_v37  ;;  %v539_v42 = vmul.f32 0.03125, %v525_v40 }
 0x1d1   : > { %23531 = vrsqrt.f32 %v545_v36 }
 0x1d2   : > { %v546_v43 = vadd.f32 1e-05, %v538_v41  ;;  %v547_v44 = vadd.f32 1e-05, %v539_v42 }
 0x1d3   : > { %v528_v45 = vpop.xlane.xlu1 %527  ;;  %v531_v46 = vpop.xlane.xlu0 %530 }
 0x1d4   : > { %23533 = vrsqrt.f32 %v546_v43  ;;  %v540_v47 = vmul.f32 0.03125, %v528_v45  ;;  %v541_v50 = vmul.f32 0.03125, %v531_v46 }
 0x1d5   : > { %23535 = vrsqrt.f32 %v547_v44 }
 0x1d6   : > { %v23528_v51 = vpop.eup %23527  ;;  %v548_v52 = vadd.f32 1e-05, %v540_v47  ;;  %v549_v53 = vadd.f32 1e-05, %v541_v50 }
 0x1d7   : > { %v534_v55 = vpop.xlane.xlu1 %533  ;;  %v559_v56 = vmul.f32 %v23528_v51, %v24253_v20 }
 0x1d8   : > { %23537 = vrsqrt.f32 %v548_v52  ;;  %v542_v57 = vmul.f32 0.03125, %v534_v55 }
 0x1d9   : > { %23539 = vrsqrt.f32 %v549_v53  ;;  %v573_v59 = vmul.f32 %v24322_v54, %v559_v56 }
 0x1da   : > { %v23530_v61 = vpop.eup %23529  ;;  %v550_v62 = vadd.f32 1e-05, %v542_v57 }
 0x1db   : > { %v23532_v63 = vpop.eup %23531  ;;  %v560_v0 = vmul.f32 %v23530_v61, %v24261_v28  ;;  %v587_v2 = vadd.f32 %v24328_v58, %v573_v59 }
 0x1dc   : > { %v561_v3 = vmul.f32 %v23532_v63, %v24255_v21  ;;  %23541 = vrsqrt.f32 %v550_v62 }
 0x1dd   : > { %v607_v20 = vsel %vm461_vm0, %v587_v2, 0  ;;  %v574_v4 = vmul.f32 %v24322_v54, %v560_v0 }
 0x1de   : > { %v23534_v5 = vpop.eup %23533  ;;  %v24336_v7 = vand.u32 4294901760, %v607_v20  ;;  %v575_v8 = vmul.f32 %v24322_v54, %v561_v3 }
 0x1df   : > { %v23536_v9 = vpop.eup %23535  ;;  %v562_v10 = vmul.f32 %v23534_v5, %v24263_v29  ;;  %v588_v11 = vadd.f32 %v24328_v58, %v574_v4 }
 0x1e0   : > { %v563_v28 = vmul.f32 %v23536_v9, %v24271_v38  ;;  %v24343_v12 = vsub.f32 %v607_v20, %v24336_v7  ;;  %v589_v21 = vadd.f32 %v24328_v58, %v575_v8 }
 0x1e1   : > { %v610_v13 = vsel %vm461_vm0, %v588_v11, 0  ;;  %v576_v14 = vmul.f32 %v24322_v54, %v562_v10 }
 0x1e2   : > { %v23538_v17 = vpop.eup %23537  ;;  %v701_v18 = vand.u32 4294901760, %v24343_v12  ;;  %v24349_v19 = vand.u32 4294901760, %v610_v13  ;;  %v613_v29 = vsel %vm461_vm0, %v589_v21, 0  ;;  %v577_v22 = vmul.f32 %v24322_v54, %v563_v28 }
 0x1e3   : > { %v23540_v26 = vpop.eup %23539  ;;  %v564_v38 = vmul.f32 %v23538_v17, %v24273_v39  ;;  %v24354_v27 = vand.u32 4294901760, %v613_v29  ;;  %v590_v30 = vadd.f32 %v24328_v58, %v576_v14 }
 0x1e4   : > { %v565_v31 = vmul.f32 %v23540_v26, %v24281_v48  ;;  %20578 = vmatprep.mubr.f32.mxu0 %v701_v18  ;;  %v702_v32 = vsub.f32 %v24343_v12, %v701_v18  ;;  %v24360_v33 = vsub.f32 %v610_v13, %v24349_v19  ;;  %v591_v34 = vadd.f32 %v24328_v58, %v577_v22 }
 0x1e5   : > { %v24364_v35 = vsub.f32 %v613_v29, %v24354_v27  ;;  %v616_v36 = vsel %vm461_vm0, %v590_v30, 0  ;;  %v578_v39 = vmul.f32 %v24322_v54, %v564_v38 }
 0x1e6   : > { %v23542_v37 = vpop.eup %23541  ;;  %v703_v40 = vand.u32 4294901760, %v702_v32  ;;  %v711_v41 = vand.u32 4294901760, %v24360_v33  ;;  %v24369_v48 = vand.u32 4294901760, %v616_v36  ;;  %v619_v42 = vsel %vm461_vm0, %v591_v34, 0 }
 0x1e7   : > { %v566_v43 = vmul.f32 %v23542_v37, %v24283_v49  ;;  %v721_v44 = vand.u32 4294901760, %v24364_v35  ;;  %v24374_v45 = vand.u32 4294901760, %v619_v42  ;;  %v592_v46 = vadd.f32 %v24328_v58, %v578_v39 }
 0x1e8   : > { %20518 = vmatprep.mubr.f32.mxu1 %v703_v40  ;;  %20579 = vmatmul.mubr.f32.vlgmr.msra.gmra.mrb[0].mxu0 %v711_v41  ;;  %v712_v47 = vsub.f32 %v24360_v33, %v711_v41  ;;  %v24379_v50 = vsub.f32 %v616_v36, %v24369_v48  ;;  %v579_v51 = vmul.f32 %v24322_v54, %v565_v31 }
 0x1e9   : > { %20581 = vmatprep.mubr.f32.mxu0 %v721_v44  ;;  %v722_v52 = vsub.f32 %v24364_v35, %v721_v44  ;;  %v24384_v49 = vsub.f32 %v619_v42, %v24374_v45  ;;  %v622_v53 = vsel %vm461_vm0, %v592_v46, 0  ;;  %22129 = vmatpush3.bf16.msra.mxu0 %v24305_v6  ;;  %v580_v55 = vmul.f32 %v24322_v54, %v566_v43 }
 0x1ea   : > { %v713_v56 = vand.u32 4294901760, %v712_v47  ;;  %v731_v57 = vand.u32 4294901760, %v24379_v50  ;;  %v24390_v59 = vand.u32 4294901760, %v622_v53  ;;  %v593_v61 = vadd.f32 %v24328_v58, %v579_v51  ;;  %22131 = vmatprep.subr.bf16.mxu0 %v24310_v16 }
 0x1eb   : > { %v723_v62 = vand.u32 4294901760, %v722_v52  ;;  %v741_v63 = vand.u32 4294901760, %v24384_v49  ;;  %v594_v0 = vadd.f32 %v24328_v58, %v580_v55 }
 0x1ec   : > { %20519 = vmatmul.mubr.f32.vlgmr.msra.gmra.mrb[0].mxu1 %v713_v56  ;;  %20582 = vmatmul.mubr.f32.gmra.mrb[2].mxu0 %v731_v57  ;;  %v732_v6 = vsub.f32 %v24379_v50, %v731_v57  ;;  %v24398_v54 = vsub.f32 %v622_v53, %v24390_v59  ;;  %v625_v2 = vsel %vm461_vm0, %v593_v61, 0 }
 0x1ed   : > { %20521 = vmatprep.mubr.f32.mxu1 %v723_v62  ;;  %20584 = vmatprep.mubr.f32.mxu0 %v741_v63  ;;  %v742_v3 = vsub.f32 %v24384_v49, %v741_v63  ;;  %v759_v20 = vand.u32 4294901760, %v625_v2  ;;  %v628_v4 = vsel %vm461_vm0, %v594_v0, 0 }
 0x1ee   : > { %v733_v5 = vand.u32 4294901760, %v732_v6  ;;  %v751_v8 = vand.u32 4294901760, %v24398_v54  ;;  %22105 = vmatpush3.bf16.msra.mxu1 %v24308_v15  ;;  %v769_v58 = vand.u32 4294901760, %v628_v4  ;;  %22133 = vmatpush3.bf16.msra.mxu0 %v24310_v16 }
 0x1ef   : > { %v743_v9 = vand.u32 4294901760, %v742_v3  ;;  %v760_v10 = vsub.f32 %v625_v2, %v759_v20  ;;  %22107 = vmatprep.subr.bf16.mxu1 %v24313_v23  ;;  %22135 = vmatprep.subr.bf16.mxu0 %v24293_v60 }
 0x1f0   : > { %20522 = vmatmul.mubr.f32.gmra.mrb[2].mxu1 %v733_v5  ;;  %20585 = vmatmul.mubr.f32.gmra.mrb[4].mxu0 %v751_v8  ;;  %v752_v11 = vsub.f32 %v24398_v54, %v751_v8  ;;  %v770_v28 = vsub.f32 %v628_v4, %v769_v58 }
 0x1f1   : > { %20524 = vmatprep.mubr.f32.mxu1 %v743_v9  ;;  %v761_v21 = vand.u32 4294901760, %v760_v10 }
 0x1f2   : > { %v753_v13 = vand.u32 4294901760, %v752_v11  ;;  %v771_v14 = vand.u32 4294901760, %v770_v28  ;;  %22109 = vmatpush3.bf16.msra.mxu1 %v24313_v23  ;;  %v19556_v23 = vld [vmem:[%s26741_s4] ss:$0 sm:$0xff] }
 0x1f3   : > { %20587 = vmatprep.mubr.f32.mxu0 %v761_v21  ;;  %v762_v15 = vsub.f32 %v760_v10, %v761_v21  ;;  %22111 = vmatprep.subr.bf16.mxu1 %v24315_v24 }
 0x1f4   : > { %20525 = vmatmul.mubr.f32.gmra.mrb[4].mxu1 %v753_v13  ;;  %20588 = vmatmul.mubr.f32.gmra.mrb[6].mxu0 %v771_v14  ;;  %v772_v16 = vsub.f32 %v770_v28, %v771_v14 }
 0x1f5   : > { %v763_v17 = vand.u32 4294901760, %v762_v15  ;;  %20598 = vmatprep.mubr.f32.mxu0 %v24336_v7 }
 0x1f6   : > { %v773_v18 = vand.u32 4294901760, %v772_v16 }
 0x1f7   : > { %20527 = vmatprep.mubr.f32.mxu1 %v763_v17 }
 0x1f8   : > { %20528 = vmatmul.mubr.f32.gmra.mrb[6].mxu1 %v773_v18  ;;  %20599 = vmatmul.mubr.f32.vlgmr.msra.gmra.mrb[0].mxu0 %v24349_v19 }
 0x1f9   : > { %20538 = vmatprep.mubr.f32.mxu1 %v24336_v7  ;;  %20601 = vmatprep.mubr.f32.mxu0 %v24354_v27 }
 0x1fa   : > { %22137 = vmatpush3.bf16.msra.mxu0 %v24293_v60 }
 0x1fb   : > { %22139 = vmatprep.subr.bf16.mxu0 %v24299_v1 }
 0x1fc   : > { %20539 = vmatmul.mubr.f32.vlgmr.msra.gmra.mrb[0].mxu1 %v24349_v19  ;;  %20602 = vmatmul.mubr.f32.gmra.mrb[2].mxu0 %v24369_v48 }
 0x1fd   : > { %20541 = vmatprep.mubr.f32.mxu1 %v24354_v27  ;;  %20604 = vmatprep.mubr.f32.mxu0 %v24374_v45 }
 0x1fe   : > { %22113 = vmatpush3.bf16.msra.mxu1 %v24315_v24  ;;  %22141 = vmatpush3.bf16.msra.mxu0 %v24299_v1 }
 0x1ff   : > { %22115 = vmatprep.subr.bf16.mxu1 %v24317_v25 }
 0x200   : > { %20542 = vmatmul.mubr.f32.gmra.mrb[2].mxu1 %v24369_v48  ;;  %20605 = vmatmul.mubr.f32.gmra.mrb[4].mxu0 %v24390_v59 }
 0x201   : > { %20544 = vmatprep.mubr.f32.mxu1 %v24374_v45  ;;  %20607 = vmatprep.mubr.f32.mxu0 %v759_v20 }
 0x202   : > { %22117 = vmatpush3.bf16.msra.mxu1 %v24317_v25 }
 0x204   : > { %20545 = vmatmul.mubr.f32.gmra.mrb[4].mxu1 %v24390_v59  ;;  %20608 = vmatmul.mubr.f32.gmra.mrb[6].mxu0 %v769_v58 }
 0x205   : > { %20547 = vmatprep.mubr.f32.mxu1 %v759_v20  ;;  %20618 = vmatprep.mubr.f32.mxu0 %v24336_v7 }
 0x208   : > { %20548 = vmatmul.mubr.f32.gmra.mrb[6].mxu1 %v769_v58  ;;  %20619 = vmatmul.mubr.f32.vlgmr.msra.gmra.mrb[0].mxu0 %v24349_v19 }
 0x209   : > { %20558 = vmatprep.mubr.f32.mxu1 %v24343_v12  ;;  %20621 = vmatprep.mubr.f32.mxu0 %v24354_v27 }
 0x20c   : > { %20559 = vmatmul.mubr.f32.vlgmr.msra.gmra.mrb[0].mxu1 %v24360_v33  ;;  %20622 = vmatmul.mubr.f32.gmra.mrb[2].mxu0 %v24369_v48 }
 0x20d   : > { %20561 = vmatprep.mubr.f32.mxu1 %v24364_v35  ;;  %20624 = vmatprep.mubr.f32.mxu0 %v24374_v45 }
 0x210   : > { %20562 = vmatmul.mubr.f32.gmra.mrb[2].mxu1 %v24379_v50  ;;  %20625 = vmatmul.mubr.f32.gmra.mrb[4].mxu0 %v24390_v59 }
 0x211   : > { %20564 = vmatprep.mubr.f32.mxu1 %v24384_v49  ;;  %20627 = vmatprep.mubr.f32.mxu0 %v759_v20 }
 0x214   : > { %20565 = vmatmul.mubr.f32.gmra.mrb[4].mxu1 %v24398_v54  ;;  %20628 = vmatmul.mubr.f32.gmra.mrb[6].mxu0 %v769_v58 }
 0x215   : > { %20567 = vmatprep.mubr.f32.mxu1 %v760_v10 }
 0x218   : > { %20568 = vmatmul.mubr.f32.gmra.mrb[6].mxu1 %v770_v28 }
 0x2db   : > { %v20620_v60 = vpop.f32.mrb[0].mxu0 }
 0x2dc   : > { %v1370_v1 = vpop.f32.mrb[1].mxu0 }
 0x2df   : > { %v20560_v24 = vpop.f32.mrb[0].mxu1  ;;  %v20623_v25 = vpop.f32.mrb[2].mxu0 }
 0x2e0   : > { %v22958_v7 = vadd.f32 %v20560_v24, %v19556_v23  ;;  %v988_v12 = vpop.f32.mrb[1].mxu1  ;;  %v1382_v19 = vpop.f32.mrb[3].mxu0 }
 0x2e1   : > { %v22960_v29 = vadd.f32 %v19556_v23, %v988_v12 }
 0x2e2   : > { %v24444_v22 = vadd.f32 %v22958_v7, %v20620_v60 }
 0x2e3   : > { %v24446_v26 = vadd.f32 %v22960_v29, %v1370_v1  ;;  %v20563_v38 = vpop.f32.mrb[2].mxu1  ;;  %v20626_v27 = vpop.f32.mrb[4].mxu0 }
 0x2e4   : > { %v22962_v30 = vadd.f32 %v20563_v38, %v19556_v23  ;;  %v1394_v31 = vpop.f32.mrb[5].mxu0  ;;  %1438 = vrot.lane.b32.xlu1 %v24444_v22, %s23924_s24  ;;  %v1002_v32 = vpop.f32.mrb[3].mxu1  ;;  %v24505_v3 = vmul.f32 0.35355338, %v24444_v22 }
 0x2e5   : > { %v22964_v33 = vadd.f32 %v19556_v23, %v1002_v32  ;;  %1436 = vrot.lane.b32.xlu0 %v24446_v26, %s23924_s24  ;;  %v24453_v34 = vmul.f32 0.35355338, %v24446_v26 }
 0x2e6   : > { %v24455_v35 = vadd.f32 %v22962_v30, %v20623_v25  ;;  %v1445_v20 = vsel %vm1440_vm1, %v24505_v3, 0 }
 0x2e7   : > { %v24457_v36 = vadd.f32 %v22964_v33, %v1382_v19  ;;  %v20566_v39 = vpop.f32.mrb[4].mxu1  ;;  %v20629_v37 = vpop.f32.mrb[6].mxu0  ;;  %v1442_v40 = vsel %vm1440_vm1, %v24453_v34, 0  ;;  %v24509_v4 = vand.u32 4294901760, %v1445_v20 }
 0x2e8   : > { %v22966_v41 = vadd.f32 %v20566_v39, %v19556_v23  ;;  %v1016_v48 = vpop.f32.mrb[5].mxu1  ;;  %v1406_v42 = vpop.f32.mrb[7].mxu0  ;;  %v24461_v43 = vand.u32 4294901760, %v1442_v40 }
 0x2e9   : > { %v22968_v44 = vadd.f32 %v19556_v23, %v1016_v48  ;;  %1955 = vrot.lane.b32.xlu1 %v24457_v36, %s23924_s24  ;;  %v24513_v9 = vsub.f32 %v1445_v20, %v24509_v4 }
 0x2ea   : > { %v24465_v45 = vadd.f32 %v22966_v41, %v20626_v27  ;;  %v24468_v46 = vsub.f32 %v1442_v40, %v24461_v43 }
 0x2eb   : > { %v24470_v47 = vadd.f32 %v22968_v44, %v1394_v31  ;;  %v20569_v50 = vpop.f32.mrb[6].mxu1  ;;  %v1530_v17 = vand.u32 4294901760, %v24513_v9 }
 0x2ec   : > { %v22970_v51 = vadd.f32 %v20569_v50, %v19556_v23  ;;  %v1030_v52 = vpop.f32.mrb[7].mxu1  ;;  %v1520_v49 = vand.u32 4294901760, %v24468_v46  ;;  %v24517_v28 = vmul.f32 0.35355338, %v24465_v45 }
 0x2ed   : > { %v22972_v53 = vadd.f32 %v19556_v23, %v1030_v52  ;;  %1957 = vrot.lane.b32.xlu1 %v24455_v35, %s23924_s24  ;;  %2473 = vrot.lane.b32.xlu0 %v24470_v47, %s23924_s24  ;;  %v24478_v55 = vmul.f32 0.35355338, %v24470_v47  ;;  %v1531_v7 = vsub.f32 %v24513_v9, %v1530_v17 }
 0x2ee   : > { %v24480_v56 = vadd.f32 %v22970_v51, %v20629_v37  ;;  %v1521_v57 = vsub.f32 %v24468_v46, %v1520_v49  ;;  %v2481_v60 = vsel %vm1440_vm1, %v24517_v28, 0 }
 0x2ef   : > { %v24485_v59 = vadd.f32 %v22972_v53, %v1406_v42  ;;  %v2478_v61 = vsel %vm1440_vm1, %v24478_v55, 0  ;;  %v24529_v19 = vand.u32 4294901760, %v2481_v60  ;;  %v1532_v33 = vand.u32 4294901760, %v1531_v7 }
 0x2f0   : > { %v1522_v62 = vand.u32 4294901760, %v1521_v57  ;;  %v24489_v63 = vand.u32 4294901760, %v2478_v61 }
 0x2f1   : > { %2475 = vrot.lane.b32.xlu1 %v24465_v45, %s23924_s24  ;;  %2991 = vrot.lane.b32.xlu0 %v24485_v59, %s23924_s24  ;;  %v24535_v37 = vsub.f32 %v2481_v60, %v24529_v19 }
 0x2f2   : > { %20634 = vmatprep.mubr.f32.mxu1 %v1522_v62  ;;  %v24496_v0 = vsub.f32 %v2478_v61, %v24489_v63 }
 0x2f3   : > { %v2566_v51 = vand.u32 4294901760, %v24535_v37 }
 0x2f4   : > { %v2556_v6 = vand.u32 4294901760, %v24496_v0 }
 0x2f5   : > { %2993 = vrot.lane.b32.xlu1 %v24480_v56, %s23924_s24  ;;  %v2567_v57 = vsub.f32 %v24535_v37, %v2566_v51  ;;  %s23935_s24 = smov 8  }
 0x2f6   : > { %v2557_v54 = vsub.f32 %v24496_v0, %v2556_v6 }
 0x2f8   : > { %v2558_v2 = vand.u32 4294901760, %v2557_v54 }
 0x2fa   : > { %20718 = vmatprep.mubr.f32.mxu0 %v2558_v2  ;;  %v2568_v2 = vand.u32 4294901760, %v2567_v57 }
 0x356   : > { %v1439_v5 = vpop.permute.xlu1 %1438 }
 0x357   : > { %v1449_v8 = vsel %vm1440_vm1, %v1439_v5, 0  ;;  %v1437_v58 = vpop.permute.xlu0 %1436 }
 0x358   : > { %v1455_v10 = vand.u32 4294901760, %v1449_v8  ;;  %v1447_v11 = vsel %vm1440_vm1, %v1437_v58, 0  ;;  %v24556_v58 = vmul.f32 0.35355338, %v24457_v36 }
 0x359   : > { %v1452_v21 = vand.u32 4294901760, %v1447_v11 }
 0x35a   : > { %v1547_v13 = vsub.f32 %v1449_v8, %v1455_v10 }
 0x35b   : > { %v24519_v14 = vpack.c.bf16 %v1455_v10, %v1452_v21  ;;  %v1540_v15 = vsub.f32 %v1447_v11, %v1452_v21  ;;  %v1956_v16 = vpop.permute.xlu1 %1955 }
 0x35c   : > { %v1548_v18 = vand.u32 4294901760, %v1547_v13  ;;  %v1965_v11 = vsel %vm1440_vm1, %v1956_v16, 0 }
 0x35d   : > { %v1541_v1 = vand.u32 4294901760, %v1540_v15  ;;  %22143 = vmatprep.subr.bf16.mxu1 %v24519_v14  ;;  %v22150_v42 = vpack.c.bf16 %v1547_v13, %v1540_v15 }
 0x35e   : > { %22145 = vmatpush3.bf16.xpose.msra.mxu1 %v24519_v14  ;;  %v1549_v23 = vsub.f32 %v1547_v13, %v1548_v18  ;;  %v1960_v13 = vsel %vm1440_vm1, %v24556_v58, 0 }
 0x35f   : > { %v1958_v24 = vpop.permute.xlu1 %1957  ;;  %v2474_v25 = vpop.permute.xlu0 %2473  ;;  %v1542_v12 = vsub.f32 %v1540_v15, %v1541_v1  ;;  %v22158_v8 = vpack.c.bf16 %v1548_v18, %v1541_v1  ;;  %v1970_v15 = vand.u32 4294901760, %v1965_v11  ;;  %v24568_v18 = vand.u32 4294901760, %v1960_v13 }
 0x360   : > { %v2483_v29 = vsel %vm1440_vm1, %v2474_v25, 0  ;;  %v1550_v38 = vand.u32 4294901760, %v1549_v23  ;;  %v1967_v10 = vsel %vm1440_vm1, %v1958_v24, 0 }
 0x361   : > { %v2488_v27 = vand.u32 4294901760, %v2483_v29  ;;  %v1543_v30 = vand.u32 4294901760, %v1542_v12  ;;  %v1973_v21 = vand.u32 4294901760, %v1967_v10  ;;  %v2058_v16 = vsub.f32 %v1965_v11, %v1970_v15 }
 0x362   : > { %v2037_v60 = vsub.f32 %v1960_v13, %v24568_v18 }
 0x363   : > { %v24532_v31 = vsub.f32 %v2483_v29, %v2488_v27  ;;  %v2476_v32 = vpop.permute.xlu1 %2475  ;;  %v22146_v39 = vpack.c.bf16 %v1550_v38, %v1543_v30  ;;  %v24586_v7 = vpack.c.bf16 %v1973_v21, %v1970_v15 }
 0x364   : > { %v2485_v40 = vsel %vm1440_vm1, %v2476_v32, 0  ;;  %v2038_v25 = vand.u32 4294901760, %v2037_v60 }
 0x365   : > { %v2577_v41 = vand.u32 4294901760, %v24532_v31  ;;  %v2491_v48 = vand.u32 4294901760, %v2485_v40  ;;  %20635 = vmatmul.mubr.f32.vlgmr.msra.gmra.mrb[8].mxu1 %v1532_v33  ;;  %22147 = vmatprep.subr.bf16.mxu1 %v22146_v39 }
 0x366   : > { %22149 = vmatpush3.bf16.xpose.msra.mxu1 %v22146_v39  ;;  %20641 = vmatprep.mubr.f32.mxu1 %v24461_v43  ;;  %v2992_v39 = vpop.permute.xlu0 %2991 }
 0x367   : > { %v24540_v44 = vpack.c.bf16 %v2491_v48, %v2488_v27  ;;  %v2583_v50 = vsub.f32 %v2485_v40, %v2491_v48  ;;  %22151 = vmatprep.subr.bf16.mxu1 %v22150_v42  ;;  %v2578_v53 = vsub.f32 %v24532_v31, %v2577_v41 }
 0x369   : > { %v2584_v52 = vand.u32 4294901760, %v2583_v50  ;;  %22191 = vmatprep.subr.bf16.mxu0 %v24540_v44  ;;  %v2579_v62 = vand.u32 4294901760, %v2578_v53  ;;  %v22198_v5 = vpack.c.bf16 %v2583_v50, %v24532_v31 }
 0x36a   : > { %22193 = vmatpush3.bf16.xpose.msra.mxu0 %v24540_v44 }
 0x36b   : > { %v2585_v61 = vsub.f32 %v2583_v50, %v2584_v52  ;;  %v22206_v24 = vpack.c.bf16 %v2584_v52, %v2577_v41  ;;  %v24615_v50 = vmul.f32 0.35355338, %v24480_v56 }
 0x36d   : > { %20642 = vmatmul.mubr.f32.vlgmr.msra.gmra.mrb[8].mxu1 %v24509_v4  ;;  %v2586_v54 = vand.u32 4294901760, %v2585_v61  ;;  %v2999_v57 = vsel %vm1440_vm1, %v24615_v50, 0 }
 0x36e   : > { %22153 = vmatpush3.bf16.xpose.msra.mxu1 %v22150_v42  ;;  %20648 = vmatprep.mubr.f32.mxu1 %v24468_v46  ;;  %v24571_v46 = vmul.f32 0.35355338, %v24455_v35 }
 0x36f   : > { %22155 = vmatprep.subr.bf16.mxu1 %v24519_v14  ;;  %v22194_v20 = vpack.c.bf16 %v2586_v54, %v2579_v62  ;;  %v3082_v54 = vand.u32 4294901760, %v2999_v57 }
 0x370   : > { %v1963_v1 = vsel %vm1440_vm1, %v24571_v46, 0 }
 0x371   : > { %20719 = vmatmul.mubr.f32.vlgmr.msra.gmra.mrb[8].mxu0 %v2568_v2  ;;  %22195 = vmatprep.subr.bf16.mxu0 %v22194_v20 }
 0x372   : > { %22197 = vmatpush3.bf16.xpose.msra.mxu0 %v22194_v20  ;;  %20725 = vmatprep.mubr.f32.mxu0 %v24489_v63 }
 0x373   : > { %22199 = vmatprep.subr.bf16.mxu0 %v22198_v5 }
 0x375   : > { %20649 = vmatmul.mubr.f32.vlgmr.msra.gmra.mrb[8].mxu1 %v24513_v9  ;;  %v2059_v9 = vand.u32 4294901760, %v2058_v16 }
 0x376   : > { %22157 = vmatpush3.bf16.xpose.msra.mxu1 %v24519_v14  ;;  %20655 = vmatprep.mubr.f32.mxu1 %v1520_v49  ;;  %v2065_v49 = vsub.f32 %v1967_v10, %v1973_v21  ;;  %v3083_v10 = vsub.f32 %v2999_v57, %v3082_v54 }
 0x377   : > { %22159 = vmatprep.subr.bf16.mxu1 %v22158_v8  ;;  %v2060_v29 = vsub.f32 %v2058_v16, %v2059_v9 }
 0x378   : > { %v2066_v23 = vand.u32 4294901760, %v2065_v49  ;;  %v22174_v33 = vpack.c.bf16 %v2065_v49, %v2058_v16  ;;  %v3084_v15 = vand.u32 4294901760, %v3083_v10 }
 0x379   : > { %20726 = vmatmul.mubr.f32.vlgmr.msra.gmra.mrb[8].mxu0 %v24529_v19  ;;  %v2061_v27 = vand.u32 4294901760, %v2060_v29  ;;  %v1424_v29 = vld [vmem:[#allocation10] sm:$0xff] }
 0x37a   : > { %22201 = vmatpush3.bf16.xpose.msra.mxu0 %v22198_v5  ;;  %20732 = vmatprep.mubr.f32.mxu0 %v24496_v0  ;;  %v2067_v12 = vsub.f32 %v2065_v49, %v2066_v23 }
 0x37b   : > { %22203 = vmatprep.subr.bf16.mxu0 %v24540_v44 }
 0x37c   : > { %v2068_v38 = vand.u32 4294901760, %v2067_v12 }
 0x37d   : > { %20656 = vmatmul.mubr.f32.vlgmr.msra.gmra.mrb[8].mxu1 %v1530_v17  ;;  %v24584_v17 = vand.u32 4294901760, %v1963_v1 }
 0x37e   : > { %22161 = vmatpush3.bf16.xpose.msra.mxu1 %v22158_v8  ;;  %20662 = vmatprep.mubr.f32.mxu1 %v24461_v43 }
 0x37f   : > { %22163 = vmatprep.subr.bf16.mxu1 %v24519_v14  ;;  %v2047_v0 = vsub.f32 %v1963_v1, %v24584_v17 }
 0x381   : > { %20733 = vmatmul.mubr.f32.vlgmr.msra.gmra.mrb[8].mxu0 %v24535_v37  ;;  %v2048_v30 = vand.u32 4294901760, %v2047_v0  ;;  %v22182_v37 = vpack.c.bf16 %v2066_v23, %v2059_v9  ;;  %v1432_v9 = vld [vmem:[#allocation8] sm:$0xff] }
 0x382   : > { %22205 = vmatpush3.bf16.xpose.msra.mxu0 %v24540_v44  ;;  %20739 = vmatprep.mubr.f32.mxu0 %v2556_v6  ;;  %v2039_v6 = vsub.f32 %v2037_v60, %v2038_v25 }
 0x383   : > { %22207 = vmatprep.subr.bf16.mxu0 %v22206_v24  ;;  %v2049_v31 = vsub.f32 %v2047_v0, %v2048_v30 }
 0x385   : > { %20663 = vmatmul.mubr.f32.vlgmr.msra.gmra.mrb[8].mxu1 %v24509_v4  ;;  %v2050_v32 = vand.u32 4294901760, %v2049_v31 }
 0x386   : > { %22165 = vmatpush3.bf16.xpose.msra.mxu1 %v24519_v14  ;;  %20669 = vmatprep.mubr.f32.mxu1 %v24461_v43  ;;  %v2040_v14 = vand.u32 4294901760, %v2039_v6  ;;  %v22170_v43 = vpack.c.bf16 %v2068_v38, %v2061_v27 }
 0x387   : > { %22167 = vmatprep.subr.bf16.mxu1 %v24586_v7 }
 0x389   : > { %20740 = vmatmul.mubr.f32.vlgmr.msra.gmra.mrb[8].mxu0 %v2566_v51 }
 0x38a   : > { %22209 = vmatpush3.bf16.xpose.msra.mxu0 %v22206_v24  ;;  %20746 = vmatprep.mubr.f32.mxu0 %v24489_v63  ;;  %v1433_v24 = vld [vmem:[#allocation8 + $0x8] sm:$0xff] }
 0x38b   : > { %22211 = vmatprep.subr.bf16.mxu0 %v24540_v44 }
 0x38d   : > { %20670 = vmatmul.mubr.f32.vlgmr.msra.gmra.mrb[8].mxu1 %v24509_v4  ;;  %v2994_v4 = vpop.permute.xlu1 %2993 }
 0x38e   : > { %22169 = vmatpush3.bf16.xpose.msra.mxu1 %v24586_v7  ;;  %20676 = vmatprep.mubr.f32.mxu1 %v2040_v14  ;;  %v3003_v40 = vsel %vm1440_vm1, %v2994_v4, 0 }
 0x38f   : > { %22171 = vmatprep.subr.bf16.mxu1 %v22170_v43  ;;  %v3009_v41 = vand.u32 4294901760, %v3003_v40 }
 0x391   : > { %20747 = vmatmul.mubr.f32.vlgmr.msra.gmra.mrb[8].mxu0 %v24529_v19  ;;  %v3101_v51 = vsub.f32 %v3003_v40, %v3009_v41  ;;  %v1426_v40 = vld [vmem:[#allocation10 + $0x10] sm:$0xff] }
 0x392   : > { %22213 = vmatpush3.bf16.xpose.msra.mxu0 %v24540_v44  ;;  %20753 = vmatprep.mubr.f32.mxu0 %v24489_v63  ;;  %v24607_v63 = vmul.f32 0.35355338, %v24485_v59 }
 0x393   : > { %v3102_v61 = vand.u32 4294901760, %v3101_v51 }
 0x394   : > { %v2996_v48 = vsel %vm1440_vm1, %v24607_v63, 0 }
 0x395   : > { %20677 = vmatmul.mubr.f32.vlgmr.msra.gmra.mrb[10].mxu1 %v2050_v32  ;;  %v3072_v44 = vand.u32 4294901760, %v2996_v48  ;;  %v3103_v5 = vsub.f32 %v3101_v51, %v3102_v61 }
 0x396   : > { %22173 = vmatpush3.bf16.xpose.msra.mxu1 %v22170_v43  ;;  %20683 = vmatprep.mubr.f32.mxu1 %v24568_v18  ;;  %v1429_v43 = vld [vmem:[#allocation10 + $0x28] sm:$0xff] }
 0x397   : > { %22175 = vmatprep.subr.bf16.mxu1 %v22174_v33  ;;  %v3073_v53 = vsub.f32 %v2996_v48, %v3072_v44  ;;  %v3104_v21 = vand.u32 4294901760, %v3103_v5  ;;  %v1427_v48 = vld [vmem:[#allocation10 + $0x18] sm:$0xff] }
 0x399   : > { %20754 = vmatmul.mubr.f32.vlgmr.msra.gmra.mrb[8].mxu0 %v24529_v19  ;;  %v3001_v19 = vsel %vm1440_vm1, %v2992_v39, 0  ;;  %v3074_v2 = vand.u32 4294901760, %v3073_v53 }
 0x39a   : > { %v3006_v42 = vand.u32 4294901760, %v3001_v19 }
 0x39b   : > { %v3075_v11 = vsub.f32 %v3073_v53, %v3074_v2 }
 0x39c   : > { %v3094_v52 = vsub.f32 %v3001_v19, %v3006_v42  ;;  %v22214_v20 = vpack.c.bf16 %v3009_v41, %v3006_v42 }
 0x39d   : > { %20684 = vmatmul.mubr.f32.vlgmr.msra.gmra.mrb[10].mxu1 %v24584_v17  ;;  %v3076_v49 = vand.u32 4294901760, %v3075_v11 }
 0x39e   : > { %22177 = vmatpush3.bf16.xpose.msra.mxu1 %v22174_v33  ;;  %20690 = vmatprep.mubr.f32.mxu1 %v2037_v60  ;;  %v3095_v62 = vand.u32 4294901760, %v3094_v52  ;;  %v3085_v60 = vsub.f32 %v3083_v10, %v3084_v15  ;;  %v22222_v23 = vpack.c.bf16 %v3101_v51, %v3094_v52 }
 0x39f   : > { %22179 = vmatprep.subr.bf16.mxu1 %v24586_v7 }
 0x3a0   : > { %v3096_v8 = vsub.f32 %v3094_v52, %v3095_v62  ;;  %v3086_v1 = vand.u32 4294901760, %v3085_v60 }
 0x3a2   : > { %v3097_v13 = vand.u32 4294901760, %v3096_v8  ;;  %v1430_v8 = vld [vmem:[#allocation10 + $0x30] sm:$0xff] }
 0x3a4   : > { %v22218_v16 = vpack.c.bf16 %v3104_v21, %v3097_v13 }
 0x3a5   : > { %20691 = vmatmul.mubr.f32.vlgmr.msra.gmra.mrb[10].mxu1 %v2047_v0 }
 0x3a6   : > { %22181 = vmatpush3.bf16.xpose.msra.mxu1 %v24586_v7  ;;  %20697 = vmatprep.mubr.f32.mxu1 %v2038_v25  ;;  %v1425_v25 = vld [vmem:[#allocation10 + $0x8] sm:$0xff] }
 0x3a7   : > { %22183 = vmatprep.subr.bf16.mxu1 %v22182_v37 }
 0x3ad   : > { %20698 = vmatmul.mubr.f32.vlgmr.msra.gmra.mrb[10].mxu1 %v2048_v30 }
 0x3ae   : > { %22185 = vmatpush3.bf16.xpose.msra.mxu1 %v22182_v37  ;;  %20704 = vmatprep.mubr.f32.mxu1 %v24568_v18 }
 0x3af   : > { %22187 = vmatprep.subr.bf16.mxu1 %v24586_v7 }
 0x3b5   : > { %20705 = vmatmul.mubr.f32.vlgmr.msra.gmra.mrb[10].mxu1 %v24584_v17 }
 0x3b6   : > { %22189 = vmatpush3.bf16.xpose.msra.mxu1 %v24586_v7  ;;  %20711 = vmatprep.mubr.f32.mxu1 %v24568_v18  ;;  %v22230_v18 = vpack.c.bf16 %v3102_v61, %v3095_v62 }
 0x3b7   : > { %22215 = vmatprep.subr.bf16.mxu1 %v22214_v20 }
 0x3bd   : > { %20712 = vmatmul.mubr.f32.vlgmr.msra.gmra.mrb[10].mxu1 %v24584_v17 }
 0x3be   : > { %22217 = vmatpush3.bf16.xpose.msra.mxu1 %v22214_v20  ;;  %20760 = vmatprep.mubr.f32.mxu1 %v3076_v49 }
 0x3bf   : > { %22219 = vmatprep.subr.bf16.mxu1 %v22218_v16 }
 0x3c5   : > { %20761 = vmatmul.mubr.f32.vlgmr.msra.gmra.mrb[12].mxu1 %v3086_v1 }
 0x3c6   : > { %22221 = vmatpush3.bf16.xpose.msra.mxu1 %v22218_v16  ;;  %20767 = vmatprep.mubr.f32.mxu1 %v3072_v44 }
 0x3c7   : > { %22223 = vmatprep.subr.bf16.mxu1 %v22222_v23 }
 0x3cd   : > { %20768 = vmatmul.mubr.f32.vlgmr.msra.gmra.mrb[12].mxu1 %v3082_v54 }
 0x3ce   : > { %22225 = vmatpush3.bf16.xpose.msra.mxu1 %v22222_v23  ;;  %20774 = vmatprep.mubr.f32.mxu1 %v3073_v53  ;;  %v1428_v53 = vld [vmem:[#allocation10 + $0x20] sm:$0xff] }
 0x3cf   : > { %22227 = vmatprep.subr.bf16.mxu1 %v22214_v20 }
 0x3d5   : > { %20775 = vmatmul.mubr.f32.vlgmr.msra.gmra.mrb[12].mxu1 %v3083_v10 }
 0x3d6   : > { %22229 = vmatpush3.bf16.xpose.msra.mxu1 %v22214_v20  ;;  %20781 = vmatprep.mubr.f32.mxu1 %v3074_v2  ;;  %v1431_v2 = vld [vmem:[#allocation10 + $0x38] sm:$0xff] }
 0x3d7   : > { %22231 = vmatprep.subr.bf16.mxu1 %v22230_v18 }
 0x3dd   : > { %20782 = vmatmul.mubr.f32.vlgmr.msra.gmra.mrb[12].mxu1 %v3084_v15 }
 0x3de   : > { %22233 = vmatpush3.bf16.xpose.msra.mxu1 %v22230_v18  ;;  %20788 = vmatprep.mubr.f32.mxu1 %v3072_v44 }
 0x3df   : > { %22235 = vmatprep.subr.bf16.mxu1 %v22214_v20 }
 0x3e5   : > { %20789 = vmatmul.mubr.f32.vlgmr.msra.gmra.mrb[12].mxu1 %v3082_v54 }
 0x3e6   : > { %22237 = vmatpush3.bf16.xpose.msra.mxu1 %v22214_v20  ;;  %20795 = vmatprep.mubr.f32.mxu1 %v3072_v44 }
 0x3ed   : > { %20796 = vmatmul.mubr.f32.vlgmr.msra.gmra.mrb[12].mxu1 %v3082_v54 }
 0x460   : > { %v20671_v17 = vpop.f32.mrb[8].mxu1 }
 0x461   : > { %v22974_v7 = vadd.f32 %v20671_v17, %v1433_v24  ;;  %v1943_v12 = vpop.f32.mrb[9].mxu1 }
 0x462   : > { %v22975_v0 = vadd.f32 %v1943_v12, %v1432_v9 }
 0x463   : > { %v3508_v6 = vadd.f32 %v22974_v7, %v1425_v25 }
 0x464   : > { %v3507_v38 = vadd.f32 %v22975_v0, %v1424_v29 }
 0x465   : > { %v3519_v27 = vsel %vm3515_vm2, %v3508_v6, -inf }
 0x466   : > { %3520 = vmax.xlane.f32.xlu1 %v3519_v27  ;;  %v3516_v30 = vsel %vm3515_vm2, %v3507_v38, -inf }
 0x467   : > { %3517 = vmax.xlane.f32.xlu0 %v3516_v30 }
 0x46c   : > { %v20755_v14 = vpop.f32.mrb[8].mxu0 }
 0x46d   : > { %v22978_v31 = vadd.f32 %v20755_v14, %v1433_v24  ;;  %v2979_v32 = vpop.f32.mrb[9].mxu0 }
 0x46e   : > { %v22979_v44 = vadd.f32 %v2979_v32, %v1432_v9 }
 0x46f   : > { %v24627_v33 = vadd.f32 %v22978_v31, %v1429_v43 }
 0x470   : > { %v3511_v61 = vadd.f32 %v22979_v44, %v1428_v53 }
 0x471   : > { %v3531_v4 = vsel %vm3515_vm2, %v24627_v33, -inf }
 0x472   : > { %3532 = vmax.xlane.f32.xlu1 %v3531_v4  ;;  %v3528_v62 = vsel %vm3515_vm2, %v3511_v61, -inf }
 0x490   : > { %v20713_v39 = vpop.f32.mrb[10].mxu1 }
 0x491   : > { %v2461_v37 = vpop.f32.mrb[11].mxu1  ;;  %v22976_v19 = vadd.f32 %v20713_v39, %v1433_v24 }
 0x492   : > { %v22977_v41 = vadd.f32 %v2461_v37, %v1432_v9 }
 0x493   : > { %v3510_v52 = vadd.f32 %v22976_v19, %v1427_v48 }
 0x494   : > { %v3509_v42 = vadd.f32 %v22977_v41, %v1426_v40 }
 0x495   : > { %v3525_v57 = vsel %vm3515_vm2, %v3510_v52, -inf }
 0x496   : > { %v3522_v51 = vsel %vm3515_vm2, %v3509_v42, -inf }
 0x497   : > { %3523 = vmax.xlane.f32.xlu0 %v3522_v51 }
 0x49b   : > { %3526 = vmax.xlane.f32.xlu0 %v3525_v57 }
 0x49f   : > { %3529 = vmax.xlane.f32.xlu0 %v3528_v62 }
 0x4c0   : > { %v20797_v54 = vpop.f32.mrb[12].mxu1 }
 0x4c1   : > { %v22980_v20 = vadd.f32 %v20797_v54, %v1433_v24  ;;  %v3497_v5 = vpop.f32.mrb[13].mxu1 }
 0x4c2   : > { %v22981_v10 = vadd.f32 %v3497_v5, %v1432_v9 }
 0x4c3   : > { %v3514_v11 = vadd.f32 %v22980_v20, %v1431_v2 }
 0x4c4   : > { %v3513_v21 = vadd.f32 %v22981_v10, %v1430_v8 }
 0x4c5   : > { %v3537_v13 = vsel %vm3515_vm2, %v3514_v11, -inf }
 0x4c6   : > { %3538 = vmax.xlane.f32.xlu1 %v3537_v13  ;;  %v3534_v15 = vsel %vm3515_vm2, %v3513_v21, -inf }
 0x4c7   : > { %3535 = vmax.xlane.f32.xlu0 %v3534_v15 }
 0x4f3   : > { %v3521_v49 = vpop.xlane.xlu1 %3520 }
 0x4f4   : > { %v3541_v16 = vsub.f32 %v3508_v6, %v3521_v49  ;;  %v3518_v60 = vpop.xlane.xlu0 %3517 }
 0x4f5   : > { %v3540_v1 = vsub.f32 %v3507_v38, %v3518_v60 }
 0x4f6   : > { %v3550_v23 = vmul.f32 1.442695, %v3541_v16 }
 0x4f7   : > { %v3548_v18 = vmul.f32 1.442695, %v3540_v1 }
 0x4f8   : > { %23543 = vpow2.f32 %v3550_v23 }
 0x4f9   : > { %23545 = vpow2.f32 %v3548_v18 }
 0x4ff   : > { %v3533_v31 = vpop.xlane.xlu1 %3532 }
 0x502   : > { %v24636_v24 = vpop.eup %23543 }
 0x503   : > { %v24638_v17 = vpop.eup %23545  ;;  %v3567_v9 = vsel %vm3515_vm2, %v24636_v24, 0.0 }
 0x504   : > { %3568 = vadd.xlane.f32.xlu1 %v3567_v9  ;;  %v3564_v25 = vsel %vm3515_vm2, %v24638_v17, 0.0 }
 0x505   : > { %3565 = vadd.xlane.f32.xlu0 %v3564_v25 }
 0x524   : > { %v3524_v7 = vpop.xlane.xlu0 %3523 }
 0x525   : > { %v3542_v12 = vsub.f32 %v3509_v42, %v3524_v7  ;;  %v3545_v42 = vsub.f32 %v24627_v33, %v3533_v31 }
 0x527   : > { %v3552_v29 = vmul.f32 1.442695, %v3542_v12  ;;  %v3558_v51 = vmul.f32 1.442695, %v3545_v42 }
 0x528   : > { %v3527_v0 = vpop.xlane.xlu0 %3526 }
 0x529   : > { %23547 = vpow2.f32 %v3552_v29  ;;  %v3543_v6 = vsub.f32 %v3510_v52, %v3527_v0 }
 0x52b   : > { %v3554_v38 = vmul.f32 1.442695, %v3543_v6 }
 0x52c   : > { %v3530_v32 = vpop.xlane.xlu0 %3529 }
 0x52d   : > { %23549 = vpow2.f32 %v3554_v38  ;;  %v3544_v4 = vsub.f32 %v3511_v61, %v3530_v32 }
 0x52f   : > { %v3556_v37 = vmul.f32 1.442695, %v3544_v4 }
 0x531   : > { %23551 = vpow2.f32 %v3556_v37 }
 0x533   : > { %v24644_v27 = vpop.eup %23547 }
 0x534   : > { %v3570_v30 = vsel %vm3515_vm2, %v24644_v27, 0.0 }
 0x535   : > { %3571 = vadd.xlane.f32.xlu0 %v3570_v30 }
 0x537   : > { %v24648_v14 = vpop.eup %23549 }
 0x538   : > { %v3573_v43 = vsel %vm3515_vm2, %v24648_v14, 0.0 }
 0x539   : > { %3574 = vadd.xlane.f32.xlu1 %v3573_v43 }
 0x53b   : > { %v24661_v52 = vpop.eup %23551 }
 0x53c   : > { %v3576_v53 = vsel %vm3515_vm2, %v24661_v52, 0.0 }
 0x54a   : > { %3614 = vrot.lane.b32.xlu1 %v24444_v22, %s23925_s18 }
 0x54b   : > { %3612 = vrot.lane.b32.xlu0 %v24446_v26, %s23925_s18 }
 0x54e   : > { %4126 = vrot.lane.b32.xlu1 %v24457_v36, %s23925_s18 }
 0x552   : > { %4128 = vrot.lane.b32.xlu1 %v24455_v35, %s23925_s18 }
 0x553   : > { %v3539_v39 = vpop.xlane.xlu1 %3538 }
 0x554   : > { %v3547_v40 = vsub.f32 %v3514_v11, %v3539_v39  ;;  %v3536_v19 = vpop.xlane.xlu0 %3535 }
 0x555   : > { %v3546_v48 = vsub.f32 %v3513_v21, %v3536_v19 }
 0x556   : > { %v3562_v41 = vmul.f32 1.442695, %v3547_v40 }
 0x557   : > { %v3560_v44 = vmul.f32 1.442695, %v3546_v48 }
 0x558   : > { %23553 = vpow2.f32 %v3562_v41 }
 0x559   : > { %23555 = vpow2.f32 %v3560_v44 }
 0x55a   : > { %23557 = vpow2.f32 %v3558_v51 }
 0x562   : > { %v24665_v57 = vpop.eup %23553 }
 0x563   : > { %v3585_v61 = vsel %vm3515_vm2, %v24665_v57, 0.0  ;;  %v24669_v62 = vpop.eup %23555 }
 0x564   : > { %v3582_v33 = vsel %vm3515_vm2, %v24669_v62, 0.0  ;;  %v24673_v54 = vpop.eup %23557 }
 0x565   : > { %v3579_v2 = vsel %vm3515_vm2, %v24673_v54, 0.0 }
 0x56a   : > { %3577 = vadd.xlane.f32.xlu0 %v3576_v53 }
 0x56e   : > { %3586 = vadd.xlane.f32.xlu0 %v3585_v61 }
 0x572   : > { %3583 = vadd.xlane.f32.xlu0 %v3582_v33 }
 0x576   : > { %3580 = vadd.xlane.f32.xlu1 %v3579_v2 }
 0x587   : > { %4642 = vrot.lane.b32.xlu1 %v24465_v45, %s23925_s18 }
 0x588   : > { %4640 = vrot.lane.b32.xlu0 %v24470_v47, %s23925_s18 }
 0x58b   : > { %5154 = vrot.lane.b32.xlu1 %v24485_v59, %s23925_s18 }
 0x58c   : > { %5675 = vrot.lane.b32.xlu0 %v24446_v26, %s23926_s25 }
 0x58f   : > { %5156 = vrot.lane.b32.xlu1 %v24480_v56, %s23925_s18  ;;  %s23936_s18 = smov 16  }
 0x590   : > { %5671 = vrot.lane.b32.xlu0 %v24453_v34, %s23927_s13 }
 0x591   : > { %v3569_v20 = vpop.xlane.xlu1 %3568 }
 0x592   : > { %23559 = vrcp.f32 %v3569_v20  ;;  %v3566_v5 = vpop.xlane.xlu0 %3565 }
 0x593   : > { %23561 = vrcp.f32 %v3566_v5  ;;  %5677 = vrot.lane.b32.xlu1 %v24444_v22, %s23926_s25 }
 0x594   : > { %6193 = vrot.lane.b32.xlu0 %v24457_v36, %s23926_s25 }
 0x597   : > { %5673 = vrot.lane.b32.xlu1 %v24505_v3, %s23927_s13 }
 0x598   : > { %6189 = vrot.lane.b32.xlu0 %v24556_v58, %s23927_s13 }
 0x59b   : > { %6195 = vrot.lane.b32.xlu1 %v24455_v35, %s23926_s25 }
 0x59c   : > { %v23560_v8 = vpop.eup %23559  ;;  %6711 = vrot.lane.b32.xlu0 %v24470_v47, %s23926_s25 }
 0x59d   : > { %v23562_v10 = vpop.eup %23561  ;;  %v3591_v11 = vmul.f32 %v23560_v8, %v24636_v24 }
 0x59e   : > { %v3589_v21 = vmul.f32 %v23562_v10, %v24638_v17 }
 0x59f   : > { %3605 = vst.msk [vmem:[%s24704_s28 + $0x8] sm:$0xff] %vm3515_vm2, %v3591_v11  ;;  %6191 = vrot.lane.b32.xlu1 %v24571_v46, %s23927_s13  ;;  %v3622_v23 = vsel %vm3515_vm2, %v3591_v11, 0 }
 0x5a0   : > { %6707 = vrot.lane.b32.xlu0 %v24478_v55, %s23927_s13  ;;  %3604 = vst.msk [vmem:[%s24704_s28] sm:$0xff] %vm3515_vm2, %v3589_v21  ;;  %v3619_v13 = vsel %vm3515_vm2, %v3589_v21, 0  ;;  %v24737_v18 = vand.u32 4294901760, %v3622_v23 }
 0x5a1   : > { %v24715_v15 = vand.u32 4294901760, %v3619_v13 }
 0x5a2   : > { %v24740_v17 = vsub.f32 %v3622_v23, %v24737_v18 }
 0x5a3   : > { %6713 = vrot.lane.b32.xlu1 %v24465_v45, %s23926_s25  ;;  %v24720_v49 = vsub.f32 %v3619_v13, %v24715_v15 }
 0x5a4   : > { %7229 = vrot.lane.b32.xlu0 %v24485_v59, %s23926_s25  ;;  %v3703_v29 = vand.u32 4294901760, %v24740_v17 }
 0x5a5   : > { %v3693_v16 = vand.u32 4294901760, %v24720_v49 }
 0x5a6   : > { %v3704_v32 = vsub.f32 %v24740_v17, %v3703_v29 }
 0x5a7   : > { %6709 = vrot.lane.b32.xlu1 %v24517_v28, %s23927_s13  ;;  %v3694_v60 = vsub.f32 %v24720_v49, %v3693_v16 }
 0x5a8   : > { %7225 = vrot.lane.b32.xlu0 %v24607_v63, %s23927_s13  ;;  %v3705_v44 = vand.u32 4294901760, %v3704_v32 }
 0x5a9   : > { %v3695_v1 = vand.u32 4294901760, %v3694_v60 }
 0x5ab   : > { %7231 = vrot.lane.b32.xlu1 %v24480_v56, %s23926_s25  ;;  %20802 = vmatprep.mubr.f32.mxu0 %v3695_v1  ;;  %s23937_s25 = smov 24  }
 0x5af   : > { %7227 = vrot.lane.b32.xlu1 %v24615_v50, %s23927_s13 }
 0x5c2   : > { %v3572_v24 = vpop.xlane.xlu0 %3571 }
 0x5c3   : > { %23563 = vrcp.f32 %v3572_v24 }
 0x5c6   : > { %v3575_v9 = vpop.xlane.xlu1 %3574  ;;  %v3613_v25 = vpop.permute.xlu0 %3612 }
 0x5c7   : > { %23565 = vrcp.f32 %v3575_v9  ;;  %v3625_v7 = vand.u32 4294901760, %v3613_v25 }
 0x5c9   : > { %v24742_v12 = vsub.f32 %v3613_v25, %v3625_v7 }
 0x5ca   : > { %v3615_v0 = vpop.permute.xlu1 %3614 }
 0x5cb   : > { %v3714_v6 = vand.u32 4294901760, %v24742_v12  ;;  %v3628_v38 = vand.u32 4294901760, %v3615_v0 }
 0x5cd   : > { %v23564_v30 = vpop.eup %23563  ;;  %v24746_v43 = vpack.c.bf16 %v3628_v38, %v3625_v7  ;;  %v24748_v31 = vsub.f32 %v3615_v0, %v3628_v38  ;;  %v3715_v39 = vsub.f32 %v24742_v12, %v3714_v6 }
 0x5ce   : > { %v4127_v4 = vpop.permute.xlu1 %4126  ;;  %v3593_v37 = vmul.f32 %v23564_v30, %v24644_v27 }
 0x5cf   : > { %v3721_v40 = vand.u32 4294901760, %v24748_v31  ;;  %v4139_v19 = vand.u32 4294901760, %v4127_v4  ;;  %22239 = vmatprep.subr.bf16.mxu0 %v24746_v43  ;;  %v3716_v33 = vand.u32 4294901760, %v3715_v39  ;;  %v22246_v23 = vpack.c.bf16 %v24748_v31, %v24742_v12 }
 0x5d0   : > { %22241 = vmatpush3.bf16.msra.mxu0 %v24746_v43  ;;  %3606 = vst.msk [vmem:[%s24704_s28 + $0x10] sm:$0xff] %vm3515_vm2, %v3593_v37  ;;  %v4133_v41 = vsel %vm3515_vm2, %v3593_v37, 0 }
 0x5d1   : > { %v23566_v48 = vpop.eup %23565  ;;  %v24763_v42 = vsub.f32 %v4127_v4, %v4139_v19  ;;  %v3722_v51 = vsub.f32 %v24748_v31, %v3721_v40  ;;  %v24766_v53 = vand.u32 4294901760, %v4133_v41 }
 0x5d2   : > { %v3595_v27 = vmul.f32 %v23566_v48, %v24648_v14  ;;  %v4129_v61 = vpop.permute.xlu1 %4128 }
 0x5d3   : > { %v4228_v2 = vand.u32 4294901760, %v24763_v42  ;;  %v4142_v20 = vand.u32 4294901760, %v4129_v61  ;;  %20803 = vmatmul.mubr.f32.vlgmr.msra.gmra.mrb[10].mxu0 %v3705_v44  ;;  %v3723_v5 = vand.u32 4294901760, %v3722_v51  ;;  %v4206_v8 = vsub.f32 %v4133_v41, %v24766_v53 }
 0x5d4   : > { %3607 = vst.msk [vmem:[%s24704_s28 + $0x18] sm:$0xff] %vm3515_vm2, %v3595_v27  ;;  %20809 = vmatprep.mubr.f32.mxu0 %v24715_v15  ;;  %v4136_v10 = vsel %vm3515_vm2, %v3595_v27, 0 }
 0x5d5   : > { %v24775_v11 = vpack.c.bf16 %v4142_v20, %v4139_v19  ;;  %v4234_v21 = vsub.f32 %v4129_v61, %v4142_v20  ;;  %v22242_v13 = vpack.c.bf16 %v3723_v5, %v3716_v33  ;;  %v4207_v14 = vand.u32 4294901760, %v4206_v8 }
 0x5d6   : > { %v24777_v60 = vand.u32 4294901760, %v4136_v10  ;;  %v4229_v9 = vsub.f32 %v24763_v42, %v4228_v2  ;;  %v22254_v19 = vpack.c.bf16 %v3721_v40, %v3714_v6 }
 0x5d7   : > { %v4235_v1 = vand.u32 4294901760, %v4234_v21  ;;  %22243 = vmatprep.subr.bf16.mxu0 %v22242_v13  ;;  %22263 = vmatprep.subr.bf16.mxu1 %v24775_v11  ;;  %v4208_v24 = vsub.f32 %v4206_v8, %v4207_v14  ;;  %v22270_v37 = vpack.c.bf16 %v4234_v21, %v24763_v42 }
 0x5d8   : > { %22245 = vmatpush3.bf16.msra.mxu0 %v22242_v13  ;;  %22265 = vmatpush3.bf16.msra.mxu1 %v24775_v11  ;;  %v4216_v25 = vsub.f32 %v4136_v10, %v24777_v60  ;;  %v4230_v30 = vand.u32 4294901760, %v4229_v9 }
 0x5d9   : > { %22247 = vmatprep.subr.bf16.mxu0 %v22246_v23  ;;  %v4209_v7 = vand.u32 4294901760, %v4208_v24  ;;  %v4236_v0 = vsub.f32 %v4234_v21, %v4235_v1  ;;  %v22278_v12 = vpack.c.bf16 %v4235_v1, %v4228_v2 }
 0x5da   : > { %v4217_v38 = vand.u32 4294901760, %v4216_v25 }
 0x5db   : > { %20810 = vmatmul.mubr.f32.vlgmr.msra.gmra.mrb[10].mxu0 %v24737_v18  ;;  %20844 = vmatprep.mubr.f32.mxu1 %v4209_v7  ;;  %v4237_v32 = vand.u32 4294901760, %v4236_v0 }
 0x5dc   : > { %22249 = vmatpush3.bf16.msra.mxu0 %v22246_v23  ;;  %20816 = vmatprep.mubr.f32.mxu0 %v24720_v49  ;;  %v4218_v31 = vsub.f32 %v4216_v25, %v4217_v38 }
 0x5dd   : > { %22251 = vmatprep.subr.bf16.mxu0 %v24746_v43  ;;  %v22266_v4 = vpack.c.bf16 %v4237_v32, %v4230_v30 }
 0x5de   : > { %v4219_v39 = vand.u32 4294901760, %v4218_v31 }
 0x5df   : > { %22267 = vmatprep.subr.bf16.mxu1 %v22266_v4 }
 0x5e0   : > { %20845 = vmatmul.mubr.f32.vlgmr.msra.gmra.mrb[14].mxu1 %v4219_v39 }
 0x5e1   : > { %22269 = vmatpush3.bf16.msra.mxu1 %v22266_v4  ;;  %20851 = vmatprep.mubr.f32.mxu1 %v24766_v53 }
 0x5e2   : > { %22271 = vmatprep.subr.bf16.mxu1 %v22270_v37 }
 0x5e3   : > { %20817 = vmatmul.mubr.f32.vlgmr.msra.gmra.mrb[10].mxu0 %v24740_v17 }
 0x5e4   : > { %22253 = vmatpush3.bf16.msra.mxu0 %v24746_v43  ;;  %20823 = vmatprep.mubr.f32.mxu0 %v3693_v16 }
 0x5e5   : > { %22255 = vmatprep.subr.bf16.mxu0 %v22254_v19 }
 0x5e8   : > { %20852 = vmatmul.mubr.f32.vlgmr.msra.gmra.mrb[14].mxu1 %v24777_v60 }
 0x5e9   : > { %22273 = vmatpush3.bf16.msra.mxu1 %v22270_v37  ;;  %20858 = vmatprep.mubr.f32.mxu1 %v4206_v8 }
 0x5ea   : > { %22275 = vmatprep.subr.bf16.mxu1 %v24775_v11 }
 0x5eb   : > { %20824 = vmatmul.mubr.f32.vlgmr.msra.gmra.mrb[10].mxu0 %v3703_v29 }
 0x5ec   : > { %22257 = vmatpush3.bf16.msra.mxu0 %v22254_v19  ;;  %20830 = vmatprep.mubr.f32.mxu0 %v24715_v15 }
 0x5ed   : > { %22259 = vmatprep.subr.bf16.mxu0 %v24746_v43 }
 0x5f0   : > { %20859 = vmatmul.mubr.f32.vlgmr.msra.gmra.mrb[14].mxu1 %v4216_v25 }
 0x5f1   : > { %22277 = vmatpush3.bf16.msra.mxu1 %v24775_v11  ;;  %20865 = vmatprep.mubr.f32.mxu1 %v4207_v14 }
 0x5f2   : > { %22279 = vmatprep.subr.bf16.mxu1 %v22278_v12 }
 0x5f3   : > { %20831 = vmatmul.mubr.f32.vlgmr.msra.gmra.mrb[10].mxu0 %v24737_v18 }
 0x5f4   : > { %22261 = vmatpush3.bf16.msra.mxu0 %v24746_v43  ;;  %20837 = vmatprep.mubr.f32.mxu0 %v24715_v15 }
 0x5f7   : > { %v3578_v49 = vpop.xlane.xlu0 %3577 }
 0x5f8   : > { %20866 = vmatmul.mubr.f32.vlgmr.msra.gmra.mrb[14].mxu1 %v4217_v38  ;;  %23567 = vrcp.f32 %v3578_v49 }
 0x5f9   : > { %22281 = vmatpush3.bf16.msra.mxu1 %v22278_v12  ;;  %20872 = vmatprep.mubr.f32.mxu1 %v24766_v53 }
 0x5fa   : > { %22283 = vmatprep.subr.bf16.mxu1 %v24775_v11 }
 0x5fb   : > { %20838 = vmatmul.mubr.f32.vlgmr.msra.gmra.mrb[10].mxu0 %v24737_v18  ;;  %v3587_v16 = vpop.xlane.xlu0 %3586 }
 0x5fc   : > { %23569 = vrcp.f32 %v3587_v16 }
 0x5ff   : > { %v3584_v17 = vpop.xlane.xlu0 %3583 }
 0x600   : > { %20873 = vmatmul.mubr.f32.vlgmr.msra.gmra.mrb[14].mxu1 %v24777_v60  ;;  %23571 = vrcp.f32 %v3584_v17 }
 0x601   : > { %22285 = vmatpush3.bf16.msra.mxu1 %v24775_v11  ;;  %20879 = vmatprep.mubr.f32.mxu1 %v24766_v53 }
 0x602   : > { %v23568_v15 = vpop.eup %23567 }
 0x603   : > { %v3581_v29 = vpop.xlane.xlu1 %3580  ;;  %v4641_v6 = vpop.permute.xlu0 %4640  ;;  %v3597_v43 = vmul.f32 %v23568_v15, %v24661_v52 }
 0x604   : > { %23573 = vrcp.f32 %v3581_v29  ;;  %v4653_v40 = vand.u32 4294901760, %v4641_v6 }
 0x605   : > { %3608 = vst.msk [vmem:[%s24704_s28 + $0x20] sm:$0xff] %vm3515_vm2, %v3597_v43  ;;  %v4647_v18 = vsel %vm3515_vm2, %v3597_v43, 0 }
 0x606   : > { %v23570_v41 = vpop.eup %23569  ;;  %v24816_v48 = vsub.f32 %v4641_v6, %v4653_v40  ;;  %v24818_v42 = vand.u32 4294901760, %v4647_v18 }
 0x607   : > { %v3603_v44 = vmul.f32 %v23570_v41, %v24665_v57  ;;  %v4643_v51 = vpop.permute.xlu1 %4642 }
 0x608   : > { %v4742_v53 = vand.u32 4294901760, %v24816_v48  ;;  %v4656_v27 = vand.u32 4294901760, %v4643_v51  ;;  %20880 = vmatmul.mubr.f32.vlgmr.msra.gmra.mrb[14].mxu1 %v24777_v60  ;;  %v24824_v52 = vsub.f32 %v4647_v18, %v24818_v42 }
 0x609   : > { %3611 = vst.msk [vmem:[%s24704_s28 + $0x38] sm:$0xff] %vm3515_vm2, %v3603_v44  ;;  %v5164_v61 = vsel %vm3515_vm2, %v3603_v44, 0 }
 0x60a   : > { %v23572_v33 = vpop.eup %23571  ;;  %v24829_v2 = vpack.c.bf16 %v4656_v27, %v4653_v40  ;;  %v24831_v20 = vsub.f32 %v4643_v51, %v4656_v27  ;;  %v4721_v57 = vand.u32 4294901760, %v24824_v52  ;;  %v24835_v10 = vand.u32 4294901760, %v5164_v61 }
 0x60b   : > { %v5155_v5 = vpop.permute.xlu1 %5154  ;;  %v3601_v8 = vmul.f32 %v23572_v33, %v24669_v62  ;;  %v4743_v14 = vsub.f32 %v24816_v48, %v4742_v53  ;;  %v5676_v33 = vpop.permute.xlu0 %5675 }
 0x60c   : > { %v4749_v11 = vand.u32 4294901760, %v24831_v20  ;;  %v5167_v21 = vand.u32 4294901760, %v5155_v5  ;;  %22287 = vmatprep.subr.bf16.mxu0 %v24829_v2  ;;  %v4722_v13 = vsub.f32 %v24824_v52, %v4721_v57  ;;  %v24858_v0 = vsub.f32 %v5164_v61, %v24835_v10 }
 0x60d   : > { %22289 = vmatpush3.bf16.msra.mxu0 %v24829_v2  ;;  %3610 = vst.msk [vmem:[%s24704_s28 + $0x30] sm:$0xff] %vm3515_vm2, %v3601_v8  ;;  %v5161_v62 = vsel %vm3515_vm2, %v3601_v8, 0  ;;  %v4744_v32 = vand.u32 4294901760, %v4743_v14 }
 0x60e   : > { %v23574_v60 = vpop.eup %23573  ;;  %v24849_v1 = vsub.f32 %v5155_v5, %v5167_v21  ;;  %v4723_v23 = vand.u32 4294901760, %v4722_v13  ;;  %v4750_v24 = vsub.f32 %v24831_v20, %v4749_v11  ;;  %v24854_v9 = vand.u32 4294901760, %v5161_v62 }
 0x60f   : > { %v3599_v25 = vmul.f32 %v23574_v60, %v24673_v54  ;;  %v5157_v7 = vpop.permute.xlu1 %5156  ;;  %v5245_v39 = vand.u32 4294901760, %v24858_v0 }
 0x610   : > { %v5256_v38 = vand.u32 4294901760, %v24849_v1  ;;  %v5170_v30 = vand.u32 4294901760, %v5157_v7  ;;  %20886 = vmatprep.mubr.f32.mxu0 %v4723_v23  ;;  %v4751_v31 = vand.u32 4294901760, %v4750_v24  ;;  %v5234_v4 = vsub.f32 %v5161_v62, %v24854_v9  ;;  %v5672_v62 = vpop.permute.xlu0 %5671 }
 0x611   : > { %3609 = vst.msk [vmem:[%s24704_s28 + $0x28] sm:$0xff] %vm3515_vm2, %v3599_v25  ;;  %v4650_v37 = vsel %vm3515_vm2, %v3599_v25, 0  ;;  %v5246_v15 = vsub.f32 %v24858_v0, %v5245_v39 }
 0x612   : > { %v24866_v19 = vpack.c.bf16 %v5170_v30, %v5167_v21  ;;  %v5262_v54 = vsub.f32 %v5157_v7, %v5170_v30  ;;  %v22290_v12 = vpack.c.bf16 %v4751_v31, %v4744_v32  ;;  %v24868_v49 = vand.u32 4294901760, %v4650_v37 }
 0x613   : > { %v5235_v16 = vand.u32 4294901760, %v5234_v4  ;;  %v5257_v6 = vsub.f32 %v24849_v1, %v5256_v38  ;;  %v5247_v44 = vand.u32 4294901760, %v5246_v15  ;;  %v22294_v21 = vpack.c.bf16 %v24831_v20, %v24816_v48  ;;  %v5678_v13 = vpop.permute.xlu1 %5677 }
 0x614   : > { %v5263_v17 = vand.u32 4294901760, %v5262_v54  ;;  %22291 = vmatprep.subr.bf16.mxu0 %v22290_v12  ;;  %22311 = vmatprep.subr.bf16.mxu1 %v24866_v19  ;;  %v24875_v29 = vsub.f32 %v4650_v37, %v24868_v49  ;;  %v22318_v14 = vpack.c.bf16 %v5262_v54, %v24849_v1  ;;  %v6194_v23 = vpop.permute.xlu0 %6193  ;;  %v22302_v30 = vpack.c.bf16 %v4749_v11, %v4742_v53 }
 0x615   : > { %22313 = vmatpush3.bf16.msra.mxu1 %v24866_v19  ;;  %v5236_v43 = vsub.f32 %v5234_v4, %v5235_v16  ;;  %v5258_v27 = vand.u32 4294901760, %v5257_v6  ;;  %v6201_v32 = vsel %vm1440_vm1, %v6194_v23, 0  ;;  %v5683_v37 = vsel %vm1440_vm1, %v5676_v33, 0 }
 0x616   : > { %v4731_v40 = vand.u32 4294901760, %v24875_v29  ;;  %v5264_v18 = vsub.f32 %v5262_v54, %v5263_v17  ;;  %v22326_v24 = vpack.c.bf16 %v5263_v17, %v5256_v38  ;;  %v5685_v38 = vsel %vm1440_vm1, %v5678_v13, 0 }
 0x617   : > { %v5237_v41 = vand.u32 4294901760, %v5236_v43  ;;  %v5674_v60 = vpop.permute.xlu1 %5673  ;;  %v5679_v48 = vsel %vm1440_vm1, %v5672_v62, 0  ;;  %v6206_v54 = vand.u32 4294901760, %v6201_v32  ;;  %v5691_v20 = vand.u32 4294901760, %v5685_v38 }
 0x618   : > { %v4732_v51 = vsub.f32 %v24875_v29, %v4731_v40  ;;  %v5265_v61 = vand.u32 4294901760, %v5264_v18  ;;  %v6190_v25 = vpop.permute.xlu0 %6189  ;;  %v5688_v11 = vand.u32 4294901760, %v5683_v37 }
 0x619   : > { %20928 = vmatprep.mubr.f32.mxu1 %v5237_v41  ;;  %v6197_v31 = vsel %vm1440_vm1, %v6190_v25, 0  ;;  %v24923_v17 = vsub.f32 %v5685_v38, %v5691_v20 }
 0x61a   : > { %20929 = vmatmul.mubr.f32.vlgmr.msra.gmra.mrb[16].mxu1 %v5247_v44  ;;  %v4733_v5 = vand.u32 4294901760, %v4732_v51  ;;  %v22314_v8 = vpack.c.bf16 %v5265_v61, %v5258_v27  ;;  %v24909_v53 = vand.u32 4294901760, %v6197_v31  ;;  %v24931_v15 = vsub.f32 %v5683_v37, %v5688_v11 }
 0x61b   : > { %20935 = vmatprep.mubr.f32.mxu1 %v24854_v9  ;;  %v6196_v1 = vpop.permute.xlu1 %6195  ;;  %v5784_v18 = vand.u32 4294901760, %v24923_v17 }
 0x61c   : > { %20887 = vmatmul.mubr.f32.vlgmr.msra.gmra.mrb[12].mxu0 %v4733_v5  ;;  %22315 = vmatprep.subr.bf16.mxu1 %v22314_v8  ;;  %v6203_v7 = vsel %vm1440_vm1, %v6196_v1, 0  ;;  %v5777_v27 = vand.u32 4294901760, %v24931_v15  ;;  %v6712_v37 = vpop.permute.xlu0 %6711 }
 0x61d   : > { %22293 = vmatpush3.bf16.msra.mxu0 %v22290_v12  ;;  %20893 = vmatprep.mubr.f32.mxu0 %v24818_v42  ;;  %v5785_v13 = vsub.f32 %v24923_v17, %v5784_v18 }
 0x61e   : > { %22295 = vmatprep.subr.bf16.mxu0 %v22294_v21  ;;  %22317 = vmatpush3.bf16.msra.mxu1 %v22314_v8  ;;  %v24955_v8 = vpack.c.bf16 %v5691_v20, %v5688_v11  ;;  %v22342_v20 = vpack.c.bf16 %v24923_v17, %v24931_v15 }
 0x61f   : > { %22319 = vmatprep.subr.bf16.mxu1 %v22318_v14  ;;  %v6192_v12 = vpop.permute.xlu1 %6191 }
 0x620   : > { %v6708_v11 = vpop.permute.xlu0 %6707 }
 0x622   : > { %20936 = vmatmul.mubr.f32.vlgmr.msra.gmra.mrb[16].mxu1 %v24835_v10 }
 0x623   : > { %22321 = vmatpush3.bf16.msra.mxu1 %v22318_v14  ;;  %20942 = vmatprep.mubr.f32.mxu1 %v5234_v4  ;;  %v6209_v4 = vand.u32 4294901760, %v6203_v7 }
 0x624   : > { %22323 = vmatprep.subr.bf16.mxu1 %v24866_v19  ;;  %20894 = vmatmul.mubr.f32.vlgmr.msra.gmra.mrb[12].mxu0 %v24868_v49 }
 0x625   : > { %22297 = vmatpush3.bf16.msra.mxu0 %v22294_v21  ;;  %20900 = vmatprep.mubr.f32.mxu0 %v24824_v52  ;;  %v24913_v52 = vand.u32 4294901760, %v5679_v48  ;;  %v24943_v51 = vpack.c.bf16 %v6209_v4, %v6206_v54 }
 0x626   : > { %22299 = vmatprep.subr.bf16.mxu0 %v24829_v2 }
 0x627   : > { %v24934_v6 = vsub.f32 %v5679_v48, %v24913_v52 }
 0x629   : > { %v5756_v5 = vand.u32 4294901760, %v24934_v6 }
 0x62a   : > { %20943 = vmatmul.mubr.f32.vlgmr.msra.gmra.mrb[16].mxu1 %v24858_v0  ;;  %v24926_v0 = vsub.f32 %v6197_v31, %v24909_v53 }
 0x62b   : > { %22325 = vmatpush3.bf16.msra.mxu1 %v24866_v19  ;;  %20949 = vmatprep.mubr.f32.mxu1 %v5235_v16  ;;  %v24918_v16 = vsub.f32 %v6201_v32, %v6206_v54  ;;  %v6714_v54 = vpop.permute.xlu1 %6713 }
 0x62c   : > { %22327 = vmatprep.subr.bf16.mxu1 %v22326_v24  ;;  %20901 = vmatmul.mubr.f32.vlgmr.msra.gmra.mrb[12].mxu0 %v24875_v29  ;;  %v6274_v44 = vand.u32 4294901760, %v24926_v0 }
 0x62d   : > { %22301 = vmatpush3.bf16.msra.mxu0 %v24829_v2  ;;  %20907 = vmatprep.mubr.f32.mxu0 %v4721_v57  ;;  %v24915_v57 = vsub.f32 %v6203_v7, %v6209_v4  ;;  %v6295_v43 = vand.u32 4294901760, %v24918_v16 }
 0x62e   : > { %22303 = vmatprep.subr.bf16.mxu0 %v22302_v30 }
 0x62f   : > { %v6302_v29 = vand.u32 4294901760, %v24915_v57  ;;  %v6296_v21 = vsub.f32 %v24918_v16, %v6295_v43 }
 0x631   : > { %v6303_v33 = vsub.f32 %v24915_v57, %v6302_v29  ;;  %v6297_v1 = vand.u32 4294901760, %v6296_v21 }
 0x632   : > { %20950 = vmatmul.mubr.f32.vlgmr.msra.gmra.mrb[16].mxu1 %v5245_v39  ;;  %v6199_v39 = vsel %vm1440_vm1, %v6192_v12, 0  ;;  %v6710_v12 = vpop.permute.xlu1 %6709 }
 0x633   : > { %22329 = vmatpush3.bf16.msra.mxu1 %v22326_v24  ;;  %20956 = vmatprep.mubr.f32.mxu1 %v24854_v9  ;;  %v24940_v41 = vand.u32 4294901760, %v6199_v39  ;;  %v6304_v62 = vand.u32 4294901760, %v6303_v33  ;;  %v5786_v24 = vand.u32 4294901760, %v5785_v13  ;;  %v22374_v33 = vpack.c.bf16 %v6302_v29, %v6295_v43 }
 0x634   : > { %22331 = vmatprep.subr.bf16.mxu1 %v24866_v19  ;;  %20908 = vmatmul.mubr.f32.vlgmr.msra.gmra.mrb[12].mxu0 %v4731_v40  ;;  %v5681_v40 = vsel %vm1440_vm1, %v5674_v60, 0  ;;  %v22350_v13 = vpack.c.bf16 %v5784_v18, %v5777_v27  ;;  %v6719_v43 = vsel %vm1440_vm1, %v6712_v37, 0 }
 0x635   : > { %22305 = vmatpush3.bf16.msra.mxu0 %v22302_v30  ;;  %20914 = vmatprep.mubr.f32.mxu0 %v24818_v42  ;;  %v24947_v61 = vand.u32 4294901760, %v5681_v40  ;;  %v22362_v7 = vpack.c.bf16 %v6304_v62, %v6297_v1 }
 0x636   : > { %22307 = vmatprep.subr.bf16.mxu0 %v24829_v2 }
 0x637   : > { %v24975_v14 = vsub.f32 %v5681_v40, %v24947_v61  ;;  %v7232_v40 = vpop.permute.xlu1 %7231 }
 0x639   : > { %v5766_v25 = vand.u32 4294901760, %v24975_v14 }
 0x63a   : > { %20957 = vmatmul.mubr.f32.vlgmr.msra.gmra.mrb[16].mxu1 %v24835_v10 }
 0x63b   : > { %22333 = vmatpush3.bf16.msra.mxu1 %v24866_v19  ;;  %20963 = vmatprep.mubr.f32.mxu1 %v24854_v9  ;;  %v24963_v19 = vsub.f32 %v6199_v39, %v24940_v41  ;;  %v6275_v9 = vsub.f32 %v24926_v0, %v6274_v44  ;;  %v7230_v39 = vpop.permute.xlu0 %7229 }
 0x63c   : > { %22359 = vmatprep.subr.bf16.mxu1 %v24943_v51  ;;  %20915 = vmatmul.mubr.f32.vlgmr.msra.gmra.mrb[12].mxu0 %v24868_v49 }
 0x63d   : > { %22309 = vmatpush3.bf16.msra.mxu0 %v24829_v2  ;;  %20921 = vmatprep.mubr.f32.mxu0 %v24818_v42  ;;  %v5757_v2 = vsub.f32 %v24934_v6, %v5756_v5  ;;  %v5778_v42 = vsub.f32 %v24931_v15, %v5777_v27  ;;  %v6284_v60 = vand.u32 4294901760, %v24963_v19  ;;  %v6276_v23 = vand.u32 4294901760, %v6275_v9 }
 0x63e   : > { %22335 = vmatprep.subr.bf16.mxu0 %v24955_v8  ;;  %v7239_v9 = vsel %vm1440_vm1, %v7232_v40, 0  ;;  %v6715_v15 = vsel %vm1440_vm1, %v6708_v11, 0  ;;  %v6724_v27 = vand.u32 4294901760, %v6719_v43 }
 0x63f   : > { %v5758_v30 = vand.u32 4294901760, %v5757_v2  ;;  %v5779_v32 = vand.u32 4294901760, %v5778_v42  ;;  %v6285_v38 = vsub.f32 %v24963_v19, %v6284_v60  ;;  %v7226_v21 = vpop.permute.xlu0 %7225  ;;  %v7245_v29 = vand.u32 4294901760, %v7239_v9  ;;  %v7228_v2 = vpop.permute.xlu1 %7227 }
 0x641   : > { %v22338_v31 = vpack.c.bf16 %v5786_v24, %v5779_v32  ;;  %v6286_v4 = vand.u32 4294901760, %v6285_v38  ;;  %v25031_v62 = vsub.f32 %v7239_v9, %v7245_v29 }
 0x642   : > { %20964 = vmatmul.mubr.f32.vlgmr.msra.gmra.mrb[16].mxu1 %v24835_v10  ;;  %v5767_v10 = vsub.f32 %v24975_v14, %v5766_v25 }
 0x643   : > { %21012 = vmatprep.mubr.f32.mxu1 %v6276_v23  ;;  %v7338_v1 = vand.u32 4294901760, %v25031_v62 }
 0x644   : > { %22361 = vmatpush3.bf16.xpose.msra.mxu1 %v24943_v51  ;;  %20922 = vmatmul.mubr.f32.vlgmr.msra.gmra.mrb[12].mxu0 %v24868_v49  ;;  %v22366_v49 = vpack.c.bf16 %v24915_v57, %v24918_v16  ;;  %v5768_v48 = vand.u32 4294901760, %v5767_v10  ;;  %v7237_v16 = vsel %vm1440_vm1, %v7230_v39, 0  ;;  %v6721_v57 = vsel %vm1440_vm1, %v6714_v54, 0 }
 0x645   : > { %22363 = vmatprep.subr.bf16.mxu1 %v22362_v7  ;;  %20970 = vmatprep.mubr.f32.mxu0 %v5758_v30  ;;  %v6727_v17 = vand.u32 4294901760, %v6721_v57 }
 0x646   : > { %22337 = vmatpush3.bf16.xpose.msra.mxu0 %v24955_v8 }
 0x647   : > { %22339 = vmatprep.subr.bf16.mxu0 %v22338_v31  ;;  %v25040_v42 = vsub.f32 %v6721_v57, %v6727_v17  ;;  %v25072_v37 = vpack.c.bf16 %v6727_v17, %v6724_v27 }
 0x64b   : > { %21013 = vmatmul.mubr.f32.vlgmr.msra.gmra.mrb[18].mxu1 %v6286_v4  ;;  %v7339_v4 = vsub.f32 %v25031_v62, %v7338_v1 }
 0x64c   : > { %22365 = vmatpush3.bf16.xpose.msra.mxu1 %v22362_v7  ;;  %21019 = vmatprep.mubr.f32.mxu1 %v24909_v53  ;;  %v6820_v7 = vand.u32 4294901760, %v25040_v42 }
 0x64d   : > { %22367 = vmatprep.subr.bf16.mxu1 %v22366_v49  ;;  %20971 = vmatmul.mubr.f32.vlgmr.msra.gmra.mrb[14].mxu0 %v5768_v48  ;;  %v7340_v11 = vand.u32 4294901760, %v7339_v4 }
 0x64e   : > { %22341 = vmatpush3.bf16.xpose.msra.mxu0 %v22338_v31  ;;  %20977 = vmatprep.mubr.f32.mxu0 %v24913_v52 }
 0x64f   : > { %22343 = vmatprep.subr.bf16.mxu0 %v22342_v20 }
 0x653   : > { %21020 = vmatmul.mubr.f32.vlgmr.msra.gmra.mrb[18].mxu1 %v24940_v41 }
 0x654   : > { %22369 = vmatpush3.bf16.xpose.msra.mxu1 %v22366_v49  ;;  %21026 = vmatprep.mubr.f32.mxu1 %v24926_v0  ;;  %v7233_v0 = vsel %vm1440_vm1, %v7226_v21, 0 }
 0x655   : > { %22371 = vmatprep.subr.bf16.mxu1 %v24943_v51  ;;  %20978 = vmatmul.mubr.f32.vlgmr.msra.gmra.mrb[14].mxu0 %v24947_v61  ;;  %v25029_v18 = vand.u32 4294901760, %v7233_v0 }
 0x656   : > { %22345 = vmatpush3.bf16.xpose.msra.mxu0 %v22342_v20  ;;  %20984 = vmatprep.mubr.f32.mxu0 %v24934_v6  ;;  %v25035_v6 = vand.u32 4294901760, %v6715_v15  ;;  %v6821_v20 = vsub.f32 %v25040_v42, %v6820_v7 }
 0x657   : > { %22347 = vmatprep.subr.bf16.mxu0 %v24955_v8  ;;  %v25046_v23 = vsub.f32 %v7233_v0, %v25029_v18 }
 0x658   : > { %v25055_v24 = vsub.f32 %v6715_v15, %v25035_v6 }
 0x659   : > { %v7310_v32 = vand.u32 4294901760, %v25046_v23 }
 0x65a   : > { %v6792_v49 = vand.u32 4294901760, %v25055_v24 }
 0x65b   : > { %21027 = vmatmul.mubr.f32.vlgmr.msra.gmra.mrb[18].mxu1 %v24963_v19  ;;  %v7235_v19 = vsel %vm1440_vm1, %v7228_v2, 0 }
 0x65c   : > { %22373 = vmatpush3.bf16.xpose.msra.mxu1 %v24943_v51  ;;  %21033 = vmatprep.mubr.f32.mxu1 %v6274_v44  ;;  %v7242_v44 = vand.u32 4294901760, %v7237_v16  ;;  %v25060_v30 = vand.u32 4294901760, %v7235_v19  ;;  %v6793_v39 = vsub.f32 %v25055_v24, %v6792_v49 }
 0x65d   : > { %22375 = vmatprep.subr.bf16.mxu1 %v22374_v33  ;;  %20985 = vmatmul.mubr.f32.vlgmr.msra.gmra.mrb[14].mxu0 %v24975_v14  ;;  %v6717_v14 = vsel %vm1440_vm1, %v6710_v12, 0 }
 0x65e   : > { %22349 = vmatpush3.bf16.xpose.msra.mxu0 %v24955_v8  ;;  %20991 = vmatprep.mubr.f32.mxu0 %v5756_v5  ;;  %v25038_v5 = vsub.f32 %v7237_v16, %v7242_v44  ;;  %v25064_v31 = vand.u32 4294901760, %v6717_v14  ;;  %v25066_v10 = vpack.c.bf16 %v7245_v29, %v7242_v44  ;;  %v7319_v48 = vsub.f32 %v7235_v19, %v25060_v30 }
 0x65f   : > { %22351 = vmatprep.subr.bf16.mxu0 %v22350_v13  ;;  %v6794_v16 = vand.u32 4294901760, %v6793_v39 }
 0x660   : > { %v7320_v40 = vand.u32 4294901760, %v7319_v48 }
 0x662   : > { %v7321_v57 = vsub.f32 %v7319_v48, %v7320_v40 }
 0x663   : > { %21034 = vmatmul.mubr.f32.vlgmr.msra.gmra.mrb[18].mxu1 %v6284_v60  ;;  %v25050_v60 = vsub.f32 %v6719_v43, %v6724_v27 }
 0x664   : > { %22377 = vmatpush3.bf16.xpose.msra.mxu1 %v22374_v33  ;;  %21040 = vmatprep.mubr.f32.mxu1 %v24909_v53  ;;  %v7322_v43 = vand.u32 4294901760, %v7321_v57 }
 0x665   : > { %22379 = vmatprep.subr.bf16.mxu1 %v24943_v51  ;;  %20992 = vmatmul.mubr.f32.vlgmr.msra.gmra.mrb[14].mxu0 %v5766_v25  ;;  %v7331_v25 = vand.u32 4294901760, %v25038_v5  ;;  %v6813_v38 = vand.u32 4294901760, %v25050_v60 }
 0x666   : > { %22353 = vmatpush3.bf16.xpose.msra.mxu0 %v22350_v13  ;;  %20998 = vmatprep.mubr.f32.mxu0 %v24913_v52 }
 0x667   : > { %22355 = vmatprep.subr.bf16.mxu0 %v24955_v8  ;;  %v7332_v54 = vsub.f32 %v25038_v5, %v7331_v25  ;;  %v6814_v12 = vsub.f32 %v25050_v60, %v6813_v38  ;;  %v22422_v44 = vpack.c.bf16 %v7338_v1, %v7331_v25  ;;  %v22398_v17 = vpack.c.bf16 %v6820_v7, %v6813_v38  ;;  %v23671_v38 = vld [vmem:[#allocation10 + $0x8] sm:$0xff] }
 0x669   : > { %v7333_v33 = vand.u32 4294901760, %v7332_v54  ;;  %v6815_v13 = vand.u32 4294901760, %v6814_v12  ;;  %v23673_v54 = vld [vmem:[#allocation10 + $0x10] sm:$0xff] }
 0x66b   : > { %21041 = vmatmul.mubr.f32.vlgmr.msra.gmra.mrb[18].mxu1 %v24940_v41  ;;  %v22410_v9 = vpack.c.bf16 %v7340_v11, %v7333_v33 }
 0x66c   : > { %22381 = vmatpush3.bf16.xpose.msra.mxu1 %v24943_v51  ;;  %21047 = vmatprep.mubr.f32.mxu1 %v24909_v53  ;;  %v7311_v53 = vsub.f32 %v25046_v23, %v7310_v32  ;;  %v6801_v51 = vsub.f32 %v6717_v14, %v25064_v31 }
 0x66d   : > { %22407 = vmatprep.subr.bf16.mxu1 %v25066_v10  ;;  %20999 = vmatmul.mubr.f32.vlgmr.msra.gmra.mrb[14].mxu0 %v24947_v61 }
 0x66e   : > { %22357 = vmatpush3.bf16.xpose.msra.mxu0 %v24955_v8  ;;  %21005 = vmatprep.mubr.f32.mxu0 %v24913_v52  ;;  %v6822_v8 = vand.u32 4294901760, %v6821_v20  ;;  %v7312_v21 = vand.u32 4294901760, %v7311_v53  ;;  %v6802_v52 = vand.u32 4294901760, %v6801_v51 }
 0x66f   : > { %22383 = vmatprep.subr.bf16.mxu0 %v25072_v37 }
 0x670   : > { %v22386_v0 = vpack.c.bf16 %v6822_v8, %v6815_v13  ;;  %v6803_v29 = vsub.f32 %v6801_v51, %v6802_v52 }
 0x672   : > { %v6804_v15 = vand.u32 4294901760, %v6803_v29 }
 0x673   : > { %21048 = vmatmul.mubr.f32.vlgmr.msra.gmra.mrb[18].mxu1 %v24940_v41  ;;  %v22414_v41 = vpack.c.bf16 %v25031_v62, %v25038_v5 }
 0x674   : > { %22409 = vmatpush3.bf16.xpose.msra.mxu1 %v25066_v10  ;;  %21096 = vmatprep.mubr.f32.mxu1 %v7312_v21 }
 0x675   : > { %22411 = vmatprep.subr.bf16.mxu1 %v22410_v9  ;;  %21006 = vmatmul.mubr.f32.vlgmr.msra.gmra.mrb[14].mxu0 %v24947_v61  ;;  %v22390_v61 = vpack.c.bf16 %v25040_v42, %v25050_v60  ;;  %v5669_v60 = vld [vmem:[#allocation8 + $0x10] sm:$0xff] }
 0x676   : > { %22385 = vmatpush3.bf16.xpose.msra.mxu0 %v25072_v37  ;;  %21054 = vmatprep.mubr.f32.mxu0 %v6794_v16  ;;  %v23675_v16 = vld [vmem:[#allocation10 + $0x28] sm:$0xff] }
 0x677   : > { %22387 = vmatprep.subr.bf16.mxu0 %v22386_v0 }
 0x67b   : > { %21097 = vmatmul.mubr.f32.vlgmr.msra.gmra.mrb[20].mxu1 %v7322_v43 }
 0x67c   : > { %22413 = vmatpush3.bf16.xpose.msra.mxu1 %v22410_v9  ;;  %21103 = vmatprep.mubr.f32.mxu1 %v25029_v18 }
 0x67d   : > { %22415 = vmatprep.subr.bf16.mxu1 %v22414_v41  ;;  %21055 = vmatmul.mubr.f32.vlgmr.msra.gmra.mrb[16].mxu0 %v6804_v15 }
 0x67e   : > { %22389 = vmatpush3.bf16.xpose.msra.mxu0 %v22386_v0  ;;  %21061 = vmatprep.mubr.f32.mxu0 %v25035_v6  ;;  %v23676_v0 = vld [vmem:[#allocation10 + $0x20] sm:$0xff] }
 0x67f   : > { %22391 = vmatprep.subr.bf16.mxu0 %v22390_v61 }
 0x683   : > { %21104 = vmatmul.mubr.f32.vlgmr.msra.gmra.mrb[20].mxu1 %v25060_v30 }
 0x684   : > { %22417 = vmatpush3.bf16.xpose.msra.mxu1 %v22414_v41  ;;  %21110 = vmatprep.mubr.f32.mxu1 %v25046_v23  ;;  %v23677_v41 = vld [vmem:[#allocation10 + $0x38] sm:$0xff] }
 0x685   : > { %22419 = vmatprep.subr.bf16.mxu1 %v25066_v10  ;;  %21062 = vmatmul.mubr.f32.vlgmr.msra.gmra.mrb[16].mxu0 %v25064_v31 }
 0x686   : > { %22393 = vmatpush3.bf16.xpose.msra.mxu0 %v22390_v61  ;;  %21068 = vmatprep.mubr.f32.mxu0 %v25055_v24  ;;  %v5670_v24 = vld [vmem:[#allocation8 + $0x18] sm:$0xff] }
 0x687   : > { %22395 = vmatprep.subr.bf16.mxu0 %v25072_v37 }
 0x68b   : > { %21111 = vmatmul.mubr.f32.vlgmr.msra.gmra.mrb[20].mxu1 %v7319_v48 }
 0x68c   : > { %22421 = vmatpush3.bf16.xpose.msra.mxu1 %v25066_v10  ;;  %21117 = vmatprep.mubr.f32.mxu1 %v7310_v32 }
 0x68d   : > { %22423 = vmatprep.subr.bf16.mxu1 %v22422_v44  ;;  %21069 = vmatmul.mubr.f32.vlgmr.msra.gmra.mrb[16].mxu0 %v6801_v51  ;;  %v23674_v51 = vld [vmem:[#allocation10 + $0x18] sm:$0xff] }
 0x68e   : > { %22397 = vmatpush3.bf16.xpose.msra.mxu0 %v25072_v37  ;;  %21075 = vmatprep.mubr.f32.mxu0 %v6792_v49 }
 0x68f   : > { %22399 = vmatprep.subr.bf16.mxu0 %v22398_v17 }
 0x693   : > { %21118 = vmatmul.mubr.f32.vlgmr.msra.gmra.mrb[20].mxu1 %v7320_v40 }
 0x694   : > { %22425 = vmatpush3.bf16.xpose.msra.mxu1 %v22422_v44  ;;  %21124 = vmatprep.mubr.f32.mxu1 %v25029_v18  ;;  %v23678_v44 = vld [vmem:[#allocation10 + $0x30] sm:$0xff] }
 0x695   : > { %22427 = vmatprep.subr.bf16.mxu1 %v25066_v10  ;;  %21076 = vmatmul.mubr.f32.vlgmr.msra.gmra.mrb[16].mxu0 %v6802_v52 }
 0x696   : > { %22401 = vmatpush3.bf16.xpose.msra.mxu0 %v22398_v17  ;;  %21082 = vmatprep.mubr.f32.mxu0 %v25035_v6 }
 0x697   : > { %22403 = vmatprep.subr.bf16.mxu0 %v25072_v37 }
 0x69b   : > { %21125 = vmatmul.mubr.f32.vlgmr.msra.gmra.mrb[20].mxu1 %v25060_v30 }
 0x69c   : > { %22429 = vmatpush3.bf16.xpose.msra.mxu1 %v25066_v10  ;;  %21131 = vmatprep.mubr.f32.mxu1 %v25029_v18  ;;  %v23672_v10 = vld [vmem:[#allocation10] sm:$0xff] }
 0x69d   : > { %21083 = vmatmul.mubr.f32.vlgmr.msra.gmra.mrb[16].mxu0 %v25064_v31 }
 0x69e   : > { %22405 = vmatpush3.bf16.xpose.msra.mxu0 %v25072_v37  ;;  %21089 = vmatprep.mubr.f32.mxu0 %v25035_v6 }
 0x6a3   : > { %21132 = vmatmul.mubr.f32.vlgmr.msra.gmra.mrb[20].mxu1 %v25060_v30 }
 0x6a5   : > { %21090 = vmatmul.mubr.f32.vlgmr.msra.gmra.mrb[16].mxu0 %v25064_v31 }
 0x6ce   : > { %v25137_v27 = vpop.f32.mrb[10].mxu0 }
 0x6cf   : > { %v25139_v62 = vpop.f32.mrb[11].mxu0 }
 0x6db   : > { %v25141_v2 = vpop.f32.mrb[14].mxu1 }
 0x6dc   : > { %v25143_v5 = vpop.f32.mrb[15].mxu1 }
 0x715   : > { %v25145_v42 = vpop.f32.mrb[16].mxu1 }
 0x716   : > { %v25147_v18 = vpop.f32.mrb[17].mxu1 }
 0x717   : > { %v25149_v23 = vpop.f32.mrb[12].mxu0 }
 0x718   : > { %v25151_v19 = vpop.f32.mrb[13].mxu0 }
 0x746   : > { %v21049_v6 = vpop.f32.mrb[18].mxu1 }
 0x747   : > { %v6697_v1 = vpop.f32.mrb[19].mxu1  ;;  %v22984_v49 = vadd.f32 %v21049_v6, %v5670_v24 }
 0x748   : > { %v21007_v14 = vpop.f32.mrb[14].mxu0  ;;  %v22985_v30 = vadd.f32 %v6697_v1, %v5669_v60 }
 0x749   : > { %v22982_v25 = vadd.f32 %v21007_v14, %v5670_v24  ;;  %v6179_v7 = vpop.f32.mrb[15].mxu0  ;;  %v7746_v11 = vadd.f32 %v23674_v51, %v22984_v49 }
 0x74a   : > { %v22983_v32 = vadd.f32 %v6179_v7, %v5669_v60  ;;  %v7745_v20 = vadd.f32 %v23673_v54, %v22985_v30 }
 0x74b   : > { %v7744_v31 = vadd.f32 %v23671_v38, %v22982_v25  ;;  %v7760_v12 = vsel %vm3515_vm2, %v7746_v11, -inf }
 0x74c   : > { %v7743_v4 = vadd.f32 %v23672_v10, %v22983_v32  ;;  %v7757_v53 = vsel %vm3515_vm2, %v7745_v20, -inf }
 0x74d   : > { %v7754_v37 = vsel %vm3515_vm2, %v7744_v31, -inf }
 0x74e   : > { %7755 = vmax.xlane.f32.xlu1 %v7754_v37  ;;  %v7751_v48 = vsel %vm3515_vm2, %v7743_v4, -inf }
 0x74f   : > { %7752 = vmax.xlane.f32.xlu0 %v7751_v48 }
 0x753   : > { %7758 = vmax.xlane.f32.xlu0 %v7757_v53 }
 0x757   : > { %7761 = vmax.xlane.f32.xlu0 %v7760_v12 }
 0x776   : > { %v21133_v39 = vpop.f32.mrb[20].mxu1 }
 0x777   : > { %v7733_v40 = vpop.f32.mrb[21].mxu1  ;;  %v22988_v8 = vadd.f32 %v21133_v39, %v5670_v24 }
 0x778   : > { %v21091_v33 = vpop.f32.mrb[16].mxu0  ;;  %v22989_v9 = vadd.f32 %v7733_v40, %v5669_v60 }
 0x779   : > { %v22986_v21 = vadd.f32 %v21091_v33, %v5670_v24  ;;  %v7215_v52 = vpop.f32.mrb[17].mxu0  ;;  %v7750_v15 = vadd.f32 %v23677_v41, %v22988_v8 }
 0x77a   : > { %v22987_v13 = vadd.f32 %v7215_v52, %v5669_v60  ;;  %v7749_v17 = vadd.f32 %v23678_v44, %v22989_v9 }
 0x77b   : > { %v7748_v57 = vadd.f32 %v23675_v16, %v22986_v21  ;;  %v7772_v6 = vsel %vm3515_vm2, %v7750_v15, -inf }
 0x77c   : > { %v7747_v29 = vadd.f32 %v23676_v0, %v22987_v13  ;;  %v7769_v1 = vsel %vm3515_vm2, %v7749_v17, -inf }
 0x77d   : > { %v7766_v43 = vsel %vm3515_vm2, %v7748_v57, -inf }
 0x77e   : > { %7767 = vmax.xlane.f32.xlu1 %v7766_v43  ;;  %v7763_v61 = vsel %vm3515_vm2, %v7747_v29, -inf }
 0x77f   : > { %7764 = vmax.xlane.f32.xlu0 %v7763_v61 }
 0x782   : > { %7773 = vmax.xlane.f32.xlu1 %v7772_v6 }
 0x783   : > { %7770 = vmax.xlane.f32.xlu0 %v7769_v1 }
 0x7db   : > { %v7756_v60 = vpop.xlane.xlu1 %7755 }
 0x7dc   : > { %v7776_v24 = vsub.f32 %v7744_v31, %v7756_v60  ;;  %v7753_v14 = vpop.xlane.xlu0 %7752 }
 0x7dd   : > { %v7775_v25 = vsub.f32 %v7743_v4, %v7753_v14 }
 0x7de   : > { %v7785_v7 = vmul.f32 1.442695, %v7776_v24 }
 0x7df   : > { %v7783_v30 = vmul.f32 1.442695, %v7775_v25 }
 0x7e0   : > { %23575 = vpow2.f32 %v7785_v7  ;;  %v7759_v32 = vpop.xlane.xlu0 %7758 }
 0x7e1   : > { %23577 = vpow2.f32 %v7783_v30  ;;  %v7777_v38 = vsub.f32 %v7745_v20, %v7759_v32 }
 0x7e3   : > { %v7787_v10 = vmul.f32 1.442695, %v7777_v38 }
 0x7e4   : > { %v7762_v37 = vpop.xlane.xlu0 %7761 }
 0x7e5   : > { %23579 = vpow2.f32 %v7787_v10  ;;  %v7778_v49 = vsub.f32 %v7746_v11, %v7762_v37 }
 0x7e7   : > { %v7789_v48 = vmul.f32 1.442695, %v7778_v49 }
 0x7e9   : > { %23581 = vpow2.f32 %v7789_v48 }
 0x7ea   : > { %v25161_v54 = vpop.eup %23575 }
 0x7eb   : > { %v25163_v53 = vpop.eup %23577  ;;  %v7802_v31 = vsel %vm3515_vm2, %v25161_v54, 0.0 }
 0x7ec   : > { %7803 = vadd.xlane.f32.xlu1 %v7802_v31  ;;  %v7799_v4 = vsel %vm3515_vm2, %v25163_v53, 0.0 }
 0x7ed   : > { %7800 = vadd.xlane.f32.xlu0 %v7799_v4 }
 0x7ef   : > { %v25169_v51 = vpop.eup %23579 }
 0x7f0   : > { %v7805_v20 = vsel %vm3515_vm2, %v25169_v51, 0.0 }
 0x7f1   : > { %7806 = vadd.xlane.f32.xlu0 %v7805_v20 }
 0x7f3   : > { %v25173_v11 = vpop.eup %23581 }
 0x7f4   : > { %v7808_v12 = vsel %vm3515_vm2, %v25173_v11, 0.0 }
 0x7f5   : > { %7809 = vadd.xlane.f32.xlu1 %v7808_v12 }
 0x806   : > { %7850 = vrot.lane.b32.xlu1 %v24444_v22, %s23928_s9 }
 0x807   : > { %7848 = vrot.lane.b32.xlu0 %v24446_v26, %s23928_s9 }
 0x80a   : > { %8362 = vrot.lane.b32.xlu1 %v24457_v36, %s23928_s9 }
 0x80b   : > { %v7768_v39 = vpop.xlane.xlu1 %7767 }
 0x80c   : > { %v7765_v40 = vpop.xlane.xlu0 %7764  ;;  %v7780_v0 = vsub.f32 %v7748_v57, %v7768_v39 }
 0x80d   : > { %v7779_v33 = vsub.f32 %v7747_v29, %v7765_v40 }
 0x80e   : > { %8364 = vrot.lane.b32.xlu1 %v24455_v35, %s23928_s9  ;;  %v7793_v41 = vmul.f32 1.442695, %v7780_v0 }
 0x80f   : > { %v7774_v8 = vpop.xlane.xlu1 %7773  ;;  %v7791_v21 = vmul.f32 1.442695, %v7779_v33 }
 0x810   : > { %v7782_v52 = vsub.f32 %v7750_v15, %v7774_v8  ;;  %v7771_v9 = vpop.xlane.xlu0 %7770 }
 0x811   : > { %23583 = vpow2.f32 %v7791_v21  ;;  %v7781_v16 = vsub.f32 %v7749_v17, %v7771_v9 }
 0x812   : > { %v7797_v13 = vmul.f32 1.442695, %v7782_v52 }
 0x813   : > { %v7795_v43 = vmul.f32 1.442695, %v7781_v16 }
 0x814   : > { %23585 = vpow2.f32 %v7797_v13 }
 0x815   : > { %23587 = vpow2.f32 %v7795_v43 }
 0x816   : > { %23589 = vpow2.f32 %v7793_v41 }
 0x81b   : > { %v25185_v61 = vpop.eup %23583 }
 0x81c   : > { %v7811_v44 = vsel %vm3515_vm2, %v25185_v61, 0.0 }
 0x81e   : > { %v25189_v6 = vpop.eup %23585 }
 0x81f   : > { %v7820_v29 = vsel %vm3515_vm2, %v25189_v6, 0.0  ;;  %v25193_v15 = vpop.eup %23587 }
 0x820   : > { %v7817_v57 = vsel %vm3515_vm2, %v25193_v15, 0.0  ;;  %v25197_v17 = vpop.eup %23589 }
 0x821   : > { %v7814_v1 = vsel %vm3515_vm2, %v25197_v17, 0.0 }
 0x826   : > { %7812 = vadd.xlane.f32.xlu0 %v7811_v44 }
 0x82a   : > { %7821 = vadd.xlane.f32.xlu0 %v7820_v29 }
 0x82e   : > { %7818 = vadd.xlane.f32.xlu0 %v7817_v57 }
 0x832   : > { %7815 = vadd.xlane.f32.xlu1 %v7814_v1 }
 0x843   : > { %8878 = vrot.lane.b32.xlu1 %v24465_v45, %s23928_s9 }
 0x844   : > { %8876 = vrot.lane.b32.xlu0 %v24470_v47, %s23928_s9 }
 0x847   : > { %9390 = vrot.lane.b32.xlu1 %v24485_v59, %s23928_s9 }
 0x848   : > { %9911 = vrot.lane.b32.xlu0 %v24446_v26, %s23929_s19 }
 0x84b   : > { %9392 = vrot.lane.b32.xlu1 %v24480_v56, %s23928_s9  ;;  %s440_s9 = scalar_lea.vmem [#allocation11], %s19547_s27  ;;  %s26754_s27 = sshll.u32 %s24022_s17, 10 }
 0x84c   : > { %9907 = vrot.lane.b32.xlu0 %v24453_v34, %s23930_s21 }
 0x84f   : > { %9913 = vrot.lane.b32.xlu1 %v24444_v22, %s23929_s19 }
 0x850   : > { %10429 = vrot.lane.b32.xlu0 %v24457_v36, %s23929_s19 }
 0x853   : > { %9909 = vrot.lane.b32.xlu1 %v24505_v3, %s23930_s21 }
 0x854   : > { %10425 = vrot.lane.b32.xlu0 %v24556_v58, %s23930_s21 }
 0x857   : > { %10431 = vrot.lane.b32.xlu1 %v24455_v35, %s23929_s19 }
 0x858   : > { %10947 = vrot.lane.b32.xlu0 %v24470_v47, %s23929_s19 }
 0x85b   : > { %10427 = vrot.lane.b32.xlu1 %v24571_v46, %s23930_s21 }
 0x85c   : > { %10943 = vrot.lane.b32.xlu0 %v24478_v55, %s23930_s21 }
 0x85f   : > { %10949 = vrot.lane.b32.xlu1 %v24465_v45, %s23929_s19 }
 0x860   : > { %11465 = vrot.lane.b32.xlu0 %v24485_v59, %s23929_s19 }
 0x863   : > { %10945 = vrot.lane.b32.xlu1 %v24517_v28, %s23930_s21 }
 0x864   : > { %11461 = vrot.lane.b32.xlu0 %v24607_v63, %s23930_s21 }
 0x867   : > { %11467 = vrot.lane.b32.xlu1 %v24480_v56, %s23929_s19  ;;  %s19346_s19 = sshll.u32 %s440_s9, 4  ;;  %s26669_s19 = int_to_ptr.vmem [resolvable:$true] %s19346_s19 }
 0x86b   : > { %11463 = vrot.lane.b32.xlu1 %v24615_v50, %s23930_s21 }
 0x879   : > { %v7804_v60 = vpop.xlane.xlu1 %7803 }
 0x87a   : > { %23591 = vrcp.f32 %v7804_v60  ;;  %v7801_v24 = vpop.xlane.xlu0 %7800 }
 0x87b   : > { %23593 = vrcp.f32 %v7801_v24 }
 0x87e   : > { %v7807_v14 = vpop.xlane.xlu0 %7806 }
 0x87f   : > { %23595 = vrcp.f32 %v7807_v14 }
 0x882   : > { %v7810_v25 = vpop.xlane.xlu1 %7809  ;;  %v7849_v7 = vpop.permute.xlu0 %7848 }
 0x883   : > { %23597 = vrcp.f32 %v7810_v25  ;;  %v7861_v30 = vand.u32 4294901760, %v7849_v7 }
 0x884   : > { %v23592_v32 = vpop.eup %23591 }
 0x885   : > { %v23594_v38 = vpop.eup %23593  ;;  %v7826_v10 = vmul.f32 %v23592_v32, %v25161_v54  ;;  %v25226_v37 = vsub.f32 %v7849_v7, %v7861_v30 }
 0x886   : > { %v7851_v49 = vpop.permute.xlu1 %7850  ;;  %v7824_v48 = vmul.f32 %v23594_v38, %v25163_v53 }
 0x887   : > { %19558 = vst.msk [vmem:[%s24704_s28 + $0x48] sm:$0xff] %vm3515_vm2, %v7826_v10  ;;  %v7950_v31 = vand.u32 4294901760, %v25226_v37  ;;  %v7864_v4 = vand.u32 4294901760, %v7851_v49  ;;  %v7858_v20 = vsel %vm3515_vm2, %v7826_v10, 0 }
 0x888   : > { %19557 = vst.msk [vmem:[%s24704_s28 + $0x40] sm:$0xff] %vm3515_vm2, %v7824_v48  ;;  %v7855_v12 = vsel %vm3515_vm2, %v7824_v48, 0  ;;  %v25236_v39 = vand.u32 4294901760, %v7858_v20 }
 0x889   : > { %v23596_v54 = vpop.eup %23595  ;;  %v25238_v40 = vpack.c.bf16 %v7864_v4, %v7861_v30  ;;  %v25240_v33 = vsub.f32 %v7851_v49, %v7864_v4  ;;  %v25242_v53 = vand.u32 4294901760, %v7855_v12  ;;  %v7951_v21 = vsub.f32 %v25226_v37, %v7950_v31 }
 0x88a   : > { %v8363_v8 = vpop.permute.xlu1 %8362  ;;  %v25248_v52 = vsub.f32 %v7858_v20, %v25236_v39  ;;  %v7828_v9 = vmul.f32 %v23596_v54, %v25169_v51 }
 0x88b   : > { %v7957_v13 = vand.u32 4294901760, %v25240_v33  ;;  %v8375_v16 = vand.u32 4294901760, %v8363_v8  ;;  %22431 = vmatprep.subr.bf16.mxu0 %v25238_v40  ;;  %v25254_v0 = vsub.f32 %v7855_v12, %v25242_v53  ;;  %v7952_v14 = vand.u32 4294901760, %v7951_v21 }
 0x88c   : > { %22433 = vmatpush3.bf16.msra.mxu0 %v25238_v40  ;;  %v7939_v43 = vand.u32 4294901760, %v25248_v52  ;;  %19559 = vst.msk [vmem:[%s24704_s28 + $0x50] sm:$0xff] %vm3515_vm2, %v7828_v9  ;;  %v8369_v41 = vsel %vm3515_vm2, %v7828_v9, 0 }
 0x88d   : > { %v23598_v44 = vpop.eup %23597  ;;  %v25261_v29 = vsub.f32 %v8363_v8, %v8375_v16  ;;  %v7929_v51 = vand.u32 4294901760, %v25254_v0  ;;  %v7958_v57 = vsub.f32 %v25240_v33, %v7957_v13  ;;  %v25267_v1 = vand.u32 4294901760, %v8369_v41 }
 0x88e   : > { %v7830_v60 = vmul.f32 %v23598_v44, %v25173_v11  ;;  %v8365_v24 = vpop.permute.xlu1 %8364  ;;  %v7940_v25 = vsub.f32 %v25248_v52, %v7939_v43 }
 0x88f   : > { %v8464_v7 = vand.u32 4294901760, %v25261_v29  ;;  %v8378_v30 = vand.u32 4294901760, %v8365_v24  ;;  %v7930_v32 = vsub.f32 %v25254_v0, %v7929_v51  ;;  %v7959_v38 = vand.u32 4294901760, %v7958_v57 }
 0x890   : > { %19560 = vst.msk [vmem:[%s24704_s28 + $0x58] sm:$0xff] %vm3515_vm2, %v7830_v60  ;;  %v8442_v10 = vsub.f32 %v8369_v41, %v25267_v1  ;;  %v8372_v49 = vsel %vm3515_vm2, %v7830_v60, 0  ;;  %v7941_v12 = vand.u32 4294901760, %v7940_v25  ;;  %v22438_v41 = vpack.c.bf16 %v25240_v33, %v25226_v37 }
 0x891   : > { %v25279_v48 = vpack.c.bf16 %v8378_v30, %v8375_v16  ;;  %v8470_v11 = vsub.f32 %v8365_v24, %v8378_v30  ;;  %v7931_v4 = vand.u32 4294901760, %v7930_v32  ;;  %v22434_v20 = vpack.c.bf16 %v7959_v38, %v7952_v14 }
 0x892   : > { %v8443_v54 = vand.u32 4294901760, %v8442_v10  ;;  %v25281_v8 = vand.u32 4294901760, %v8372_v49  ;;  %v8465_v9 = vsub.f32 %v25261_v29, %v8464_v7 }
 0x893   : > { %v8471_v21 = vand.u32 4294901760, %v8470_v11  ;;  %21138 = vmatprep.mubr.f32.mxu0 %v7931_v4  ;;  %22435 = vmatprep.subr.bf16.mxu0 %v22434_v20  ;;  %v22446_v4 = vpack.c.bf16 %v7957_v13, %v7950_v31 }
 0x894   : > { %22455 = vmatprep.subr.bf16.mxu1 %v25279_v48  ;;  %21139 = vmatmul.mubr.f32.vlgmr.msra.gmra.mrb[18].mxu0 %v7941_v12  ;;  %v8444_v16 = vsub.f32 %v8442_v10, %v8443_v54  ;;  %v8452_v44 = vsub.f32 %v8372_v49, %v25281_v8  ;;  %v8466_v14 = vand.u32 4294901760, %v8465_v9  ;;  %v22462_v49 = vpack.c.bf16 %v8470_v11, %v25261_v29 }
 0x895   : > { %22437 = vmatpush3.bf16.msra.mxu0 %v22434_v20  ;;  %22457 = vmatpush3.bf16.msra.mxu1 %v25279_v48  ;;  %v8472_v57 = vsub.f32 %v8470_v11, %v8471_v21 }
 0x896   : > { %21145 = vmatprep.mubr.f32.mxu0 %v25242_v53  ;;  %22439 = vmatprep.subr.bf16.mxu0 %v22438_v41  ;;  %v8445_v60 = vand.u32 4294901760, %v8444_v16  ;;  %v8453_v24 = vand.u32 4294901760, %v8452_v44 }
 0x897   : > { %v8473_v25 = vand.u32 4294901760, %v8472_v57 }
 0x898   : > { %21180 = vmatprep.mubr.f32.mxu1 %v8445_v60  ;;  %v8454_v30 = vsub.f32 %v8452_v44, %v8453_v24 }
 0x899   : > { %v22458_v32 = vpack.c.bf16 %v8473_v25, %v8466_v14 }
 0x89a   : > { %v8455_v38 = vand.u32 4294901760, %v8454_v30 }
 0x89b   : > { %22459 = vmatprep.subr.bf16.mxu1 %v22458_v32 }
 0x89c   : > { %21181 = vmatmul.mubr.f32.vlgmr.msra.gmra.mrb[22].mxu1 %v8455_v38  ;;  %21146 = vmatmul.mubr.f32.vlgmr.msra.gmra.mrb[18].mxu0 %v25236_v39 }
 0x89d   : > { %22441 = vmatpush3.bf16.msra.mxu0 %v22438_v41  ;;  %22461 = vmatpush3.bf16.msra.mxu1 %v22458_v32 }
 0x89e   : > { %21187 = vmatprep.mubr.f32.mxu1 %v25267_v1  ;;  %21152 = vmatprep.mubr.f32.mxu0 %v25254_v0  ;;  %v22470_v0 = vpack.c.bf16 %v8471_v21, %v8464_v7 }
 0x89f   : > { %22443 = vmatprep.subr.bf16.mxu0 %v25238_v40  ;;  %22463 = vmatprep.subr.bf16.mxu1 %v22462_v49 }
 0x8a4   : > { %21188 = vmatmul.mubr.f32.vlgmr.msra.gmra.mrb[22].mxu1 %v25281_v8  ;;  %21153 = vmatmul.mubr.f32.vlgmr.msra.gmra.mrb[18].mxu0 %v25248_v52 }
 0x8a5   : > { %22465 = vmatpush3.bf16.msra.mxu1 %v22462_v49  ;;  %22445 = vmatpush3.bf16.msra.mxu0 %v25238_v40 }
 0x8a6   : > { %21194 = vmatprep.mubr.f32.mxu1 %v8442_v10  ;;  %22467 = vmatprep.subr.bf16.mxu1 %v25279_v48 }
 0x8a7   : > { %21159 = vmatprep.mubr.f32.mxu0 %v7929_v51  ;;  %22447 = vmatprep.subr.bf16.mxu0 %v22446_v4 }
 0x8ac   : > { %21195 = vmatmul.mubr.f32.vlgmr.msra.gmra.mrb[22].mxu1 %v8452_v44  ;;  %21160 = vmatmul.mubr.f32.vlgmr.msra.gmra.mrb[18].mxu0 %v7939_v43 }
 0x8ad   : > { %22469 = vmatpush3.bf16.msra.mxu1 %v25279_v48  ;;  %22449 = vmatpush3.bf16.msra.mxu0 %v22446_v4 }
 0x8ae   : > { %21201 = vmatprep.mubr.f32.mxu1 %v8443_v54  ;;  %22471 = vmatprep.subr.bf16.mxu1 %v22470_v0 }
 0x8af   : > { %21166 = vmatprep.mubr.f32.mxu0 %v25242_v53  ;;  %22451 = vmatprep.subr.bf16.mxu0 %v25238_v40 }
 0x8b3   : > { %v7813_v37 = vpop.xlane.xlu0 %7812 }
 0x8b4   : > { %21202 = vmatmul.mubr.f32.vlgmr.msra.gmra.mrb[22].mxu1 %v8453_v24  ;;  %23599 = vrcp.f32 %v7813_v37  ;;  %21167 = vmatmul.mubr.f32.vlgmr.msra.gmra.mrb[18].mxu0 %v25236_v39 }
 0x8b5   : > { %22473 = vmatpush3.bf16.msra.mxu1 %v22470_v0  ;;  %22453 = vmatpush3.bf16.msra.mxu0 %v25238_v40 }
 0x8b6   : > { %21208 = vmatprep.mubr.f32.mxu1 %v25267_v1  ;;  %22475 = vmatprep.subr.bf16.mxu1 %v25279_v48 }
 0x8b7   : > { %21173 = vmatprep.mubr.f32.mxu0 %v25242_v53  ;;  %v7822_v31 = vpop.xlane.xlu0 %7821 }
 0x8b8   : > { %23601 = vrcp.f32 %v7822_v31 }
 0x8bb   : > { %v7819_v33 = vpop.xlane.xlu0 %7818 }
 0x8bc   : > { %21209 = vmatmul.mubr.f32.vlgmr.msra.gmra.mrb[22].mxu1 %v25281_v8  ;;  %23603 = vrcp.f32 %v7819_v33  ;;  %21174 = vmatmul.mubr.f32.vlgmr.msra.gmra.mrb[18].mxu0 %v25236_v39 }
 0x8bd   : > { %22477 = vmatpush3.bf16.msra.mxu1 %v25279_v48  ;;  %21215 = vmatprep.mubr.f32.mxu1 %v25267_v1 }
 0x8be   : > { %v23600_v40 = vpop.eup %23599 }
 0x8bf   : > { %v7816_v52 = vpop.xlane.xlu1 %7815  ;;  %v8877_v13 = vpop.permute.xlu0 %8876  ;;  %v7832_v43 = vmul.f32 %v23600_v40, %v25185_v61 }
 0x8c0   : > { %23605 = vrcp.f32 %v7816_v52  ;;  %v8889_v53 = vand.u32 4294901760, %v8877_v13 }
 0x8c1   : > { %19561 = vst.msk [vmem:[%s24704_s28 + $0x60] sm:$0xff] %vm3515_vm2, %v7832_v43  ;;  %v8883_v29 = vsel %vm3515_vm2, %v7832_v43, 0 }
 0x8c2   : > { %v23602_v51 = vpop.eup %23601  ;;  %v25321_v7 = vsub.f32 %v8877_v13, %v8889_v53  ;;  %v25323_v39 = vand.u32 4294901760, %v8883_v29 }
 0x8c3   : > { %v7838_v10 = vmul.f32 %v23602_v51, %v25189_v6  ;;  %v8879_v1 = vpop.permute.xlu1 %8878 }
 0x8c4   : > { %v8978_v48 = vand.u32 4294901760, %v25321_v7  ;;  %v8892_v11 = vand.u32 4294901760, %v8879_v1  ;;  %21216 = vmatmul.mubr.f32.vlgmr.msra.gmra.mrb[22].mxu1 %v25281_v8  ;;  %v25329_v61 = vsub.f32 %v8883_v29, %v25323_v39 }
 0x8c5   : > { %19564 = vst.msk [vmem:[%s24704_s28 + $0x78] sm:$0xff] %vm3515_vm2, %v7838_v10  ;;  %v9400_v20 = vsel %vm3515_vm2, %v7838_v10, 0 }
 0x8c6   : > { %v23604_v12 = vpop.eup %23603  ;;  %v25334_v54 = vpack.c.bf16 %v8892_v11, %v8889_v53  ;;  %v25336_v21 = vsub.f32 %v8879_v1, %v8892_v11  ;;  %v8957_v6 = vand.u32 4294901760, %v25329_v61  ;;  %v25340_v16 = vand.u32 4294901760, %v9400_v20 }
 0x8c7   : > { %v9391_v9 = vpop.permute.xlu1 %9390  ;;  %v7836_v41 = vmul.f32 %v23604_v12, %v25193_v15  ;;  %v8979_v60 = vsub.f32 %v25321_v7, %v8978_v48 }
 0x8c8   : > { %v8985_v8 = vand.u32 4294901760, %v25336_v21  ;;  %v9403_v44 = vand.u32 4294901760, %v9391_v9  ;;  %22479 = vmatprep.subr.bf16.mxu0 %v25334_v54  ;;  %v8958_v57 = vsub.f32 %v25329_v61, %v8957_v6  ;;  %v25363_v4 = vsub.f32 %v9400_v20, %v25340_v16 }
 0x8c9   : > { %22481 = vmatpush3.bf16.msra.mxu0 %v25334_v54  ;;  %19563 = vst.msk [vmem:[%s24704_s28 + $0x70] sm:$0xff] %vm3515_vm2, %v7836_v41  ;;  %v9397_v15 = vsel %vm3515_vm2, %v7836_v41, 0  ;;  %v8980_v31 = vand.u32 4294901760, %v8979_v60 }
 0x8ca   : > { %v23606_v24 = vpop.eup %23605  ;;  %v25354_v14 = vsub.f32 %v9391_v9, %v9403_v44  ;;  %v8959_v25 = vand.u32 4294901760, %v8958_v57  ;;  %v8986_v30 = vsub.f32 %v25336_v21, %v8985_v8  ;;  %v25359_v32 = vand.u32 4294901760, %v9397_v15  ;;  %v9912_v57 = vpop.permute.xlu0 %9911 }
 0x8cb   : > { %v7834_v38 = vmul.f32 %v23606_v24, %v25197_v17  ;;  %v9393_v49 = vpop.permute.xlu1 %9392  ;;  %v9481_v52 = vand.u32 4294901760, %v25363_v4 }
 0x8cc   : > { %v9492_v0 = vand.u32 4294901760, %v25354_v14  ;;  %v9406_v37 = vand.u32 4294901760, %v9393_v49  ;;  %21222 = vmatprep.mubr.f32.mxu0 %v8959_v25  ;;  %v8987_v33 = vand.u32 4294901760, %v8986_v30  ;;  %v9470_v40 = vsub.f32 %v9397_v15, %v25359_v32 }
 0x8cd   : > { %19562 = vst.msk [vmem:[%s24704_s28 + $0x68] sm:$0xff] %vm3515_vm2, %v7834_v38  ;;  %v8886_v13 = vsel %vm3515_vm2, %v7834_v38, 0  ;;  %v9482_v1 = vsub.f32 %v25363_v4, %v9481_v52 }
 0x8ce   : > { %v25371_v43 = vpack.c.bf16 %v9406_v37, %v9403_v44  ;;  %v9498_v17 = vsub.f32 %v9393_v49, %v9406_v37  ;;  %v22482_v53 = vpack.c.bf16 %v8987_v33, %v8980_v31  ;;  %v25373_v29 = vand.u32 4294901760, %v8886_v13  ;;  %v9908_v33 = vpop.permute.xlu0 %9907 }
 0x8cf   : > { %v9471_v51 = vand.u32 4294901760, %v9470_v40  ;;  %v9493_v20 = vsub.f32 %v25354_v14, %v9492_v0  ;;  %v9483_v60 = vand.u32 4294901760, %v9482_v1  ;;  %v22486_v49 = vpack.c.bf16 %v25336_v21, %v25321_v7  ;;  %v9914_v37 = vpop.permute.xlu1 %9913 }
 0x8d0   : > { %v9499_v10 = vand.u32 4294901760, %v9498_v17  ;;  %22483 = vmatprep.subr.bf16.mxu0 %v22482_v53  ;;  %22503 = vmatprep.subr.bf16.mxu1 %v25371_v43  ;;  %v25380_v11 = vsub.f32 %v8886_v13, %v25373_v29  ;;  %v22510_v31 = vpack.c.bf16 %v9498_v17, %v25354_v14  ;;  %v9915_v7 = vsel %vm1440_vm1, %v9908_v33, 0 }
 0x8d1   : > { %22505 = vmatpush3.bf16.msra.mxu1 %v25371_v43  ;;  %v9472_v12 = vsub.f32 %v9470_v40, %v9471_v51  ;;  %v9494_v24 = vand.u32 4294901760, %v9493_v20  ;;  %v22494_v20 = vpack.c.bf16 %v8985_v8, %v8978_v48 }
 0x8d2   : > { %v8967_v9 = vand.u32 4294901760, %v25380_v11  ;;  %v9500_v41 = vsub.f32 %v9498_v17, %v9499_v10  ;;  %v10430_v1 = vpop.permute.xlu0 %10429 }
 0x8d3   : > { %v9473_v44 = vand.u32 4294901760, %v9472_v12  ;;  %v9910_v13 = vpop.permute.xlu1 %9909 }
 0x8d4   : > { %v8968_v15 = vsub.f32 %v25380_v11, %v8967_v9  ;;  %v9501_v25 = vand.u32 4294901760, %v9500_v41  ;;  %v9919_v41 = vsel %vm1440_vm1, %v9912_v57, 0 }
 0x8d5   : > { %21264 = vmatprep.mubr.f32.mxu1 %v9473_v44  ;;  %v9924_v8 = vand.u32 4294901760, %v9919_v41 }
 0x8d6   : > { %21265 = vmatmul.mubr.f32.vlgmr.msra.gmra.mrb[24].mxu1 %v9483_v60  ;;  %v8969_v30 = vand.u32 4294901760, %v8968_v15  ;;  %v22506_v38 = vpack.c.bf16 %v9501_v25, %v9494_v24  ;;  %v10426_v17 = vpop.permute.xlu0 %10425 }
 0x8d7   : > { %21271 = vmatprep.mubr.f32.mxu1 %v25359_v32  ;;  %v10432_v14 = vpop.permute.xlu1 %10431  ;;  %v10433_v12 = vsel %vm1440_vm1, %v10426_v17, 0  ;;  %v25436_v24 = vsub.f32 %v9919_v41, %v9924_v8 }
 0x8d8   : > { %21223 = vmatmul.mubr.f32.vlgmr.msra.gmra.mrb[20].mxu0 %v8969_v30  ;;  %22507 = vmatprep.subr.bf16.mxu1 %v22506_v38  ;;  %v25414_v44 = vand.u32 4294901760, %v10433_v12 }
 0x8d9   : > { %22485 = vmatpush3.bf16.msra.mxu0 %v22482_v53  ;;  %21229 = vmatprep.mubr.f32.mxu0 %v25323_v39  ;;  %v22518_v53 = vpack.c.bf16 %v9499_v10, %v9492_v0  ;;  %v10437_v0 = vsel %vm1440_vm1, %v10430_v1, 0  ;;  %v10013_v33 = vand.u32 4294901760, %v25436_v24 }
 0x8da   : > { %22487 = vmatprep.subr.bf16.mxu0 %v22486_v49  ;;  %22509 = vmatpush3.bf16.msra.mxu1 %v22506_v38  ;;  %v10442_v48 = vand.u32 4294901760, %v10437_v0  ;;  %v25424_v57 = vsub.f32 %v10433_v12, %v25414_v44 }
 0x8db   : > { %22511 = vmatprep.subr.bf16.mxu1 %v22510_v31  ;;  %v10428_v60 = vpop.permute.xlu1 %10427 }
 0x8dc   : > { %v25429_v15 = vsub.f32 %v10437_v0, %v10442_v48 }
 0x8de   : > { %21272 = vmatmul.mubr.f32.vlgmr.msra.gmra.mrb[24].mxu1 %v25340_v16  ;;  %v10531_v38 = vand.u32 4294901760, %v25429_v15 }
 0x8df   : > { %22513 = vmatpush3.bf16.msra.mxu1 %v22510_v31  ;;  %21278 = vmatprep.mubr.f32.mxu1 %v9470_v40  ;;  %v10439_v40 = vsel %vm1440_vm1, %v10432_v14, 0 }
 0x8e0   : > { %22515 = vmatprep.subr.bf16.mxu1 %v25371_v43  ;;  %21230 = vmatmul.mubr.f32.vlgmr.msra.gmra.mrb[20].mxu0 %v25373_v29  ;;  %v10445_v10 = vand.u32 4294901760, %v10439_v40 }
 0x8e1   : > { %22489 = vmatpush3.bf16.msra.mxu0 %v22486_v49  ;;  %21236 = vmatprep.mubr.f32.mxu0 %v25329_v61  ;;  %v25418_v61 = vand.u32 4294901760, %v9915_v7 }
 0x8e2   : > { %22491 = vmatprep.subr.bf16.mxu0 %v25334_v54  ;;  %v25448_v31 = vpack.c.bf16 %v10445_v10, %v10442_v48 }
 0x8e3   : > { %v25439_v25 = vsub.f32 %v9915_v7, %v25418_v61 }
 0x8e5   : > { %v9992_v14 = vand.u32 4294901760, %v25439_v25 }
 0x8e6   : > { %21279 = vmatmul.mubr.f32.vlgmr.msra.gmra.mrb[24].mxu1 %v25363_v4 }
 0x8e7   : > { %22517 = vmatpush3.bf16.msra.mxu1 %v25371_v43  ;;  %21285 = vmatprep.mubr.f32.mxu1 %v9471_v51  ;;  %v9921_v51 = vsel %vm1440_vm1, %v9914_v37, 0 }
 0x8e8   : > { %22519 = vmatprep.subr.bf16.mxu1 %v22518_v53  ;;  %21237 = vmatmul.mubr.f32.vlgmr.msra.gmra.mrb[20].mxu0 %v25380_v11  ;;  %v9927_v21 = vand.u32 4294901760, %v9921_v51  ;;  %v10510_v11 = vand.u32 4294901760, %v25424_v57 }
 0x8e9   : > { %22493 = vmatpush3.bf16.msra.mxu0 %v25334_v54  ;;  %21243 = vmatprep.mubr.f32.mxu0 %v8957_v6  ;;  %v25420_v6 = vsub.f32 %v10439_v40, %v10445_v10 }
 0x8ea   : > { %22495 = vmatprep.subr.bf16.mxu0 %v22494_v20  ;;  %v25431_v4 = vsub.f32 %v9921_v51, %v9927_v21  ;;  %v25460_v17 = vpack.c.bf16 %v9927_v21, %v9924_v8 }
 0x8eb   : > { %v10538_v30 = vand.u32 4294901760, %v25420_v6 }
 0x8ec   : > { %v10020_v49 = vand.u32 4294901760, %v25431_v4 }
 0x8ee   : > { %21286 = vmatmul.mubr.f32.vlgmr.msra.gmra.mrb[24].mxu1 %v9481_v52  ;;  %v10435_v52 = vsel %vm1440_vm1, %v10428_v60, 0  ;;  %v10021_v40 = vsub.f32 %v25431_v4, %v10020_v49 }
 0x8ef   : > { %22521 = vmatpush3.bf16.msra.mxu1 %v22518_v53  ;;  %21292 = vmatprep.mubr.f32.mxu1 %v25359_v32  ;;  %v25446_v37 = vand.u32 4294901760, %v10435_v52  ;;  %v10511_v53 = vsub.f32 %v25424_v57, %v10510_v11 }
 0x8f0   : > { %22523 = vmatprep.subr.bf16.mxu1 %v25371_v43  ;;  %21244 = vmatmul.mubr.f32.vlgmr.msra.gmra.mrb[20].mxu0 %v8967_v9  ;;  %v9917_v9 = vsel %vm1440_vm1, %v9910_v13, 0  ;;  %v10539_v13 = vsub.f32 %v25420_v6, %v10538_v30  ;;  %v10022_v41 = vand.u32 4294901760, %v10021_v40  ;;  %v22534_v40 = vpack.c.bf16 %v25431_v4, %v25436_v24 }
 0x8f1   : > { %22497 = vmatpush3.bf16.msra.mxu0 %v22494_v20  ;;  %21250 = vmatprep.mubr.f32.mxu0 %v25323_v39  ;;  %v25452_v1 = vand.u32 4294901760, %v9917_v9  ;;  %v10512_v51 = vand.u32 4294901760, %v10511_v53 }
 0x8f2   : > { %22499 = vmatprep.subr.bf16.mxu0 %v25334_v54  ;;  %v10540_v12 = vand.u32 4294901760, %v10539_v13  ;;  %v10948_v13 = vpop.permute.xlu0 %10947 }
 0x8f3   : > { %v25480_v20 = vsub.f32 %v9917_v9, %v25452_v1 }
 0x8f5   : > { %v10002_v7 = vand.u32 4294901760, %v25480_v20 }
 0x8f6   : > { %21293 = vmatmul.mubr.f32.vlgmr.msra.gmra.mrb[24].mxu1 %v25340_v16 }
 0x8f7   : > { %22525 = vmatpush3.bf16.msra.mxu1 %v25371_v43  ;;  %21299 = vmatprep.mubr.f32.mxu1 %v25359_v32  ;;  %v25468_v43 = vsub.f32 %v10435_v52, %v25446_v37  ;;  %v10532_v32 = vsub.f32 %v25429_v15, %v10531_v38 }
 0x8f8   : > { %22551 = vmatprep.subr.bf16.mxu1 %v25448_v31  ;;  %21251 = vmatmul.mubr.f32.vlgmr.msra.gmra.mrb[20].mxu0 %v25373_v29 }
 0x8f9   : > { %22501 = vmatpush3.bf16.msra.mxu0 %v25334_v54  ;;  %21257 = vmatprep.mubr.f32.mxu0 %v25323_v39  ;;  %v9993_v54 = vsub.f32 %v25439_v25, %v9992_v14  ;;  %v10014_v39 = vsub.f32 %v25436_v24, %v10013_v33  ;;  %v10520_v0 = vand.u32 4294901760, %v25468_v43  ;;  %v10533_v10 = vand.u32 4294901760, %v10532_v32  ;;  %v10950_v32 = vpop.permute.xlu1 %10949 }
 0x8fa   : > { %22527 = vmatprep.subr.bf16.mxu0 %v25460_v17 }
 0x8fb   : > { %v22554_v48 = vpack.c.bf16 %v10540_v12, %v10533_v10  ;;  %v9994_v21 = vand.u32 4294901760, %v9993_v54  ;;  %v10015_v8 = vand.u32 4294901760, %v10014_v39  ;;  %v10521_v60 = vsub.f32 %v25468_v43, %v10520_v0  ;;  %v10944_v12 = vpop.permute.xlu0 %10943 }
 0x8fc   : > { %v22566_v10 = vpack.c.bf16 %v10538_v30, %v10531_v38 }
 0x8fd   : > { %v22530_v52 = vpack.c.bf16 %v10022_v41, %v10015_v8  ;;  %v10522_v9 = vand.u32 4294901760, %v10521_v60  ;;  %v10946_v54 = vpop.permute.xlu1 %10945  ;;  %v10951_v8 = vsel %vm1440_vm1, %v10944_v12, 0 }
 0x8fe   : > { %21300 = vmatmul.mubr.f32.vlgmr.msra.gmra.mrb[24].mxu1 %v25340_v16  ;;  %v10003_v16 = vsub.f32 %v25480_v20, %v10002_v7 }
 0x8ff   : > { %21348 = vmatprep.mubr.f32.mxu1 %v10512_v51  ;;  %v11466_v39 = vpop.permute.xlu0 %11465 }
 0x900   : > { %22553 = vmatpush3.bf16.xpose.msra.mxu1 %v25448_v31  ;;  %21258 = vmatmul.mubr.f32.vlgmr.msra.gmra.mrb[20].mxu0 %v25373_v29  ;;  %v22558_v29 = vpack.c.bf16 %v25420_v6, %v25429_v15  ;;  %v10004_v53 = vand.u32 4294901760, %v10003_v16  ;;  %v22542_v15 = vpack.c.bf16 %v10020_v49, %v10013_v33  ;;  %v10957_v6 = vsel %vm1440_vm1, %v10950_v32, 0 }
 0x901   : > { %22555 = vmatprep.subr.bf16.mxu1 %v22554_v48  ;;  %21306 = vmatprep.mubr.f32.mxu0 %v9994_v21  ;;  %v11468_v51 = vpop.permute.xlu1 %11467  ;;  %v11473_v21 = vsel %vm1440_vm1, %v11466_v39, 0  ;;  %v10963_v24 = vand.u32 4294901760, %v10957_v6 }
 0x902   : > { %22529 = vmatpush3.bf16.xpose.msra.mxu0 %v25460_v17  ;;  %v11478_v38 = vand.u32 4294901760, %v11473_v21 }
 0x903   : > { %22531 = vmatprep.subr.bf16.mxu0 %v22530_v52  ;;  %v11462_v41 = vpop.permute.xlu0 %11461 }
 0x905   : > { %v11464_v33 = vpop.permute.xlu1 %11463 }
 0x907   : > { %21349 = vmatmul.mubr.f32.vlgmr.msra.gmra.mrb[26].mxu1 %v10522_v9 }
 0x908   : > { %22557 = vmatpush3.bf16.xpose.msra.mxu1 %v22554_v48  ;;  %21355 = vmatprep.mubr.f32.mxu1 %v25414_v44  ;;  %v11475_v48 = vsel %vm1440_vm1, %v11468_v51, 0 }
 0x909   : > { %22559 = vmatprep.subr.bf16.mxu1 %v22558_v29  ;;  %21307 = vmatmul.mubr.f32.vlgmr.msra.gmra.mrb[22].mxu0 %v10004_v53  ;;  %v11481_v30 = vand.u32 4294901760, %v11475_v48 }
 0x90a   : > { %22533 = vmatpush3.bf16.xpose.msra.mxu0 %v22530_v52  ;;  %21313 = vmatprep.mubr.f32.mxu0 %v25418_v61  ;;  %v25545_v52 = vsub.f32 %v10957_v6, %v10963_v24 }
 0x90b   : > { %22535 = vmatprep.subr.bf16.mxu0 %v22534_v40  ;;  %v25536_v49 = vsub.f32 %v11475_v48, %v11481_v30  ;;  %v25571_v39 = vpack.c.bf16 %v11481_v30, %v11478_v38 }
 0x90d   : > { %v11574_v9 = vand.u32 4294901760, %v25536_v49 }
 0x90f   : > { %21356 = vmatmul.mubr.f32.vlgmr.msra.gmra.mrb[26].mxu1 %v25446_v37  ;;  %v11575_v51 = vsub.f32 %v25536_v49, %v11574_v9 }
 0x910   : > { %22561 = vmatpush3.bf16.xpose.msra.mxu1 %v22558_v29  ;;  %21362 = vmatprep.mubr.f32.mxu1 %v25424_v57  ;;  %v11469_v57 = vsel %vm1440_vm1, %v11462_v41, 0  ;;  %v11056_v29 = vand.u32 4294901760, %v25545_v52 }
 0x911   : > { %22563 = vmatprep.subr.bf16.mxu1 %v25448_v31  ;;  %21314 = vmatmul.mubr.f32.vlgmr.msra.gmra.mrb[22].mxu0 %v25452_v1  ;;  %v25534_v60 = vand.u32 4294901760, %v11469_v57  ;;  %v11576_v6 = vand.u32 4294901760, %v11575_v51 }
 0x912   : > { %22537 = vmatpush3.bf16.xpose.msra.mxu0 %v22534_v40  ;;  %21320 = vmatprep.mubr.f32.mxu0 %v25439_v25  ;;  %v25540_v25 = vand.u32 4294901760, %v10951_v8  ;;  %v11057_v48 = vsub.f32 %v25545_v52, %v11056_v29 }
 0x913   : > { %22539 = vmatprep.subr.bf16.mxu0 %v25460_v17  ;;  %v25551_v16 = vsub.f32 %v11469_v57, %v25534_v60 }
 0x915   : > { %v11546_v32 = vand.u32 4294901760, %v25551_v16 }
 0x917   : > { %21363 = vmatmul.mubr.f32.vlgmr.msra.gmra.mrb[26].mxu1 %v25468_v43  ;;  %v11471_v43 = vsel %vm1440_vm1, %v11464_v33, 0 }
 0x918   : > { %22565 = vmatpush3.bf16.xpose.msra.mxu1 %v25448_v31  ;;  %21369 = vmatprep.mubr.f32.mxu1 %v10510_v11  ;;  %v10955_v11 = vsel %vm1440_vm1, %v10948_v13, 0  ;;  %v25560_v13 = vsub.f32 %v10951_v8, %v25540_v25  ;;  %v25565_v53 = vand.u32 4294901760, %v11471_v43 }
 0x919   : > { %22567 = vmatprep.subr.bf16.mxu1 %v22566_v10  ;;  %21321 = vmatmul.mubr.f32.vlgmr.msra.gmra.mrb[22].mxu0 %v25480_v20  ;;  %v10960_v4 = vand.u32 4294901760, %v10955_v11 }
 0x91a   : > { %22541 = vmatpush3.bf16.xpose.msra.mxu0 %v25460_v17  ;;  %21327 = vmatprep.mubr.f32.mxu0 %v9992_v14  ;;  %v25542_v14 = vsub.f32 %v11473_v21, %v11478_v38  ;;  %v11555_v21 = vsub.f32 %v11471_v43, %v25565_v53 }
 0x91b   : > { %22543 = vmatprep.subr.bf16.mxu0 %v22542_v15  ;;  %v25583_v41 = vpack.c.bf16 %v10963_v24, %v10960_v4 }
 0x91c   : > { %v11567_v20 = vand.u32 4294901760, %v25542_v14 }
 0x91f   : > { %21370 = vmatmul.mubr.f32.vlgmr.msra.gmra.mrb[26].mxu1 %v10520_v0  ;;  %v25555_v0 = vsub.f32 %v10955_v11, %v10960_v4 }
 0x920   : > { %22569 = vmatpush3.bf16.xpose.msra.mxu1 %v22566_v10  ;;  %21376 = vmatprep.mubr.f32.mxu1 %v25414_v44  ;;  %v11568_v10 = vsub.f32 %v25542_v14, %v11567_v20 }
 0x921   : > { %22571 = vmatprep.subr.bf16.mxu1 %v25448_v31  ;;  %21328 = vmatmul.mubr.f32.vlgmr.msra.gmra.mrb[22].mxu0 %v10002_v7  ;;  %v10953_v7 = vsel %vm1440_vm1, %v10946_v54, 0  ;;  %v11049_v40 = vand.u32 4294901760, %v25555_v0  ;;  %v11028_v54 = vand.u32 4294901760, %v25560_v13 }
 0x922   : > { %22545 = vmatpush3.bf16.xpose.msra.mxu0 %v22542_v15  ;;  %21334 = vmatprep.mubr.f32.mxu0 %v25418_v61  ;;  %v25569_v12 = vand.u32 4294901760, %v10953_v7  ;;  %v11569_v30 = vand.u32 4294901760, %v11568_v10 }
 0x923   : > { %22547 = vmatprep.subr.bf16.mxu0 %v25460_v17  ;;  %v11029_v57 = vsub.f32 %v25560_v13, %v11028_v54 }
 0x924   : > { %v11037_v15 = vsub.f32 %v10953_v7, %v25569_v12  ;;  %v22602_v8 = vpack.c.bf16 %v11576_v6, %v11569_v30 }
 0x925   : > { %v11030_v4 = vand.u32 4294901760, %v11029_v57 }
 0x926   : > { %v11038_v38 = vand.u32 4294901760, %v11037_v15 }
 0x927   : > { %21377 = vmatmul.mubr.f32.vlgmr.msra.gmra.mrb[26].mxu1 %v25446_v37 }
 0x928   : > { %22573 = vmatpush3.bf16.xpose.msra.mxu1 %v25448_v31  ;;  %21383 = vmatprep.mubr.f32.mxu1 %v25414_v44  ;;  %v11547_v44 = vsub.f32 %v25551_v16, %v11546_v32  ;;  %v11050_v31 = vsub.f32 %v25555_v0, %v11049_v40  ;;  %v11039_v7 = vsub.f32 %v11037_v15, %v11038_v38 }
 0x929   : > { %22599 = vmatprep.subr.bf16.mxu1 %v25571_v39  ;;  %21335 = vmatmul.mubr.f32.vlgmr.msra.gmra.mrb[22].mxu0 %v25452_v1 }
 0x92a   : > { %22549 = vmatpush3.bf16.xpose.msra.mxu0 %v25460_v17  ;;  %21341 = vmatprep.mubr.f32.mxu0 %v25418_v61  ;;  %v11556_v17 = vand.u32 4294901760, %v11555_v21  ;;  %v11058_v61 = vand.u32 4294901760, %v11057_v48  ;;  %v11548_v11 = vand.u32 4294901760, %v11547_v44  ;;  %v11051_v24 = vand.u32 4294901760, %v11050_v31  ;;  %v23680_v31 = vld [vmem:[#allocation10] sm:$0xff] }
 0x92b   : > { %22575 = vmatprep.subr.bf16.mxu0 %v25583_v41  ;;  %v11040_v10 = vand.u32 4294901760, %v11039_v7  ;;  %v22614_v48 = vpack.c.bf16 %v11574_v9, %v11567_v20  ;;  %v22590_v44 = vpack.c.bf16 %v11056_v29, %v11049_v40  ;;  %v9905_v20 = vld [vmem:[#allocation8 + $0x20] sm:$0xff] }
 0x92c   : > { %v11557_v33 = vsub.f32 %v11555_v21, %v11556_v17  ;;  %v22578_v43 = vpack.c.bf16 %v11058_v61, %v11051_v24 }
 0x92e   : > { %v11558_v51 = vand.u32 4294901760, %v11557_v33 }
 0x92f   : > { %21384 = vmatmul.mubr.f32.vlgmr.msra.gmra.mrb[26].mxu1 %v25446_v37  ;;  %v22606_v37 = vpack.c.bf16 %v25536_v49, %v25542_v14 }
 0x930   : > { %22601 = vmatpush3.bf16.xpose.msra.mxu1 %v25571_v39  ;;  %21432 = vmatprep.mubr.f32.mxu1 %v11548_v11  ;;  %v23682_v11 = vld [vmem:[#allocation10 + $0x18] sm:$0xff] }
 0x931   : > { %22603 = vmatprep.subr.bf16.mxu1 %v22602_v8  ;;  %21342 = vmatmul.mubr.f32.vlgmr.msra.gmra.mrb[22].mxu0 %v25452_v1  ;;  %v22582_v1 = vpack.c.bf16 %v25545_v52, %v25555_v0 }
 0x932   : > { %22577 = vmatpush3.bf16.xpose.msra.mxu0 %v25583_v41  ;;  %21390 = vmatprep.mubr.f32.mxu0 %v11030_v4 }
 0x933   : > { %22579 = vmatprep.subr.bf16.mxu0 %v22578_v43 }
 0x937   : > { %21433 = vmatmul.mubr.f32.vlgmr.msra.gmra.mrb[28].mxu1 %v11558_v51 }
 0x938   : > { %22605 = vmatpush3.bf16.xpose.msra.mxu1 %v22602_v8  ;;  %21439 = vmatprep.mubr.f32.mxu1 %v25534_v60 }
 0x939   : > { %22607 = vmatprep.subr.bf16.mxu1 %v22606_v37  ;;  %21391 = vmatmul.mubr.f32.vlgmr.msra.gmra.mrb[24].mxu0 %v11040_v10 }
 0x93a   : > { %22581 = vmatpush3.bf16.xpose.msra.mxu0 %v22578_v43  ;;  %21397 = vmatprep.mubr.f32.mxu0 %v25540_v25 }
 0x93b   : > { %22583 = vmatprep.subr.bf16.mxu0 %v22582_v1 }
 0x93f   : > { %21440 = vmatmul.mubr.f32.vlgmr.msra.gmra.mrb[28].mxu1 %v25565_v53 }
 0x940   : > { %22609 = vmatpush3.bf16.xpose.msra.mxu1 %v22606_v37  ;;  %21446 = vmatprep.mubr.f32.mxu1 %v25551_v16 }
 0x941   : > { %22611 = vmatprep.subr.bf16.mxu1 %v25571_v39  ;;  %21398 = vmatmul.mubr.f32.vlgmr.msra.gmra.mrb[24].mxu0 %v25569_v12 }
 0x942   : > { %22585 = vmatpush3.bf16.xpose.msra.mxu0 %v22582_v1  ;;  %21404 = vmatprep.mubr.f32.mxu0 %v25560_v13 }
 0x943   : > { %22587 = vmatprep.subr.bf16.mxu0 %v25583_v41 }
 0x947   : > { %21447 = vmatmul.mubr.f32.vlgmr.msra.gmra.mrb[28].mxu1 %v11555_v21 }
 0x948   : > { %22613 = vmatpush3.bf16.xpose.msra.mxu1 %v25571_v39  ;;  %21453 = vmatprep.mubr.f32.mxu1 %v11546_v32 }
 0x949   : > { %22615 = vmatprep.subr.bf16.mxu1 %v22614_v48  ;;  %21405 = vmatmul.mubr.f32.vlgmr.msra.gmra.mrb[24].mxu0 %v11037_v15 }
 0x94a   : > { %22589 = vmatpush3.bf16.xpose.msra.mxu0 %v25583_v41  ;;  %21411 = vmatprep.mubr.f32.mxu0 %v11028_v54 }
 0x94b   : > { %22591 = vmatprep.subr.bf16.mxu0 %v22590_v44 }
 0x94f   : > { %21454 = vmatmul.mubr.f32.vlgmr.msra.gmra.mrb[28].mxu1 %v11556_v17  ;;  %v23681_v17 = vld [vmem:[#allocation10 + $0x10] sm:$0xff] }
 0x950   : > { %22617 = vmatpush3.bf16.xpose.msra.mxu1 %v22614_v48  ;;  %21460 = vmatprep.mubr.f32.mxu1 %v25534_v60  ;;  %v23683_v48 = vld [vmem:[#allocation10 + $0x28] sm:$0xff] }
 0x951   : > { %22619 = vmatprep.subr.bf16.mxu1 %v25571_v39  ;;  %21412 = vmatmul.mubr.f32.vlgmr.msra.gmra.mrb[24].mxu0 %v11038_v38 }
 0x952   : > { %22593 = vmatpush3.bf16.xpose.msra.mxu0 %v22590_v44  ;;  %21418 = vmatprep.mubr.f32.mxu0 %v25540_v25 }
 0x953   : > { %22595 = vmatprep.subr.bf16.mxu0 %v25583_v41 }
 0x957   : > { %21461 = vmatmul.mubr.f32.vlgmr.msra.gmra.mrb[28].mxu1 %v25565_v53 }
 0x958   : > { %22621 = vmatpush3.bf16.xpose.msra.mxu1 %v25571_v39  ;;  %21467 = vmatprep.mubr.f32.mxu1 %v25534_v60 }
 0x959   : > { %21419 = vmatmul.mubr.f32.vlgmr.msra.gmra.mrb[24].mxu0 %v25569_v12 }
 0x95a   : > { %22597 = vmatpush3.bf16.xpose.msra.mxu0 %v25583_v41  ;;  %21425 = vmatprep.mubr.f32.mxu0 %v25540_v25  ;;  %v23679_v41 = vld [vmem:[#allocation10 + $0x8] sm:$0xff] }
 0x95f   : > { %21468 = vmatmul.mubr.f32.vlgmr.msra.gmra.mrb[28].mxu1 %v25565_v53  ;;  %v9906_v53 = vld [vmem:[#allocation8 + $0x28] sm:$0xff] }
 0x961   : > { %21426 = vmatmul.mubr.f32.vlgmr.msra.gmra.mrb[24].mxu0 %v25569_v12 }
 0x98f   : > { %v25646_v49 = vpop.f32.mrb[18].mxu0 }
 0x990   : > { %v25648_v14 = vpop.f32.mrb[19].mxu0 }
 0x997   : > { %v25650_v52 = vpop.f32.mrb[22].mxu1 }
 0x998   : > { %v25652_v16 = vpop.f32.mrb[23].mxu1 }
 0x9d1   : > { %v25654_v0 = vpop.f32.mrb[24].mxu1 }
 0x9d2   : > { %v25656_v60 = vpop.f32.mrb[25].mxu1 }
 0x9d3   : > { %v25658_v9 = vpop.f32.mrb[20].mxu0 }
 0x9d4   : > { %v25660_v13 = vpop.f32.mrb[21].mxu0 }
 0xa02   : > { %v21385_v25 = vpop.f32.mrb[26].mxu1 }
 0xa03   : > { %v10933_v29 = vpop.f32.mrb[27].mxu1  ;;  %v22992_v57 = vadd.f32 %v21385_v25, %v9906_v53  ;;  %v23684_v25 = vld [vmem:[#allocation10 + $0x20] sm:$0xff] }
 0xa04   : > { %v21343_v32 = vpop.f32.mrb[22].mxu0  ;;  %v22993_v39 = vadd.f32 %v10933_v29, %v9905_v20 }
 0xa05   : > { %v22990_v40 = vadd.f32 %v21343_v32, %v9906_v53  ;;  %v10415_v12 = vpop.f32.mrb[23].mxu0  ;;  %v11982_v38 = vadd.f32 %v23682_v11, %v22992_v57  ;;  %v23685_v32 = vld [vmem:[#allocation10 + $0x38] sm:$0xff] }
 0xa06   : > { %v22991_v54 = vadd.f32 %v10415_v12, %v9905_v20  ;;  %v11981_v30 = vadd.f32 %v23681_v17, %v22993_v39  ;;  %v23686_v39 = vld [vmem:[#allocation10 + $0x30] sm:$0xff] }
 0xa07   : > { %v11980_v21 = vadd.f32 %v23679_v41, %v22990_v40  ;;  %v11996_v24 = vsel %vm3515_vm2, %v11982_v38, -inf }
 0xa08   : > { %v11979_v15 = vadd.f32 %v23680_v31, %v22991_v54  ;;  %v11993_v8 = vsel %vm3515_vm2, %v11981_v30, -inf }
 0xa09   : > { %v11990_v6 = vsel %vm3515_vm2, %v11980_v21, -inf }
 0xa0a   : > { %11991 = vmax.xlane.f32.xlu1 %v11990_v6  ;;  %v11987_v61 = vsel %vm3515_vm2, %v11979_v15, -inf }
 0xa0b   : > { %11988 = vmax.xlane.f32.xlu0 %v11987_v61 }
 0xa0f   : > { %11994 = vmax.xlane.f32.xlu0 %v11993_v8 }
 0xa13   : > { %11997 = vmax.xlane.f32.xlu0 %v11996_v24 }
 0xa32   : > { %v21469_v4 = vpop.f32.mrb[28].mxu1 }
 0xa33   : > { %v11969_v33 = vpop.f32.mrb[29].mxu1  ;;  %v22996_v7 = vadd.f32 %v21469_v4, %v9906_v53 }
 0xa34   : > { %v21427_v43 = vpop.f32.mrb[24].mxu0  ;;  %v22997_v37 = vadd.f32 %v11969_v33, %v9905_v20 }
 0xa35   : > { %v22994_v51 = vadd.f32 %v21427_v43, %v9906_v53  ;;  %v11451_v10 = vpop.f32.mrb[25].mxu0  ;;  %v11986_v40 = vadd.f32 %v23685_v32, %v22996_v7 }
 0xa36   : > { %v22995_v1 = vadd.f32 %v11451_v10, %v9905_v20  ;;  %v11985_v54 = vadd.f32 %v23686_v39, %v22997_v37 }
 0xa37   : > { %v11984_v44 = vadd.f32 %v23683_v48, %v22994_v51  ;;  %v12008_v31 = vsel %vm3515_vm2, %v11986_v40, -inf }
 0xa38   : > { %v11983_v29 = vadd.f32 %v23684_v25, %v22995_v1  ;;  %v12005_v53 = vsel %vm3515_vm2, %v11985_v54, -inf }
 0xa39   : > { %v12002_v12 = vsel %vm3515_vm2, %v11984_v44, -inf }
 0xa3a   : > { %12003 = vmax.xlane.f32.xlu1 %v12002_v12  ;;  %v11999_v41 = vsel %vm3515_vm2, %v11983_v29, -inf }
 0xa3b   : > { %12000 = vmax.xlane.f32.xlu0 %v11999_v41 }
 0xa3e   : > { %12009 = vmax.xlane.f32.xlu1 %v12008_v31 }
 0xa3f   : > { %12006 = vmax.xlane.f32.xlu0 %v12005_v53 }
 0xa97   : > { %v11992_v20 = vpop.xlane.xlu1 %11991 }
 0xa98   : > { %v12012_v6 = vsub.f32 %v11980_v21, %v11992_v20  ;;  %v11989_v57 = vpop.xlane.xlu0 %11988 }
 0xa99   : > { %v12011_v17 = vsub.f32 %v11979_v15, %v11989_v57 }
 0xa9a   : > { %v12021_v61 = vmul.f32 1.442695, %v12012_v6 }
 0xa9b   : > { %v12019_v11 = vmul.f32 1.442695, %v12011_v17 }
 0xa9c   : > { %23607 = vpow2.f32 %v12021_v61  ;;  %v11995_v8 = vpop.xlane.xlu0 %11994 }
 0xa9d   : > { %23609 = vpow2.f32 %v12019_v11  ;;  %v12013_v24 = vsub.f32 %v11981_v30, %v11995_v8 }
 0xa9f   : > { %v12023_v4 = vmul.f32 1.442695, %v12013_v24 }
 0xaa0   : > { %v11998_v33 = vpop.xlane.xlu0 %11997 }
 0xaa1   : > { %23611 = vpow2.f32 %v12023_v4  ;;  %v12014_v43 = vsub.f32 %v11982_v38, %v11998_v33 }
 0xaa3   : > { %v12025_v7 = vmul.f32 1.442695, %v12014_v43 }
 0xaa5   : > { %23613 = vpow2.f32 %v12025_v7 }
 0xaa6   : > { %v25670_v51 = vpop.eup %23607 }
 0xaa7   : > { %v25672_v10 = vpop.eup %23609  ;;  %v12038_v21 = vsel %vm3515_vm2, %v25670_v51, 0.0 }
 0xaa8   : > { %12039 = vadd.xlane.f32.xlu1 %v12038_v21  ;;  %v12035_v15 = vsel %vm3515_vm2, %v25672_v10, 0.0 }
 0xaa9   : > { %12036 = vadd.xlane.f32.xlu0 %v12035_v15 }
 0xaab   : > { %v25678_v37 = vpop.eup %23611 }
 0xaac   : > { %v12041_v30 = vsel %vm3515_vm2, %v25678_v37, 0.0 }
 0xaad   : > { %12042 = vadd.xlane.f32.xlu0 %v12041_v30 }
 0xaaf   : > { %v25682_v38 = vpop.eup %23613 }
 0xab0   : > { %v12044_v1 = vsel %vm3515_vm2, %v25682_v38, 0.0 }
 0xab1   : > { %12045 = vadd.xlane.f32.xlu1 %v12044_v1 }
 0xac2   : > { %12086 = vrot.lane.b32.xlu1 %v24444_v22, %s23931_s30 }
 0xac3   : > { %12084 = vrot.lane.b32.xlu0 %v24446_v26, %s23931_s30 }
 0xac6   : > { %12598 = vrot.lane.b32.xlu1 %v24457_v36, %s23931_s30 }
 0xac7   : > { %v12004_v48 = vpop.xlane.xlu1 %12003 }
 0xac8   : > { %v12001_v25 = vpop.xlane.xlu0 %12000  ;;  %v12016_v6 = vsub.f32 %v11984_v44, %v12004_v48 }
 0xac9   : > { %v12015_v32 = vsub.f32 %v11983_v29, %v12001_v25 }
 0xaca   : > { %12600 = vrot.lane.b32.xlu1 %v24455_v35, %s23931_s30  ;;  %v12029_v17 = vmul.f32 1.442695, %v12016_v6 }
 0xacb   : > { %v12010_v12 = vpop.xlane.xlu1 %12009  ;;  %v12027_v39 = vmul.f32 1.442695, %v12015_v32 }
 0xacc   : > { %v12018_v41 = vsub.f32 %v11986_v40, %v12010_v12  ;;  %v12007_v31 = vpop.xlane.xlu0 %12006 }
 0xacd   : > { %23615 = vpow2.f32 %v12027_v39  ;;  %v12017_v20 = vsub.f32 %v11985_v54, %v12007_v31 }
 0xace   : > { %v12033_v53 = vmul.f32 1.442695, %v12018_v41 }
 0xacf   : > { %v12031_v57 = vmul.f32 1.442695, %v12017_v20 }
 0xad0   : > { %23617 = vpow2.f32 %v12033_v53 }
 0xad1   : > { %23619 = vpow2.f32 %v12031_v57 }
 0xad2   : > { %23621 = vpow2.f32 %v12029_v17 }
 0xad7   : > { %v25694_v61 = vpop.eup %23615 }
 0xad8   : > { %v12047_v11 = vsel %vm3515_vm2, %v25694_v61, 0.0 }
 0xada   : > { %v25698_v8 = vpop.eup %23617 }
 0xadb   : > { %v12056_v29 = vsel %vm3515_vm2, %v25698_v8, 0.0  ;;  %v25702_v40 = vpop.eup %23619 }
 0xadc   : > { %v12053_v44 = vsel %vm3515_vm2, %v25702_v40, 0.0  ;;  %v25706_v54 = vpop.eup %23621 }
 0xadd   : > { %v12050_v24 = vsel %vm3515_vm2, %v25706_v54, 0.0 }
 0xae2   : > { %12048 = vadd.xlane.f32.xlu0 %v12047_v11 }
 0xae6   : > { %12057 = vadd.xlane.f32.xlu0 %v12056_v29 }
 0xaea   : > { %12054 = vadd.xlane.f32.xlu0 %v12053_v44 }
 0xaee   : > { %12051 = vadd.xlane.f32.xlu1 %v12050_v24 }
 0xaff   : > { %13114 = vrot.lane.b32.xlu1 %v24465_v45, %s23931_s30 }
 0xb00   : > { %13112 = vrot.lane.b32.xlu0 %v24470_v47, %s23931_s30 }
 0xb03   : > { %13626 = vrot.lane.b32.xlu1 %v24485_v59, %s23931_s30 }
 0xb04   : > { %14147 = vrot.lane.b32.xlu0 %v24446_v26, %s23932_s11 }
 0xb07   : > { %13628 = vrot.lane.b32.xlu1 %v24480_v56, %s23931_s30 }
 0xb08   : > { %14143 = vrot.lane.b32.xlu0 %v24453_v34, %s23933_s23 }
 0xb0b   : > { %14149 = vrot.lane.b32.xlu1 %v24444_v22, %s23932_s11 }
 0xb0c   : > { %14665 = vrot.lane.b32.xlu0 %v24457_v36, %s23932_s11 }
 0xb0f   : > { %14145 = vrot.lane.b32.xlu1 %v24505_v3, %s23933_s23 }
 0xb10   : > { %14661 = vrot.lane.b32.xlu0 %v24556_v58, %s23933_s23 }
 0xb13   : > { %14667 = vrot.lane.b32.xlu1 %v24455_v35, %s23932_s11 }
 0xb14   : > { %15183 = vrot.lane.b32.xlu0 %v24470_v47, %s23932_s11 }
 0xb17   : > { %14663 = vrot.lane.b32.xlu1 %v24571_v46, %s23933_s23 }
 0xb18   : > { %15179 = vrot.lane.b32.xlu0 %v24478_v55, %s23933_s23 }
 0xb1b   : > { %15185 = vrot.lane.b32.xlu1 %v24465_v45, %s23932_s11 }
 0xb1c   : > { %15701 = vrot.lane.b32.xlu0 %v24485_v59, %s23932_s11 }
 0xb1f   : > { %15181 = vrot.lane.b32.xlu1 %v24517_v28, %s23933_s23 }
 0xb20   : > { %15697 = vrot.lane.b32.xlu0 %v24607_v63, %s23933_s23 }
 0xb23   : > { %15703 = vrot.lane.b32.xlu1 %v24480_v56, %s23932_s11  ;;  %s26775_s11 = sld [smem:[#allocation24_spill]] }
 0xb27   : > { %15699 = vrot.lane.b32.xlu1 %v24615_v50, %s23933_s23 }
 0xb29   : > { %s26667_s23 = scalar_lea.hbm %s26775_s11, %s26754_s27 }
 0xb35   : > { %v12040_v34 = vpop.xlane.xlu1 %12039 }
 0xb36   : > { %23623 = vrcp.f32 %v12040_v34  ;;  %v12037_v3 = vpop.xlane.xlu0 %12036 }
 0xb37   : > { %23625 = vrcp.f32 %v12037_v3 }
 0xb3a   : > { %v12043_v58 = vpop.xlane.xlu0 %12042 }
 0xb3b   : > { %23627 = vrcp.f32 %v12043_v58 }
 0xb3e   : > { %v12046_v55 = vpop.xlane.xlu1 %12045  ;;  %v12085_v46 = vpop.permute.xlu0 %12084 }
 0xb3f   : > { %23629 = vrcp.f32 %v12046_v55  ;;  %v12097_v4 = vand.u32 4294901760, %v12085_v46 }
 0xb40   : > { %v23624_v33 = vpop.eup %23623 }
 0xb41   : > { %v23626_v28 = vpop.eup %23625  ;;  %v12062_v63 = vmul.f32 %v23624_v33, %v25670_v51  ;;  %v25735_v43 = vsub.f32 %v12085_v46, %v12097_v4 }
 0xb42   : > { %v12060_v50 = vmul.f32 %v23626_v28, %v25672_v10  ;;  %v12087_v7 = vpop.permute.xlu1 %12086 }
 0xb43   : > { %19566 = vst.msk [vmem:[%s24704_s28 + $0x88] sm:$0xff] %vm3515_vm2, %v12062_v63  ;;  %v12100_v21 = vand.u32 4294901760, %v12087_v7  ;;  %v12094_v15 = vsel %vm3515_vm2, %v12062_v63, 0  ;;  %v12186_v30 = vand.u32 4294901760, %v25735_v43 }
 0xb44   : > { %19565 = vst.msk [vmem:[%s24704_s28 + $0x80] sm:$0xff] %vm3515_vm2, %v12060_v50  ;;  %v12091_v1 = vsel %vm3515_vm2, %v12060_v50, 0  ;;  %v25745_v48 = vand.u32 4294901760, %v12094_v15 }
 0xb45   : > { %v23628_v51 = vpop.eup %23627  ;;  %v25747_v25 = vpack.c.bf16 %v12100_v21, %v12097_v4  ;;  %v25749_v32 = vsub.f32 %v12087_v7, %v12100_v21  ;;  %v25751_v10 = vand.u32 4294901760, %v12091_v1  ;;  %v12187_v6 = vsub.f32 %v25735_v43, %v12186_v30 }
 0xb46   : > { %v12064_v12 = vmul.f32 %v23628_v51, %v25678_v37  ;;  %v12599_v39 = vpop.permute.xlu1 %12598  ;;  %v25755_v41 = vsub.f32 %v12094_v15, %v25745_v48 }
 0xb47   : > { %v12193_v31 = vand.u32 4294901760, %v25749_v32  ;;  %v12611_v53 = vand.u32 4294901760, %v12599_v39  ;;  %22623 = vmatprep.subr.bf16.mxu0 %v25747_v25  ;;  %v25760_v20 = vsub.f32 %v12091_v1, %v25751_v10  ;;  %v12188_v28 = vand.u32 4294901760, %v12187_v6 }
 0xb48   : > { %19567 = vst.msk [vmem:[%s24704_s28 + $0x90] sm:$0xff] %vm3515_vm2, %v12064_v12  ;;  %22625 = vmatpush3.bf16.msra.mxu0 %v25747_v25  ;;  %v12175_v37 = vand.u32 4294901760, %v25755_v41  ;;  %v12605_v57 = vsel %vm3515_vm2, %v12064_v12, 0  ;;  %v22630_v6 = vpack.c.bf16 %v25749_v32, %v25735_v43 }
 0xb49   : > { %v23630_v17 = vpop.eup %23629  ;;  %v12194_v11 = vsub.f32 %v25749_v32, %v12193_v31  ;;  %v25773_v29 = vsub.f32 %v12599_v39, %v12611_v53  ;;  %v12165_v44 = vand.u32 4294901760, %v25760_v20  ;;  %v25776_v24 = vand.u32 4294901760, %v12605_v57 }
 0xb4a   : > { %v12066_v34 = vmul.f32 %v23630_v17, %v25682_v38  ;;  %v12601_v3 = vpop.permute.xlu1 %12600  ;;  %v12176_v58 = vsub.f32 %v25755_v41, %v12175_v37 }
 0xb4b   : > { %v12700_v55 = vand.u32 4294901760, %v25773_v29  ;;  %v12614_v46 = vand.u32 4294901760, %v12601_v3  ;;  %v12166_v4 = vsub.f32 %v25760_v20, %v12165_v44  ;;  %v12195_v33 = vand.u32 4294901760, %v12194_v11 }
 0xb4c   : > { %19568 = vst.msk [vmem:[%s24704_s28 + $0x98] sm:$0xff] %vm3515_vm2, %v12066_v34  ;;  %v12678_v63 = vsub.f32 %v12605_v57, %v25776_v24  ;;  %v12608_v50 = vsel %vm3515_vm2, %v12066_v34, 0  ;;  %v12177_v1 = vand.u32 4294901760, %v12176_v58 }
 0xb4d   : > { %v25788_v7 = vpack.c.bf16 %v12614_v46, %v12611_v53  ;;  %v12706_v38 = vsub.f32 %v12601_v3, %v12614_v46  ;;  %v12167_v21 = vand.u32 4294901760, %v12166_v4  ;;  %v22626_v15 = vpack.c.bf16 %v12195_v33, %v12188_v28 }
 0xb4e   : > { %v12679_v51 = vand.u32 4294901760, %v12678_v63  ;;  %v25790_v12 = vand.u32 4294901760, %v12608_v50  ;;  %v12701_v39 = vsub.f32 %v25773_v29, %v12700_v55 }
 0xb4f   : > { %v12707_v17 = vand.u32 4294901760, %v12706_v38  ;;  %21474 = vmatprep.mubr.f32.mxu0 %v12167_v21  ;;  %22647 = vmatprep.subr.bf16.mxu1 %v25788_v7  ;;  %v22638_v21 = vpack.c.bf16 %v12193_v31, %v12186_v30 }
 0xb50   : > { %22627 = vmatprep.subr.bf16.mxu0 %v22626_v15  ;;  %21475 = vmatmul.mubr.f32.vlgmr.msra.gmra.mrb[26].mxu0 %v12177_v1  ;;  %v12680_v53 = vsub.f32 %v12678_v63, %v12679_v51  ;;  %v12688_v57 = vsub.f32 %v12608_v50, %v25790_v12  ;;  %v12702_v58 = vand.u32 4294901760, %v12701_v39  ;;  %v22654_v50 = vpack.c.bf16 %v12706_v38, %v25773_v29 }
 0xb51   : > { %v12708_v11 = vsub.f32 %v12706_v38, %v12707_v17  ;;  %22629 = vmatpush3.bf16.msra.mxu0 %v22626_v15  ;;  %22649 = vmatpush3.bf16.msra.mxu1 %v25788_v7 }
 0xb52   : > { %21481 = vmatprep.mubr.f32.mxu0 %v25751_v10  ;;  %22631 = vmatprep.subr.bf16.mxu0 %v22630_v6  ;;  %v12681_v34 = vand.u32 4294901760, %v12680_v53  ;;  %v12689_v3 = vand.u32 4294901760, %v12688_v57 }
 0xb53   : > { %v12709_v46 = vand.u32 4294901760, %v12708_v11 }
 0xb54   : > { %21516 = vmatprep.mubr.f32.mxu1 %v12681_v34  ;;  %v12690_v4 = vsub.f32 %v12688_v57, %v12689_v3 }
 0xb55   : > { %v22650_v33 = vpack.c.bf16 %v12709_v46, %v12702_v58 }
 0xb56   : > { %v12691_v28 = vand.u32 4294901760, %v12690_v4 }
 0xb57   : > { %22651 = vmatprep.subr.bf16.mxu1 %v22650_v33 }
 0xb58   : > { %21517 = vmatmul.mubr.f32.vlgmr.msra.gmra.mrb[30].mxu1 %v12691_v28  ;;  %21482 = vmatmul.mubr.f32.vlgmr.msra.gmra.mrb[26].mxu0 %v25745_v48 }
 0xb59   : > { %22633 = vmatpush3.bf16.msra.mxu0 %v22630_v6  ;;  %22653 = vmatpush3.bf16.msra.mxu1 %v22650_v33 }
 0xb5a   : > { %21523 = vmatprep.mubr.f32.mxu1 %v25776_v24  ;;  %21488 = vmatprep.mubr.f32.mxu0 %v25760_v20  ;;  %v22662_v20 = vpack.c.bf16 %v12707_v17, %v12700_v55 }
 0xb5b   : > { %22635 = vmatprep.subr.bf16.mxu0 %v25747_v25  ;;  %22655 = vmatprep.subr.bf16.mxu1 %v22654_v50 }
 0xb60   : > { %21524 = vmatmul.mubr.f32.vlgmr.msra.gmra.mrb[30].mxu1 %v25790_v12  ;;  %21489 = vmatmul.mubr.f32.vlgmr.msra.gmra.mrb[26].mxu0 %v25755_v41 }
 0xb61   : > { %22657 = vmatpush3.bf16.msra.mxu1 %v22654_v50  ;;  %22637 = vmatpush3.bf16.msra.mxu0 %v25747_v25 }
 0xb62   : > { %21530 = vmatprep.mubr.f32.mxu1 %v12678_v63  ;;  %22659 = vmatprep.subr.bf16.mxu1 %v25788_v7 }
 0xb63   : > { %21495 = vmatprep.mubr.f32.mxu0 %v12165_v44  ;;  %22639 = vmatprep.subr.bf16.mxu0 %v22638_v21 }
 0xb68   : > { %21531 = vmatmul.mubr.f32.vlgmr.msra.gmra.mrb[30].mxu1 %v12688_v57  ;;  %21496 = vmatmul.mubr.f32.vlgmr.msra.gmra.mrb[26].mxu0 %v12175_v37 }
 0xb69   : > { %22661 = vmatpush3.bf16.msra.mxu1 %v25788_v7  ;;  %22641 = vmatpush3.bf16.msra.mxu0 %v22638_v21 }
 0xb6a   : > { %21537 = vmatprep.mubr.f32.mxu1 %v12679_v51  ;;  %22663 = vmatprep.subr.bf16.mxu1 %v22662_v20 }
 0xb6b   : > { %21502 = vmatprep.mubr.f32.mxu0 %v25751_v10  ;;  %22643 = vmatprep.subr.bf16.mxu0 %v25747_v25 }
 0xb6f   : > { %v12049_v43 = vpop.xlane.xlu0 %12048 }
 0xb70   : > { %21538 = vmatmul.mubr.f32.vlgmr.msra.gmra.mrb[30].mxu1 %v12689_v3  ;;  %23631 = vrcp.f32 %v12049_v43  ;;  %21503 = vmatmul.mubr.f32.vlgmr.msra.gmra.mrb[26].mxu0 %v25745_v48 }
 0xb71   : > { %22665 = vmatpush3.bf16.msra.mxu1 %v22662_v20  ;;  %22645 = vmatpush3.bf16.msra.mxu0 %v25747_v25 }
 0xb72   : > { %21544 = vmatprep.mubr.f32.mxu1 %v25776_v24  ;;  %22667 = vmatprep.subr.bf16.mxu1 %v25788_v7 }
 0xb73   : > { %21509 = vmatprep.mubr.f32.mxu0 %v25751_v10  ;;  %v12058_v30 = vpop.xlane.xlu0 %12057 }
 0xb74   : > { %23633 = vrcp.f32 %v12058_v30 }
 0xb77   : > { %v12055_v32 = vpop.xlane.xlu0 %12054 }
 0xb78   : > { %21545 = vmatmul.mubr.f32.vlgmr.msra.gmra.mrb[30].mxu1 %v25790_v12  ;;  %23635 = vrcp.f32 %v12055_v32  ;;  %21510 = vmatmul.mubr.f32.vlgmr.msra.gmra.mrb[26].mxu0 %v25745_v48 }
 0xb79   : > { %22669 = vmatpush3.bf16.msra.mxu1 %v25788_v7  ;;  %21551 = vmatprep.mubr.f32.mxu1 %v25776_v24 }
 0xb7a   : > { %v23632_v25 = vpop.eup %23631 }
 0xb7b   : > { %v12068_v41 = vmul.f32 %v23632_v25, %v25694_v61  ;;  %v12052_v31 = vpop.xlane.xlu1 %12051  ;;  %v13113_v37 = vpop.permute.xlu0 %13112 }
 0xb7c   : > { %23637 = vrcp.f32 %v12052_v31  ;;  %v13125_v10 = vand.u32 4294901760, %v13113_v37 }
 0xb7d   : > { %19569 = vst.msk [vmem:[%s24704_s28 + $0xa0] sm:$0xff] %vm3515_vm2, %v12068_v41  ;;  %v13119_v29 = vsel %vm3515_vm2, %v12068_v41, 0 }
 0xb7e   : > { %v23634_v44 = vpop.eup %23633  ;;  %v25830_v55 = vsub.f32 %v13113_v37, %v13125_v10  ;;  %v25832_v48 = vand.u32 4294901760, %v13119_v29 }
 0xb7f   : > { %v12074_v63 = vmul.f32 %v23634_v44, %v25698_v8  ;;  %v13115_v24 = vpop.permute.xlu1 %13114 }
 0xb80   : > { %v13214_v7 = vand.u32 4294901760, %v25830_v55  ;;  %v13128_v61 = vand.u32 4294901760, %v13115_v24  ;;  %21552 = vmatmul.mubr.f32.vlgmr.msra.gmra.mrb[30].mxu1 %v25790_v12  ;;  %v25838_v38 = vsub.f32 %v13119_v29, %v25832_v48 }
 0xb81   : > { %19572 = vst.msk [vmem:[%s24704_s28 + $0xb8] sm:$0xff] %vm3515_vm2, %v12074_v63  ;;  %v13636_v15 = vsel %vm3515_vm2, %v12074_v63, 0 }
 0xb82   : > { %v23636_v1 = vpop.eup %23635  ;;  %v25843_v51 = vpack.c.bf16 %v13128_v61, %v13125_v10  ;;  %v25845_v39 = vsub.f32 %v13115_v24, %v13128_v61  ;;  %v13193_v8 = vand.u32 4294901760, %v25838_v38  ;;  %v25849_v53 = vand.u32 4294901760, %v13636_v15 }
 0xb83   : > { %v12072_v17 = vmul.f32 %v23636_v1, %v25702_v40  ;;  %v13627_v6 = vpop.permute.xlu1 %13626  ;;  %v13215_v12 = vsub.f32 %v25830_v55, %v13214_v7 }
 0xb84   : > { %v13221_v57 = vand.u32 4294901760, %v25845_v39  ;;  %v13639_v11 = vand.u32 4294901760, %v13627_v6  ;;  %22671 = vmatprep.subr.bf16.mxu0 %v25843_v51  ;;  %v13194_v34 = vsub.f32 %v25838_v38, %v13193_v8  ;;  %v25872_v21 = vsub.f32 %v13636_v15, %v25849_v53 }
 0xb85   : > { %19571 = vst.msk [vmem:[%s24704_s28 + $0xb0] sm:$0xff] %vm3515_vm2, %v12072_v17  ;;  %22673 = vmatpush3.bf16.msra.mxu0 %v25843_v51  ;;  %v13633_v40 = vsel %vm3515_vm2, %v12072_v17, 0  ;;  %v13216_v43 = vand.u32 4294901760, %v13215_v12 }
 0xb86   : > { %v23638_v3 = vpop.eup %23637  ;;  %v13222_v58 = vsub.f32 %v25845_v39, %v13221_v57  ;;  %v25866_v46 = vsub.f32 %v13627_v6, %v13639_v11  ;;  %v13195_v4 = vand.u32 4294901760, %v13194_v34  ;;  %v25868_v33 = vand.u32 4294901760, %v13633_v40 }
 0xb87   : > { %v12070_v28 = vmul.f32 %v23638_v3, %v25706_v54  ;;  %v13629_v50 = vpop.permute.xlu1 %13628  ;;  %v13717_v25 = vand.u32 4294901760, %v25872_v21 }
 0xb88   : > { %v13642_v20 = vand.u32 4294901760, %v13629_v50  ;;  %21558 = vmatprep.mubr.f32.mxu0 %v13195_v4  ;;  %v13223_v30 = vand.u32 4294901760, %v13222_v58  ;;  %v13706_v32 = vsub.f32 %v13633_v40, %v25868_v33  ;;  %v13728_v41 = vand.u32 4294901760, %v25866_v46  ;;  %v14148_v58 = vpop.permute.xlu0 %14147 }
 0xb89   : > { %19570 = vst.msk [vmem:[%s24704_s28 + $0xa8] sm:$0xff] %vm3515_vm2, %v12070_v28  ;;  %v13122_v29 = vsel %vm3515_vm2, %v12070_v28, 0  ;;  %v13718_v61 = vsub.f32 %v25872_v21, %v13717_v25 }
 0xb8a   : > { %v25879_v31 = vpack.c.bf16 %v13642_v20, %v13639_v11  ;;  %v13734_v37 = vsub.f32 %v13629_v50, %v13642_v20  ;;  %v22674_v54 = vpack.c.bf16 %v13223_v30, %v13216_v43  ;;  %v13707_v10 = vand.u32 4294901760, %v13706_v32 }
 0xb8b   : > { %v25883_v63 = vand.u32 4294901760, %v13122_v29  ;;  %v13729_v15 = vsub.f32 %v25866_v46, %v13728_v41  ;;  %v13719_v11 = vand.u32 4294901760, %v13718_v61  ;;  %v22678_v50 = vpack.c.bf16 %v25845_v39, %v25830_v55  ;;  %v14150_v20 = vpop.permute.xlu1 %14149 }
 0xb8c   : > { %v13735_v44 = vand.u32 4294901760, %v13734_v37  ;;  %22675 = vmatprep.subr.bf16.mxu0 %v22674_v54  ;;  %22695 = vmatprep.subr.bf16.mxu1 %v25879_v31  ;;  %v13708_v24 = vsub.f32 %v13706_v32, %v13707_v10  ;;  %v22702_v43 = vpack.c.bf16 %v13734_v37, %v25866_v46  ;;  %v14144_v30 = vpop.permute.xlu0 %14143  ;;  %v22686_v61 = vpack.c.bf16 %v13221_v57, %v13214_v7 }
 0xb8d   : > { %22697 = vmatpush3.bf16.msra.mxu1 %v25879_v31  ;;  %v25891_v17 = vsub.f32 %v13122_v29, %v25883_v63  ;;  %v13730_v40 = vand.u32 4294901760, %v13729_v15  ;;  %v14151_v55 = vsel %vm1440_vm1, %v14144_v30, 0 }
 0xb8e   : > { %v13736_v1 = vsub.f32 %v13734_v37, %v13735_v44  ;;  %v13709_v6 = vand.u32 4294901760, %v13708_v24  ;;  %v22710_v46 = vpack.c.bf16 %v13735_v44, %v13728_v41  ;;  %v14157_v41 = vsel %vm1440_vm1, %v14150_v20, 0 }
 0xb8f   : > { %v13203_v12 = vand.u32 4294901760, %v25891_v17  ;;  %v14146_v29 = vpop.permute.xlu1 %14145  ;;  %v14163_v39 = vand.u32 4294901760, %v14157_v41 }
 0xb90   : > { %21600 = vmatprep.mubr.f32.mxu1 %v13709_v6  ;;  %v13737_v3 = vand.u32 4294901760, %v13736_v1  ;;  %v14666_v24 = vpop.permute.xlu0 %14665  ;;  %v14155_v1 = vsel %vm1440_vm1, %v14148_v58, 0 }
 0xb91   : > { %v13204_v34 = vsub.f32 %v25891_v17, %v13203_v12  ;;  %21601 = vmatmul.mubr.f32.vlgmr.msra.gmra.mrb[32].mxu1 %v13719_v11  ;;  %v14673_v15 = vsel %vm1440_vm1, %v14666_v24, 0  ;;  %v14160_v57 = vand.u32 4294901760, %v14155_v1 }
 0xb92   : > { %21607 = vmatprep.mubr.f32.mxu1 %v25868_v33  ;;  %v22698_v28 = vpack.c.bf16 %v13737_v3, %v13730_v40 }
 0xb93   : > { %v13205_v4 = vand.u32 4294901760, %v13204_v34  ;;  %v25933_v34 = vsub.f32 %v14157_v41, %v14163_v39 }
 0xb94   : > { %22699 = vmatprep.subr.bf16.mxu1 %v22698_v28  ;;  %v14662_v37 = vpop.permute.xlu0 %14661 }
 0xb95   : > { %21559 = vmatmul.mubr.f32.vlgmr.msra.gmra.mrb[28].mxu0 %v13205_v4  ;;  %22701 = vmatpush3.bf16.msra.mxu1 %v22698_v28  ;;  %v14153_v4 = vsel %vm1440_vm1, %v14146_v29, 0  ;;  %v14256_v28 = vand.u32 4294901760, %v25933_v34 }
 0xb96   : > { %22677 = vmatpush3.bf16.msra.mxu0 %v22674_v54  ;;  %21565 = vmatprep.mubr.f32.mxu0 %v25832_v48  ;;  %v14668_v54 = vpop.permute.xlu1 %14667 }
 0xb97   : > { %22679 = vmatprep.subr.bf16.mxu0 %v22678_v50  ;;  %22703 = vmatprep.subr.bf16.mxu1 %v22702_v43 }
 0xb99   : > { %21608 = vmatmul.mubr.f32.vlgmr.msra.gmra.mrb[32].mxu1 %v25849_v53 }
 0xb9a   : > { %22705 = vmatpush3.bf16.msra.mxu1 %v22702_v43  ;;  %21614 = vmatprep.mubr.f32.mxu1 %v13706_v32  ;;  %v14675_v32 = vsel %vm1440_vm1, %v14668_v54, 0  ;;  %v14664_v6 = vpop.permute.xlu1 %14663  ;;  %v25958_v54 = vand.u32 4294901760, %v14153_v4 }
 0xb9b   : > { %22707 = vmatprep.subr.bf16.mxu1 %v25879_v31  ;;  %v14681_v44 = vand.u32 4294901760, %v14675_v32 }
 0xb9d   : > { %21566 = vmatmul.mubr.f32.vlgmr.msra.gmra.mrb[28].mxu0 %v25883_v63 }
 0xb9e   : > { %22681 = vmatpush3.bf16.msra.mxu0 %v22678_v50  ;;  %21572 = vmatprep.mubr.f32.mxu0 %v25838_v38  ;;  %v25925_v38 = vand.u32 4294901760, %v14151_v55 }
 0xb9f   : > { %22683 = vmatprep.subr.bf16.mxu0 %v25843_v51 }
 0xba0   : > { %v25944_v3 = vsub.f32 %v14151_v55, %v25925_v38 }
 0xba1   : > { %21615 = vmatmul.mubr.f32.vlgmr.msra.gmra.mrb[32].mxu1 %v25872_v21  ;;  %v14671_v21 = vsel %vm1440_vm1, %v14664_v6, 0 }
 0xba2   : > { %22709 = vmatpush3.bf16.msra.mxu1 %v25879_v31  ;;  %21621 = vmatprep.mubr.f32.mxu1 %v13707_v10  ;;  %v14669_v10 = vsel %vm1440_vm1, %v14662_v37, 0  ;;  %v25951_v20 = vand.u32 4294901760, %v14671_v21  ;;  %v14228_v24 = vand.u32 4294901760, %v25944_v3  ;;  %v25968_v37 = vpack.c.bf16 %v14163_v39, %v14160_v57 }
 0xba3   : > { %22711 = vmatprep.subr.bf16.mxu1 %v22710_v46  ;;  %v25921_v7 = vand.u32 4294901760, %v14669_v10 }
 0xba5   : > { %21573 = vmatmul.mubr.f32.vlgmr.msra.gmra.mrb[28].mxu0 %v25891_v17  ;;  %v14678_v17 = vand.u32 4294901760, %v14673_v15  ;;  %v25936_v40 = vsub.f32 %v14669_v10, %v25921_v7 }
 0xba6   : > { %22685 = vmatpush3.bf16.msra.mxu0 %v25843_v51  ;;  %21579 = vmatprep.mubr.f32.mxu0 %v13193_v8  ;;  %v25927_v8 = vsub.f32 %v14675_v32, %v14681_v44  ;;  %v14257_v32 = vsub.f32 %v25933_v34, %v14256_v28 }
 0xba7   : > { %22687 = vmatprep.subr.bf16.mxu0 %v22686_v61  ;;  %v25930_v11 = vsub.f32 %v14673_v15, %v14678_v17  ;;  %v14746_v50 = vand.u32 4294901760, %v25936_v40  ;;  %v25953_v43 = vpack.c.bf16 %v14681_v44, %v14678_v17  ;;  %v25988_v15 = vsub.f32 %v14153_v4, %v25958_v54 }
 0xba8   : > { %v14774_v58 = vand.u32 4294901760, %v25927_v8 }
 0xba9   : > { %21622 = vmatmul.mubr.f32.vlgmr.msra.gmra.mrb[32].mxu1 %v13717_v25  ;;  %v25941_v25 = vsub.f32 %v14155_v1, %v14160_v57  ;;  %v14258_v1 = vand.u32 4294901760, %v14257_v32  ;;  %v14238_v55 = vand.u32 4294901760, %v25988_v15  ;;  %v15186_v32 = vpop.permute.xlu1 %15185 }
 0xbaa   : > { %22713 = vmatpush3.bf16.msra.mxu1 %v22710_v46  ;;  %21628 = vmatprep.mubr.f32.mxu1 %v25868_v33  ;;  %v14775_v29 = vsub.f32 %v25927_v8, %v14774_v58 }
 0xbab   : > { %22715 = vmatprep.subr.bf16.mxu1 %v25879_v31  ;;  %v14249_v30 = vand.u32 4294901760, %v25941_v25 }
 0xbac   : > { %v14776_v41 = vand.u32 4294901760, %v14775_v29  ;;  %v15184_v29 = vpop.permute.xlu0 %15183 }
 0xbad   : > { %21580 = vmatmul.mubr.f32.vlgmr.msra.gmra.mrb[28].mxu0 %v13203_v12  ;;  %v14767_v12 = vand.u32 4294901760, %v25930_v11 }
 0xbae   : > { %22689 = vmatpush3.bf16.msra.mxu0 %v22686_v61  ;;  %21586 = vmatprep.mubr.f32.mxu0 %v25832_v48  ;;  %v25976_v61 = vsub.f32 %v14671_v21, %v25951_v20 }
 0xbaf   : > { %22691 = vmatprep.subr.bf16.mxu0 %v25843_v51  ;;  %v14768_v46 = vsub.f32 %v25930_v11, %v14767_v12 }
 0xbb1   : > { %21629 = vmatmul.mubr.f32.vlgmr.msra.gmra.mrb[32].mxu1 %v25849_v53  ;;  %v14769_v44 = vand.u32 4294901760, %v14768_v46 }
 0xbb2   : > { %22717 = vmatpush3.bf16.msra.mxu1 %v25879_v31  ;;  %21635 = vmatprep.mubr.f32.mxu1 %v25868_v33  ;;  %v14747_v33 = vsub.f32 %v25936_v40, %v14746_v50  ;;  %v14250_v31 = vsub.f32 %v25941_v25, %v14249_v30 }
 0xbb3   : > { %22743 = vmatprep.subr.bf16.mxu1 %v25953_v43  ;;  %v22746_v17 = vpack.c.bf16 %v14776_v41, %v14769_v44  ;;  %v15182_v41 = vpop.permute.xlu1 %15181  ;;  %v22758_v44 = vpack.c.bf16 %v14774_v58, %v14767_v12  ;;  %v15191_v12 = vsel %vm1440_vm1, %v15184_v29, 0 }
 0xbb4   : > { %v14748_v10 = vand.u32 4294901760, %v14747_v33  ;;  %v14251_v57 = vand.u32 4294901760, %v14250_v31  ;;  %v22726_v33 = vpack.c.bf16 %v25933_v34, %v25941_v25  ;;  %v15180_v31 = vpop.permute.xlu0 %15179  ;;  %v15196_v34 = vand.u32 4294901760, %v15191_v12 }
 0xbb5   : > { %21587 = vmatmul.mubr.f32.vlgmr.msra.gmra.mrb[28].mxu0 %v25883_v63 }
 0xbb6   : > { %22693 = vmatpush3.bf16.msra.mxu0 %v25843_v51  ;;  %21593 = vmatprep.mubr.f32.mxu0 %v25832_v48  ;;  %v14229_v51 = vsub.f32 %v25944_v3, %v14228_v24  ;;  %v14756_v48 = vand.u32 4294901760, %v25976_v61  ;;  %v22722_v21 = vpack.c.bf16 %v14258_v1, %v14251_v57  ;;  %v15187_v57 = vsel %vm1440_vm1, %v15180_v31, 0 }
 0xbb7   : > { %22719 = vmatprep.subr.bf16.mxu0 %v25968_v37 }
 0xbb8   : > { %v14230_v39 = vand.u32 4294901760, %v14229_v51  ;;  %v14757_v6 = vsub.f32 %v25976_v61, %v14756_v48  ;;  %v15702_v51 = vpop.permute.xlu0 %15701 }
 0xbb9   : > { %21636 = vmatmul.mubr.f32.vlgmr.msra.gmra.mrb[32].mxu1 %v25849_v53  ;;  %v14239_v53 = vsub.f32 %v25988_v15, %v14238_v55 }
 0xbba   : > { %21684 = vmatprep.mubr.f32.mxu1 %v14748_v10  ;;  %v14758_v4 = vand.u32 4294901760, %v14757_v6  ;;  %v15704_v10 = vpop.permute.xlu1 %15703 }
 0xbbb   : > { %22745 = vmatpush3.bf16.xpose.msra.mxu1 %v25953_v43  ;;  %v14240_v46 = vand.u32 4294901760, %v14239_v53 }
 0xbbc   : > { %22747 = vmatprep.subr.bf16.mxu1 %v22746_v17  ;;  %v15698_v1 = vpop.permute.xlu0 %15697 }
 0xbbd   : > { %21594 = vmatmul.mubr.f32.vlgmr.msra.gmra.mrb[28].mxu0 %v25883_v63  ;;  %v22750_v63 = vpack.c.bf16 %v25927_v8, %v25930_v11  ;;  %v22734_v11 = vpack.c.bf16 %v14256_v28, %v14249_v30  ;;  %v15193_v8 = vsel %vm1440_vm1, %v15186_v32, 0 }
 0xbbe   : > { %21642 = vmatprep.mubr.f32.mxu0 %v14230_v39  ;;  %v15709_v39 = vsel %vm1440_vm1, %v15702_v51, 0  ;;  %v15199_v25 = vand.u32 4294901760, %v15193_v8  ;;  %v15700_v30 = vpop.permute.xlu1 %15699 }
 0xbbf   : > { %22721 = vmatpush3.bf16.xpose.msra.mxu0 %v25968_v37 }
 0xbc0   : > { %22723 = vmatprep.subr.bf16.mxu0 %v22722_v21 }
 0xbc2   : > { %21685 = vmatmul.mubr.f32.vlgmr.msra.gmra.mrb[34].mxu1 %v14758_v4 }
 0xbc3   : > { %22749 = vmatpush3.bf16.xpose.msra.mxu1 %v22746_v17  ;;  %21691 = vmatprep.mubr.f32.mxu1 %v25921_v7  ;;  %v15711_v17 = vsel %vm1440_vm1, %v15704_v10, 0 }
 0xbc4   : > { %22751 = vmatprep.subr.bf16.mxu1 %v22750_v63  ;;  %v15717_v58 = vand.u32 4294901760, %v15711_v17 }
 0xbc6   : > { %21643 = vmatmul.mubr.f32.vlgmr.msra.gmra.mrb[30].mxu0 %v14240_v46  ;;  %v26041_v28 = vsub.f32 %v15711_v17, %v15717_v58 }
 0xbc7   : > { %22725 = vmatpush3.bf16.xpose.msra.mxu0 %v22722_v21  ;;  %21649 = vmatprep.mubr.f32.mxu0 %v25925_v38  ;;  %v26050_v21 = vsub.f32 %v15193_v8, %v15199_v25 }
 0xbc8   : > { %22727 = vmatprep.subr.bf16.mxu0 %v22726_v33  ;;  %v15810_v4 = vand.u32 4294901760, %v26041_v28 }
 0xbc9   : > { %v15292_v46 = vand.u32 4294901760, %v26050_v21 }
 0xbca   : > { %21692 = vmatmul.mubr.f32.vlgmr.msra.gmra.mrb[34].mxu1 %v25951_v20  ;;  %v15811_v10 = vsub.f32 %v26041_v28, %v15810_v4 }
 0xbcb   : > { %22753 = vmatpush3.bf16.xpose.msra.mxu1 %v22750_v63  ;;  %21698 = vmatprep.mubr.f32.mxu1 %v25936_v40  ;;  %v15705_v40 = vsel %vm1440_vm1, %v15698_v1, 0  ;;  %v26088_v1 = vpack.c.bf16 %v15199_v25, %v15196_v34  ;;  %v15293_v17 = vsub.f32 %v26050_v21, %v15292_v46 }
 0xbcc   : > { %22755 = vmatprep.subr.bf16.mxu1 %v25953_v43  ;;  %v26039_v6 = vand.u32 4294901760, %v15705_v40  ;;  %v15812_v8 = vand.u32 4294901760, %v15811_v10 }
 0xbce   : > { %21650 = vmatmul.mubr.f32.vlgmr.msra.gmra.mrb[30].mxu0 %v25958_v54  ;;  %v26056_v53 = vsub.f32 %v15705_v40, %v26039_v6 }
 0xbcf   : > { %22729 = vmatpush3.bf16.xpose.msra.mxu0 %v22726_v33  ;;  %21656 = vmatprep.mubr.f32.mxu0 %v25944_v3  ;;  %v26045_v3 = vand.u32 4294901760, %v15187_v57 }
 0xbd0   : > { %22731 = vmatprep.subr.bf16.mxu0 %v25968_v37  ;;  %v15782_v32 = vand.u32 4294901760, %v26056_v53 }
 0xbd1   : > { %v26065_v29 = vsub.f32 %v15187_v57, %v26045_v3 }
 0xbd2   : > { %21699 = vmatmul.mubr.f32.vlgmr.msra.gmra.mrb[34].mxu1 %v25976_v61  ;;  %v15707_v61 = vsel %vm1440_vm1, %v15700_v30, 0 }
 0xbd3   : > { %22757 = vmatpush3.bf16.xpose.msra.mxu1 %v25953_v43  ;;  %21705 = vmatprep.mubr.f32.mxu1 %v14746_v50  ;;  %v15714_v50 = vand.u32 4294901760, %v15709_v39  ;;  %v26070_v63 = vand.u32 4294901760, %v15707_v61 }
 0xbd4   : > { %22759 = vmatprep.subr.bf16.mxu1 %v22758_v44 }
 0xbd5   : > { %v26076_v51 = vpack.c.bf16 %v15717_v58, %v15714_v50 }
 0xbd6   : > { %21657 = vmatmul.mubr.f32.vlgmr.msra.gmra.mrb[30].mxu0 %v25988_v15 }
 0xbd7   : > { %22733 = vmatpush3.bf16.xpose.msra.mxu0 %v25968_v37  ;;  %21663 = vmatprep.mubr.f32.mxu0 %v14228_v24  ;;  %v26047_v24 = vsub.f32 %v15709_v39, %v15714_v50  ;;  %v15791_v39 = vsub.f32 %v15707_v61, %v26070_v63 }
 0xbd8   : > { %22735 = vmatprep.subr.bf16.mxu0 %v22734_v11 }
 0xbd9   : > { %v15803_v15 = vand.u32 4294901760, %v26047_v24 }
 0xbda   : > { %21706 = vmatmul.mubr.f32.vlgmr.msra.gmra.mrb[34].mxu1 %v14756_v48  ;;  %v26060_v48 = vsub.f32 %v15191_v12, %v15196_v34 }
 0xbdb   : > { %22761 = vmatpush3.bf16.xpose.msra.mxu1 %v22758_v44  ;;  %21712 = vmatprep.mubr.f32.mxu1 %v25921_v7  ;;  %v15804_v44 = vsub.f32 %v26047_v24, %v15803_v15 }
 0xbdc   : > { %22763 = vmatprep.subr.bf16.mxu1 %v25953_v43  ;;  %v15285_v33 = vand.u32 4294901760, %v26060_v48 }
 0xbdd   : > { %v15805_v58 = vand.u32 4294901760, %v15804_v44 }
 0xbde   : > { %21664 = vmatmul.mubr.f32.vlgmr.msra.gmra.mrb[30].mxu0 %v14238_v55  ;;  %v15189_v55 = vsel %vm1440_vm1, %v15182_v41, 0  ;;  %v15264_v41 = vand.u32 4294901760, %v26065_v29 }
 0xbdf   : > { %22737 = vmatpush3.bf16.xpose.msra.mxu0 %v22734_v11  ;;  %21670 = vmatprep.mubr.f32.mxu0 %v25925_v38  ;;  %v26074_v31 = vand.u32 4294901760, %v15189_v55  ;;  %v22794_v57 = vpack.c.bf16 %v15812_v8, %v15805_v58 }
 0xbe0   : > { %22739 = vmatprep.subr.bf16.mxu0 %v25968_v37  ;;  %v15265_v40 = vsub.f32 %v26065_v29, %v15264_v41 }
 0xbe1   : > { %v15273_v11 = vsub.f32 %v15189_v55, %v26074_v31 }
 0xbe2   : > { %21713 = vmatmul.mubr.f32.vlgmr.msra.gmra.mrb[34].mxu1 %v25951_v20  ;;  %v15266_v34 = vand.u32 4294901760, %v15265_v40 }
 0xbe3   : > { %22765 = vmatpush3.bf16.xpose.msra.mxu1 %v25953_v43  ;;  %21719 = vmatprep.mubr.f32.mxu1 %v25921_v7  ;;  %v15783_v7 = vsub.f32 %v26056_v53, %v15782_v32  ;;  %v15286_v43 = vsub.f32 %v26060_v48, %v15285_v33  ;;  %v15274_v50 = vand.u32 4294901760, %v15273_v11 }
 0xbe4   : > { %22791 = vmatprep.subr.bf16.mxu1 %v26076_v51 }
 0xbe5   : > { %v15784_v12 = vand.u32 4294901760, %v15783_v7  ;;  %v15287_v25 = vand.u32 4294901760, %v15286_v43  ;;  %v15275_v55 = vsub.f32 %v15273_v11, %v15274_v50  ;;  %v22782_v7 = vpack.c.bf16 %v15292_v46, %v15285_v33  ;;  %v23688_v43 = vld [vmem:[#allocation10] sm:$0xff] }
 0xbe6   : > { %21671 = vmatmul.mubr.f32.vlgmr.msra.gmra.mrb[30].mxu0 %v25958_v54 }
 0xbe7   : > { %22741 = vmatpush3.bf16.xpose.msra.mxu0 %v25968_v37  ;;  %21677 = vmatprep.mubr.f32.mxu0 %v25925_v38  ;;  %v15792_v37 = vand.u32 4294901760, %v15791_v39  ;;  %v15294_v38 = vand.u32 4294901760, %v15293_v17  ;;  %v15276_v44 = vand.u32 4294901760, %v15275_v55  ;;  %v22806_v17 = vpack.c.bf16 %v15810_v4, %v15803_v15  ;;  %v14141_v15 = vld [vmem:[#allocation8 + $0x30] sm:$0xff] }
 0xbe8   : > { %22767 = vmatprep.subr.bf16.mxu0 %v26088_v1 }
 0xbe9   : > { %v15793_v30 = vsub.f32 %v15791_v39, %v15792_v37  ;;  %v22770_v61 = vpack.c.bf16 %v15294_v38, %v15287_v25 }
 0xbea   : > { %21720 = vmatmul.mubr.f32.vlgmr.msra.gmra.mrb[34].mxu1 %v25951_v20  ;;  %v22798_v20 = vpack.c.bf16 %v26041_v28, %v26047_v24 }
 0xbeb   : > { %22793 = vmatpush3.bf16.xpose.msra.mxu1 %v26076_v51  ;;  %21768 = vmatprep.mubr.f32.mxu1 %v15784_v12  ;;  %v15794_v10 = vand.u32 4294901760, %v15793_v30  ;;  %v23690_v12 = vld [vmem:[#allocation10 + $0x18] sm:$0xff] }
 0xbec   : > { %22795 = vmatprep.subr.bf16.mxu1 %v22794_v57 }
 0xbee   : > { %21678 = vmatmul.mubr.f32.vlgmr.msra.gmra.mrb[30].mxu0 %v25958_v54  ;;  %v22774_v54 = vpack.c.bf16 %v26050_v21, %v26060_v48 }
 0xbef   : > { %22769 = vmatpush3.bf16.xpose.msra.mxu0 %v26088_v1  ;;  %21726 = vmatprep.mubr.f32.mxu0 %v15266_v34 }
 0xbf0   : > { %22771 = vmatprep.subr.bf16.mxu0 %v22770_v61 }
 0xbf2   : > { %21769 = vmatmul.mubr.f32.vlgmr.msra.gmra.mrb[36].mxu1 %v15794_v10 }
 0xbf3   : > { %22797 = vmatpush3.bf16.xpose.msra.mxu1 %v22794_v57  ;;  %21775 = vmatprep.mubr.f32.mxu1 %v26039_v6 }
 0xbf4   : > { %22799 = vmatprep.subr.bf16.mxu1 %v22798_v20 }
 0xbf6   : > { %21727 = vmatmul.mubr.f32.vlgmr.msra.gmra.mrb[32].mxu0 %v15276_v44 }
 0xbf7   : > { %22773 = vmatpush3.bf16.xpose.msra.mxu0 %v22770_v61  ;;  %21733 = vmatprep.mubr.f32.mxu0 %v26045_v3 }
 0xbf8   : > { %22775 = vmatprep.subr.bf16.mxu0 %v22774_v54 }
 0xbfa   : > { %21776 = vmatmul.mubr.f32.vlgmr.msra.gmra.mrb[36].mxu1 %v26070_v63 }
 0xbfb   : > { %22801 = vmatpush3.bf16.xpose.msra.mxu1 %v22798_v20  ;;  %21782 = vmatprep.mubr.f32.mxu1 %v26056_v53 }
 0xbfc   : > { %22803 = vmatprep.subr.bf16.mxu1 %v26076_v51 }
 0xbfe   : > { %21734 = vmatmul.mubr.f32.vlgmr.msra.gmra.mrb[32].mxu0 %v26074_v31 }
 0xbff   : > { %22777 = vmatpush3.bf16.xpose.msra.mxu0 %v22774_v54  ;;  %21740 = vmatprep.mubr.f32.mxu0 %v26065_v29 }
 0xc00   : > { %22779 = vmatprep.subr.bf16.mxu0 %v26088_v1 }
 0xc02   : > { %21783 = vmatmul.mubr.f32.vlgmr.msra.gmra.mrb[36].mxu1 %v15791_v39 }
 0xc03   : > { %22805 = vmatpush3.bf16.xpose.msra.mxu1 %v26076_v51  ;;  %21789 = vmatprep.mubr.f32.mxu1 %v15782_v32 }
 0xc04   : > { %22807 = vmatprep.subr.bf16.mxu1 %v22806_v17 }
 0xc06   : > { %21741 = vmatmul.mubr.f32.vlgmr.msra.gmra.mrb[32].mxu0 %v15273_v11 }
 0xc07   : > { %22781 = vmatpush3.bf16.xpose.msra.mxu0 %v26088_v1  ;;  %21747 = vmatprep.mubr.f32.mxu0 %v15264_v41 }
 0xc08   : > { %22783 = vmatprep.subr.bf16.mxu0 %v22782_v7 }
 0xc0a   : > { %21790 = vmatmul.mubr.f32.vlgmr.msra.gmra.mrb[36].mxu1 %v15792_v37  ;;  %v23689_v37 = vld [vmem:[#allocation10 + $0x10] sm:$0xff] }
 0xc0b   : > { %22809 = vmatpush3.bf16.xpose.msra.mxu1 %v22806_v17  ;;  %21796 = vmatprep.mubr.f32.mxu1 %v26039_v6  ;;  %v23691_v17 = vld [vmem:[#allocation10 + $0x28] sm:$0xff] }
 0xc0c   : > { %22811 = vmatprep.subr.bf16.mxu1 %v26076_v51 }
 0xc0e   : > { %21748 = vmatmul.mubr.f32.vlgmr.msra.gmra.mrb[32].mxu0 %v15274_v50 }
 0xc0f   : > { %22785 = vmatpush3.bf16.xpose.msra.mxu0 %v22782_v7  ;;  %21754 = vmatprep.mubr.f32.mxu0 %v26045_v3 }
 0xc10   : > { %22787 = vmatprep.subr.bf16.mxu0 %v26088_v1 }
 0xc12   : > { %21797 = vmatmul.mubr.f32.vlgmr.msra.gmra.mrb[36].mxu1 %v26070_v63 }
 0xc13   : > { %22813 = vmatpush3.bf16.xpose.msra.mxu1 %v26076_v51  ;;  %21803 = vmatprep.mubr.f32.mxu1 %v26039_v6 }
 0xc16   : > { %21755 = vmatmul.mubr.f32.vlgmr.msra.gmra.mrb[32].mxu0 %v26074_v31 }
 0xc17   : > { %22789 = vmatpush3.bf16.xpose.msra.mxu0 %v26088_v1  ;;  %21761 = vmatprep.mubr.f32.mxu0 %v26045_v3  ;;  %v23687_v1 = vld [vmem:[#allocation10 + $0x8] sm:$0xff] }
 0xc1a   : > { %21804 = vmatmul.mubr.f32.vlgmr.msra.gmra.mrb[36].mxu1 %v26070_v63  ;;  %v14142_v63 = vld [vmem:[#allocation8 + $0x38] sm:$0xff] }
 0xc1e   : > { %21762 = vmatmul.mubr.f32.vlgmr.msra.gmra.mrb[32].mxu0 %v26074_v31 }
 0xc4b   : > { %v26151_v28 = vpop.f32.mrb[26].mxu0 }
 0xc4c   : > { %v26153_v24 = vpop.f32.mrb[27].mxu0 }
 0xc53   : > { %v26155_v21 = vpop.f32.mrb[30].mxu1 }
 0xc54   : > { %v26157_v53 = vpop.f32.mrb[31].mxu1 }
 0xc8c   : > { %v26159_v48 = vpop.f32.mrb[32].mxu1 }
 0xc8d   : > { %v26161_v6 = vpop.f32.mrb[33].mxu1 }
 0xc90   : > { %v26163_v4 = vpop.f32.mrb[28].mxu0 }
 0xc91   : > { %v26165_v29 = vpop.f32.mrb[29].mxu0 }
 0xcbd   : > { %v21721_v3 = vpop.f32.mrb[34].mxu1 }
 0xcbe   : > { %v15169_v46 = vpop.f32.mrb[35].mxu1  ;;  %v23000_v40 = vadd.f32 %v21721_v3, %v14142_v63  ;;  %v23692_v3 = vld [vmem:[#allocation10 + $0x20] sm:$0xff] }
 0xcbf   : > { %v23001_v51 = vadd.f32 %v15169_v46, %v14141_v15 }
 0xcc0   : > { %v16218_v50 = vadd.f32 %v23690_v12, %v23000_v40 }
 0xcc1   : > { %v21679_v32 = vpop.f32.mrb[30].mxu0  ;;  %v16217_v58 = vadd.f32 %v23689_v37, %v23001_v51  ;;  %v23694_v51 = vld [vmem:[#allocation10 + $0x30] sm:$0xff] }
 0xcc2   : > { %v22998_v33 = vadd.f32 %v21679_v32, %v14142_v63  ;;  %v14651_v31 = vpop.f32.mrb[31].mxu0  ;;  %v16232_v25 = vsel %vm3515_vm2, %v16218_v50, -inf  ;;  %v23693_v32 = vld [vmem:[#allocation10 + $0x38] sm:$0xff] }
 0xcc3   : > { %v22999_v41 = vadd.f32 %v14651_v31, %v14141_v15  ;;  %v16229_v57 = vsel %vm3515_vm2, %v16217_v58, -inf }
 0xcc4   : > { %v16216_v39 = vadd.f32 %v23687_v1, %v22998_v33 }
 0xcc5   : > { %v16215_v11 = vadd.f32 %v23688_v43, %v22999_v41 }
 0xcc6   : > { %v16226_v8 = vsel %vm3515_vm2, %v16216_v39, -inf }
 0xcc7   : > { %16227 = vmax.xlane.f32.xlu1 %v16226_v8  ;;  %v16223_v38 = vsel %vm3515_vm2, %v16215_v11, -inf }
 0xcc8   : > { %16224 = vmax.xlane.f32.xlu0 %v16223_v38 }
 0xccc   : > { %16230 = vmax.xlane.f32.xlu0 %v16229_v57 }
 0xcd0   : > { %16233 = vmax.xlane.f32.xlu0 %v16232_v25 }
 0xced   : > { %v21805_v34 = vpop.f32.mrb[36].mxu1 }
 0xcee   : > { %v16205_v30 = vpop.f32.mrb[37].mxu1  ;;  %v23004_v55 = vadd.f32 %v21805_v34, %v14142_v63 }
 0xcef   : > { %v23005_v20 = vadd.f32 %v16205_v30, %v14141_v15 }
 0xcf0   : > { %v16222_v33 = vadd.f32 %v23693_v32, %v23004_v55 }
 0xcf1   : > { %v21763_v61 = vpop.f32.mrb[32].mxu0  ;;  %v16221_v41 = vadd.f32 %v23694_v51, %v23005_v20 }
 0xcf2   : > { %v23002_v10 = vadd.f32 %v21763_v61, %v14142_v63  ;;  %v15687_v44 = vpop.f32.mrb[33].mxu0  ;;  %v16244_v43 = vsel %vm3515_vm2, %v16222_v33, -inf }
 0xcf3   : > { %v23003_v54 = vadd.f32 %v15687_v44, %v14141_v15  ;;  %v16241_v63 = vsel %vm3515_vm2, %v16221_v41, -inf }
 0xcf4   : > { %v16220_v7 = vadd.f32 %v23691_v17, %v23002_v10 }
 0xcf5   : > { %v16219_v46 = vadd.f32 %v23692_v3, %v23003_v54 }
 0xcf6   : > { %v16238_v31 = vsel %vm3515_vm2, %v16220_v7, -inf }
 0xcf7   : > { %16239 = vmax.xlane.f32.xlu1 %v16238_v31  ;;  %v16235_v1 = vsel %vm3515_vm2, %v16219_v46, -inf }
 0xcf8   : > { %16236 = vmax.xlane.f32.xlu0 %v16235_v1 }
 0xcfb   : > { %16245 = vmax.xlane.f32.xlu1 %v16244_v43 }
 0xcfc   : > { %16242 = vmax.xlane.f32.xlu0 %v16241_v63 }
 0xd54   : > { %v16228_v15 = vpop.xlane.xlu1 %16227 }
 0xd55   : > { %v16248_v8 = vsub.f32 %v16216_v39, %v16228_v15  ;;  %v16225_v40 = vpop.xlane.xlu0 %16224 }
 0xd56   : > { %v16247_v37 = vsub.f32 %v16215_v11, %v16225_v40 }
 0xd57   : > { %v16257_v38 = vmul.f32 1.442695, %v16248_v8 }
 0xd58   : > { %v16255_v12 = vmul.f32 1.442695, %v16247_v37 }
 0xd59   : > { %23639 = vpow2.f32 %v16257_v38  ;;  %v16231_v57 = vpop.xlane.xlu0 %16230 }
 0xd5a   : > { %23641 = vpow2.f32 %v16255_v12  ;;  %v16249_v25 = vsub.f32 %v16217_v58, %v16231_v57 }
 0xd5c   : > { %v16259_v34 = vmul.f32 1.442695, %v16249_v25 }
 0xd5d   : > { %v16234_v30 = vpop.xlane.xlu0 %16233 }
 0xd5e   : > { %23643 = vpow2.f32 %v16259_v34  ;;  %v16250_v61 = vsub.f32 %v16218_v50, %v16234_v30 }
 0xd60   : > { %v16261_v55 = vmul.f32 1.442695, %v16250_v61 }
 0xd62   : > { %23645 = vpow2.f32 %v16261_v55 }
 0xd63   : > { %v26175_v10 = vpop.eup %23639 }
 0xd64   : > { %v26177_v44 = vpop.eup %23641  ;;  %v16274_v39 = vsel %vm3515_vm2, %v26175_v10, 0.0 }
 0xd65   : > { %16275 = vadd.xlane.f32.xlu1 %v16274_v39  ;;  %v16271_v11 = vsel %vm3515_vm2, %v26177_v44, 0.0 }
 0xd66   : > { %16272 = vadd.xlane.f32.xlu0 %v16271_v11 }
 0xd68   : > { %v26183_v20 = vpop.eup %23643 }
 0xd69   : > { %v16277_v58 = vsel %vm3515_vm2, %v26183_v20, 0.0 }
 0xd6a   : > { %16278 = vadd.xlane.f32.xlu0 %v16277_v58 }
 0xd6c   : > { %v26187_v50 = vpop.eup %23645 }
 0xd6d   : > { %v16280_v54 = vsel %vm3515_vm2, %v26187_v50, 0.0 }
 0xd6e   : > { %16281 = vadd.xlane.f32.xlu1 %v16280_v54 }
 0xd7f   : > { %16322 = vrot.lane.b32.xlu1 %v24444_v22, %s23934_s26 }
 0xd80   : > { %16320 = vrot.lane.b32.xlu0 %v24446_v26, %s23934_s26 }
 0xd83   : > { %16834 = vrot.lane.b32.xlu1 %v24457_v36, %s23934_s26 }
 0xd84   : > { %v16240_v17 = vpop.xlane.xlu1 %16239 }
 0xd85   : > { %v16237_v3 = vpop.xlane.xlu0 %16236  ;;  %v16252_v22 = vsub.f32 %v16220_v7, %v16240_v17 }
 0xd86   : > { %v16251_v32 = vsub.f32 %v16219_v46, %v16237_v3 }
 0xd87   : > { %16836 = vrot.lane.b32.xlu1 %v24455_v35, %s23934_s26  ;;  %v16265_v26 = vmul.f32 1.442695, %v16252_v22 }
 0xd88   : > { %v16246_v31 = vpop.xlane.xlu1 %16245  ;;  %v16263_v51 = vmul.f32 1.442695, %v16251_v32 }
 0xd89   : > { %v16254_v1 = vsub.f32 %v16222_v33, %v16246_v31  ;;  %v16243_v43 = vpop.xlane.xlu0 %16242 }
 0xd8a   : > { %23647 = vpow2.f32 %v16263_v51  ;;  %v16253_v15 = vsub.f32 %v16221_v41, %v16243_v43 }
 0xd8b   : > { %v16269_v63 = vmul.f32 1.442695, %v16254_v1 }
 0xd8c   : > { %v16267_v8 = vmul.f32 1.442695, %v16253_v15 }
 0xd8d   : > { %23649 = vpow2.f32 %v16269_v63 }
 0xd8e   : > { %23651 = vpow2.f32 %v16267_v8 }
 0xd8f   : > { %23653 = vpow2.f32 %v16265_v26 }
 0xd94   : > { %v26199_v40 = vpop.eup %23647 }
 0xd95   : > { %v16283_v36 = vsel %vm3515_vm2, %v26199_v40, 0.0 }
 0xd97   : > { %v26203_v35 = vpop.eup %23649 }
 0xd98   : > { %v16292_v46 = vsel %vm3515_vm2, %v26203_v35, 0.0  ;;  %v26207_v33 = vpop.eup %23651 }
 0xd99   : > { %v16289_v7 = vsel %vm3515_vm2, %v26207_v33, 0.0  ;;  %v26211_v41 = vpop.eup %23653 }
 0xd9a   : > { %v16286_v37 = vsel %vm3515_vm2, %v26211_v41, 0.0 }
 0xd9f   : > { %16284 = vadd.xlane.f32.xlu0 %v16283_v36 }
 0xda3   : > { %16293 = vadd.xlane.f32.xlu0 %v16292_v46 }
 0xda7   : > { %16290 = vadd.xlane.f32.xlu0 %v16289_v7 }
 0xdab   : > { %16287 = vadd.xlane.f32.xlu1 %v16286_v37 }
 0xdbc   : > { %17350 = vrot.lane.b32.xlu1 %v24465_v45, %s23934_s26 }
 0xdbd   : > { %17348 = vrot.lane.b32.xlu0 %v24470_v47, %s23934_s26 }
 0xdc0   : > { %17862 = vrot.lane.b32.xlu1 %v24485_v59, %s23934_s26 }
 0xdc1   : > { %18384 = vrot.lane.b32.xlu0 %v25648_v14, %s23935_s24 }
 0xdc4   : > { %17864 = vrot.lane.b32.xlu1 %v24480_v56, %s23934_s26  ;;  %s19327_s26 = scalar_lea.sflag [#allocation4], %s24227_s10 }
 0xdc5   : > { %18416 = vrot.lane.b32.xlu0 %v26153_v24, %s23936_s18 }
 0xdc8   : > { %18386 = vrot.lane.b32.xlu1 %v25646_v49, %s23935_s24 }
 0xdc9   : > { %18388 = vrot.lane.b32.xlu0 %v25652_v16, %s23935_s24 }
 0xdcc   : > { %18418 = vrot.lane.b32.xlu1 %v26151_v28, %s23936_s18 }
 0xdcd   : > { %18420 = vrot.lane.b32.xlu0 %v26157_v53, %s23936_s18 }
 0xdd0   : > { %18390 = vrot.lane.b32.xlu1 %v25650_v52, %s23935_s24 }
 0xdd1   : > { %18392 = vrot.lane.b32.xlu0 %v25660_v13, %s23935_s24 }
 0xdd4   : > { %18422 = vrot.lane.b32.xlu1 %v26155_v21, %s23936_s18 }
 0xdd5   : > { %18424 = vrot.lane.b32.xlu0 %v26165_v29, %s23936_s18 }
 0xdd8   : > { %18394 = vrot.lane.b32.xlu1 %v25658_v9, %s23935_s24 }
 0xdd9   : > { %18396 = vrot.lane.b32.xlu0 %v25656_v60, %s23935_s24 }
 0xddc   : > { %18426 = vrot.lane.b32.xlu1 %v26163_v4, %s23936_s18 }
 0xde0   : > { %18398 = vrot.lane.b32.xlu1 %v25654_v0, %s23935_s24 }
 0xdf2   : > { %v16276_v45 = vpop.xlane.xlu1 %16275 }
 0xdf3   : > { %23655 = vrcp.f32 %v16276_v45  ;;  %v16273_v47 = vpop.xlane.xlu0 %16272 }
 0xdf4   : > { %23657 = vrcp.f32 %v16273_v47 }
 0xdf7   : > { %v16279_v56 = vpop.xlane.xlu0 %16278 }
 0xdf8   : > { %23659 = vrcp.f32 %v16279_v56 }
 0xdfb   : > { %v16282_v59 = vpop.xlane.xlu1 %16281  ;;  %v16321_v49 = vpop.permute.xlu0 %16320 }
 0xdfc   : > { %23661 = vrcp.f32 %v16282_v59  ;;  %v16333_v14 = vand.u32 4294901760, %v16321_v49 }
 0xdfd   : > { %v23656_v52 = vpop.eup %23655 }
 0xdfe   : > { %v23658_v16 = vpop.eup %23657  ;;  %v16298_v60 = vmul.f32 %v23656_v52, %v26175_v10  ;;  %v26252_v9 = vsub.f32 %v16321_v49, %v16333_v14 }
 0xdff   : > { %v16296_v0 = vmul.f32 %v23658_v16, %v26177_v44  ;;  %v16323_v13 = vpop.permute.xlu1 %16322 }
 0xe00   : > { %19574 = vst.msk [vmem:[%s24704_s28 + $0xc8] sm:$0xff] %vm3515_vm2, %v16298_v60  ;;  %v16336_v28 = vand.u32 4294901760, %v16323_v13  ;;  %v16330_v24 = vsel %vm3515_vm2, %v16298_v60, 0  ;;  %v16422_v21 = vand.u32 4294901760, %v26252_v9 }
 0xe01   : > { %19573 = vst.msk [vmem:[%s24704_s28 + $0xc0] sm:$0xff] %vm3515_vm2, %v16296_v0  ;;  %v16327_v53 = vsel %vm3515_vm2, %v16296_v0, 0  ;;  %v26262_v4 = vand.u32 4294901760, %v16330_v24 }
 0xe02   : > { %v23660_v29 = vpop.eup %23659  ;;  %v26264_v38 = vpack.c.bf16 %v16336_v28, %v16333_v14  ;;  %v26266_v12 = vsub.f32 %v16323_v13, %v16336_v28  ;;  %v26268_v57 = vand.u32 4294901760, %v16327_v53  ;;  %v16423_v44 = vsub.f32 %v26252_v9, %v16422_v21 }
 0xe03   : > { %v16300_v25 = vmul.f32 %v23660_v29, %v26183_v20  ;;  %v16835_v34 = vpop.permute.xlu1 %16834  ;;  %v26272_v30 = vsub.f32 %v16330_v24, %v26262_v4 }
 0xe04   : > { %v16429_v61 = vand.u32 4294901760, %v26266_v12  ;;  %v16847_v55 = vand.u32 4294901760, %v16835_v34  ;;  %22815 = vmatprep.subr.bf16.mxu0 %v26264_v38  ;;  %v26277_v10 = vsub.f32 %v16327_v53, %v26268_v57  ;;  %v16424_v22 = vand.u32 4294901760, %v16423_v44 }
 0xe05   : > { %19575 = vst.msk [vmem:[%s24704_s28 + $0xd0] sm:$0xff] %vm3515_vm2, %v16300_v25  ;;  %22817 = vmatpush3.bf16.msra.mxu0 %v26264_v38  ;;  %v16411_v39 = vand.u32 4294901760, %v26272_v30  ;;  %v16841_v11 = vsel %vm3515_vm2, %v16300_v25, 0  ;;  %v22822_v49 = vpack.c.bf16 %v26266_v12, %v26252_v9 }
 0xe06   : > { %v23662_v20 = vpop.eup %23661  ;;  %v16430_v58 = vsub.f32 %v26266_v12, %v16429_v61  ;;  %v26290_v54 = vsub.f32 %v16835_v34, %v16847_v55  ;;  %v16401_v17 = vand.u32 4294901760, %v26277_v10  ;;  %v26293_v3 = vand.u32 4294901760, %v16841_v11 }
 0xe07   : > { %v16302_v32 = vmul.f32 %v23662_v20, %v26187_v50  ;;  %v16837_v31 = vpop.permute.xlu1 %16836  ;;  %v16412_v51 = vsub.f32 %v26272_v30, %v16411_v39  ;;  %v22830_v34 = vpack.c.bf16 %v16429_v61, %v16422_v21 }
 0xe08   : > { %v16936_v1 = vand.u32 4294901760, %v26290_v54  ;;  %v16850_v43 = vand.u32 4294901760, %v16837_v31  ;;  %v16402_v63 = vsub.f32 %v26277_v10, %v16401_v17  ;;  %v16431_v15 = vand.u32 4294901760, %v16430_v58 }
 0xe09   : > { %19576 = vst.msk [vmem:[%s24704_s28 + $0xd8] sm:$0xff] %vm3515_vm2, %v16302_v32  ;;  %v16914_v8 = vsub.f32 %v16841_v11, %v26293_v3  ;;  %v16844_v26 = vsel %vm3515_vm2, %v16302_v32, 0  ;;  %v16413_v37 = vand.u32 4294901760, %v16412_v51 }
 0xe0a   : > { %v26305_v36 = vpack.c.bf16 %v16850_v43, %v16847_v55  ;;  %v16942_v50 = vsub.f32 %v16837_v31, %v16850_v43  ;;  %v16403_v46 = vand.u32 4294901760, %v16402_v63  ;;  %v22818_v7 = vpack.c.bf16 %v16431_v15, %v16424_v22 }
 0xe0b   : > { %v16915_v45 = vand.u32 4294901760, %v16914_v8  ;;  %v26307_v47 = vand.u32 4294901760, %v16844_v26  ;;  %v16937_v56 = vsub.f32 %v26290_v54, %v16936_v1 }
 0xe0c   : > { %v16943_v59 = vand.u32 4294901760, %v16942_v50  ;;  %21810 = vmatprep.mubr.f32.mxu0 %v16403_v46  ;;  %22839 = vmatprep.subr.bf16.mxu1 %v26305_v36  ;;  %v22846_v25 = vpack.c.bf16 %v16942_v50, %v26290_v54 }
 0xe0d   : > { %22819 = vmatprep.subr.bf16.mxu0 %v22818_v7  ;;  %21811 = vmatmul.mubr.f32.vlgmr.msra.gmra.mrb[34].mxu0 %v16413_v37  ;;  %v16916_v14 = vsub.f32 %v16914_v8, %v16915_v45  ;;  %v16924_v52 = vsub.f32 %v16844_v26, %v26307_v47  ;;  %v16938_v13 = vand.u32 4294901760, %v16937_v56 }
 0xe0e   : > { %v16944_v16 = vsub.f32 %v16942_v50, %v16943_v59  ;;  %22821 = vmatpush3.bf16.msra.mxu0 %v22818_v7  ;;  %22841 = vmatpush3.bf16.msra.mxu1 %v26305_v36  ;;  %v22854_v55 = vpack.c.bf16 %v16943_v59, %v16936_v1 }
 0xe0f   : > { %21817 = vmatprep.mubr.f32.mxu0 %v26268_v57  ;;  %22823 = vmatprep.subr.bf16.mxu0 %v22822_v49  ;;  %v16917_v60 = vand.u32 4294901760, %v16916_v14  ;;  %v16925_v0 = vand.u32 4294901760, %v16924_v52 }
 0xe10   : > { %v16945_v28 = vand.u32 4294901760, %v16944_v16 }
 0xe11   : > { %21852 = vmatprep.mubr.f32.mxu1 %v16917_v60  ;;  %v16926_v24 = vsub.f32 %v16924_v52, %v16925_v0 }
 0xe12   : > { %v22842_v53 = vpack.c.bf16 %v16945_v28, %v16938_v13 }
 0xe13   : > { %v16927_v29 = vand.u32 4294901760, %v16926_v24 }
 0xe14   : > { %22843 = vmatprep.subr.bf16.mxu1 %v22842_v53 }
 0xe15   : > { %21853 = vmatmul.mubr.f32.vlgmr.msra.gmra.mrb[38].mxu1 %v16927_v29  ;;  %21818 = vmatmul.mubr.f32.vlgmr.msra.gmra.mrb[34].mxu0 %v26262_v4 }
 0xe16   : > { %22825 = vmatpush3.bf16.msra.mxu0 %v22822_v49  ;;  %22845 = vmatpush3.bf16.msra.mxu1 %v22842_v53 }
 0xe17   : > { %21859 = vmatprep.mubr.f32.mxu1 %v26293_v3  ;;  %21824 = vmatprep.mubr.f32.mxu0 %v26277_v10 }
 0xe18   : > { %22827 = vmatprep.subr.bf16.mxu0 %v26264_v38  ;;  %22847 = vmatprep.subr.bf16.mxu1 %v22846_v25 }
 0xe1d   : > { %21860 = vmatmul.mubr.f32.vlgmr.msra.gmra.mrb[38].mxu1 %v26307_v47  ;;  %21825 = vmatmul.mubr.f32.vlgmr.msra.gmra.mrb[34].mxu0 %v26272_v30 }
 0xe1e   : > { %22849 = vmatpush3.bf16.msra.mxu1 %v22846_v25  ;;  %22829 = vmatpush3.bf16.msra.mxu0 %v26264_v38 }
 0xe1f   : > { %21866 = vmatprep.mubr.f32.mxu1 %v16914_v8  ;;  %22851 = vmatprep.subr.bf16.mxu1 %v26305_v36 }
 0xe20   : > { %21831 = vmatprep.mubr.f32.mxu0 %v16401_v17  ;;  %22831 = vmatprep.subr.bf16.mxu0 %v22830_v34 }
 0xe25   : > { %21867 = vmatmul.mubr.f32.vlgmr.msra.gmra.mrb[38].mxu1 %v16924_v52  ;;  %21832 = vmatmul.mubr.f32.vlgmr.msra.gmra.mrb[34].mxu0 %v16411_v39 }
 0xe26   : > { %22853 = vmatpush3.bf16.msra.mxu1 %v26305_v36  ;;  %22833 = vmatpush3.bf16.msra.mxu0 %v22830_v34 }
 0xe27   : > { %21873 = vmatprep.mubr.f32.mxu1 %v16915_v45  ;;  %22855 = vmatprep.subr.bf16.mxu1 %v22854_v55 }
 0xe28   : > { %21838 = vmatprep.mubr.f32.mxu0 %v26268_v57  ;;  %22835 = vmatprep.subr.bf16.mxu0 %v26264_v38 }
 0xe2c   : > { %v16285_v9 = vpop.xlane.xlu0 %16284 }
 0xe2d   : > { %21874 = vmatmul.mubr.f32.vlgmr.msra.gmra.mrb[38].mxu1 %v16925_v0  ;;  %23663 = vrcp.f32 %v16285_v9  ;;  %21839 = vmatmul.mubr.f32.vlgmr.msra.gmra.mrb[34].mxu0 %v26262_v4 }
 0xe2e   : > { %22857 = vmatpush3.bf16.msra.mxu1 %v22854_v55  ;;  %22837 = vmatpush3.bf16.msra.mxu0 %v26264_v38 }
 0xe2f   : > { %21880 = vmatprep.mubr.f32.mxu1 %v26293_v3  ;;  %22859 = vmatprep.subr.bf16.mxu1 %v26305_v36 }
 0xe30   : > { %21845 = vmatprep.mubr.f32.mxu0 %v26268_v57  ;;  %v16294_v21 = vpop.xlane.xlu0 %16293 }
 0xe31   : > { %23665 = vrcp.f32 %v16294_v21 }
 0xe34   : > { %v16291_v12 = vpop.xlane.xlu0 %16290 }
 0xe35   : > { %21881 = vmatmul.mubr.f32.vlgmr.msra.gmra.mrb[38].mxu1 %v26307_v47  ;;  %23667 = vrcp.f32 %v16291_v12  ;;  %21846 = vmatmul.mubr.f32.vlgmr.msra.gmra.mrb[34].mxu0 %v26262_v4 }
 0xe36   : > { %22861 = vmatpush3.bf16.msra.mxu1 %v26305_v36  ;;  %21887 = vmatprep.mubr.f32.mxu1 %v26293_v3 }
 0xe37   : > { %v23664_v38 = vpop.eup %23663 }
 0xe38   : > { %v16304_v30 = vmul.f32 %v23664_v38, %v26199_v40  ;;  %v16288_v61 = vpop.xlane.xlu1 %16287  ;;  %v17349_v10 = vpop.permute.xlu0 %17348 }
 0xe39   : > { %23669 = vrcp.f32 %v16288_v61  ;;  %v17361_v57 = vand.u32 4294901760, %v17349_v10 }
 0xe3a   : > { %19577 = vst.msk [vmem:[%s24704_s28 + $0xe0] sm:$0xff] %vm3515_vm2, %v16304_v30  ;;  %v17355_v44 = vsel %vm3515_vm2, %v16304_v30, 0 }
 0xe3b   : > { %v23666_v39 = vpop.eup %23665  ;;  %v26347_v11 = vsub.f32 %v17349_v10, %v17361_v57  ;;  %v26349_v4 = vand.u32 4294901760, %v17355_v44 }
 0xe3c   : > { %v16310_v20 = vmul.f32 %v23666_v39, %v26203_v35  ;;  %v17351_v58 = vpop.permute.xlu1 %17350  ;;  %v26352_v54 = vpop.permute.xlu0 %18384 }
 0xe3d   : > { %v17450_v40 = vand.u32 4294901760, %v26347_v11  ;;  %v17364_v17 = vand.u32 4294901760, %v17351_v58  ;;  %21888 = vmatmul.mubr.f32.vlgmr.msra.gmra.mrb[38].mxu1 %v26307_v47  ;;  %v26357_v3 = vsub.f32 %v17355_v44, %v26349_v4 }
 0xe3e   : > { %19580 = vst.msk [vmem:[%s24704_s28 + $0xf8] sm:$0xff] %vm3515_vm2, %v16310_v20  ;;  %v17872_v32 = vsel %vm3515_vm2, %v16310_v20, 0 }
 0xe3f   : > { %v23668_v31 = vpop.eup %23667  ;;  %v26362_v51 = vpack.c.bf16 %v17364_v17, %v17361_v57  ;;  %v26364_v35 = vsub.f32 %v17351_v58, %v17364_v17  ;;  %v17429_v1 = vand.u32 4294901760, %v26357_v3  ;;  %v17451_v63 = vsub.f32 %v26347_v11, %v17450_v40 }
 0xe40   : > { %v16308_v43 = vmul.f32 %v23668_v31, %v26207_v33  ;;  %v17863_v15 = vpop.permute.xlu1 %17862  ;;  %v26371_v22 = vpop.permute.xlu0 %18416  ;;  %v26373_v8 = vand.u32 4294901760, %v17872_v32 }
 0xe41   : > { %v17457_v26 = vand.u32 4294901760, %v26364_v35  ;;  %v17875_v36 = vand.u32 4294901760, %v17863_v15  ;;  %22863 = vmatprep.subr.bf16.mxu0 %v26362_v51  ;;  %v17430_v50 = vsub.f32 %v26357_v3, %v17429_v1  ;;  %v17452_v52 = vand.u32 4294901760, %v17451_v63 }
 0xe42   : > { %19579 = vst.msk [vmem:[%s24704_s28 + $0xf0] sm:$0xff] %vm3515_vm2, %v16308_v43  ;;  %22865 = vmatpush3.bf16.msra.mxu0 %v26362_v51  ;;  %v17869_v33 = vsel %vm3515_vm2, %v16308_v43, 0  ;;  %v26385_v46 = vsub.f32 %v17872_v32, %v26373_v8 }
 0xe43   : > { %v23670_v7 = vpop.eup %23669  ;;  %v17458_v37 = vsub.f32 %v26364_v35, %v17457_v26  ;;  %v26390_v45 = vsub.f32 %v17863_v15, %v17875_v36  ;;  %v17431_v47 = vand.u32 4294901760, %v17430_v50  ;;  %v26392_v56 = vand.u32 4294901760, %v17869_v33 }
 0xe44   : > { %v16306_v59 = vmul.f32 %v23670_v7, %v26211_v41  ;;  %v17865_v49 = vpop.permute.xlu1 %17864  ;;  %v18389_v14 = vpop.permute.xlu0 %18388  ;;  %v17953_v16 = vand.u32 4294901760, %v26385_v46 }
 0xe45   : > { %v17964_v60 = vand.u32 4294901760, %v26390_v45  ;;  %v17878_v0 = vand.u32 4294901760, %v17865_v49  ;;  %v18474_v13 = vsel %vm1440_vm1, %v25143_v5, %v18389_v14  ;;  %21894 = vmatprep.mubr.f32.mxu0 %v17431_v47  ;;  %v17459_v28 = vand.u32 4294901760, %v17458_v37 }
 0xe46   : > { %19578 = vst.msk [vmem:[%s24704_s28 + $0xe8] sm:$0xff] %vm3515_vm2, %v16306_v59  ;;  %v26402_v24 = vsub.f32 %v17869_v33, %v26392_v56  ;;  %v17358_v41 = vsel %vm3515_vm2, %v16306_v59, 0  ;;  %v17954_v30 = vsub.f32 %v26385_v46, %v17953_v16 }
 0xe47   : > { %v26405_v53 = vpack.c.bf16 %v17878_v0, %v17875_v36  ;;  %v17970_v29 = vsub.f32 %v17865_v49, %v17878_v0  ;;  %v22866_v25 = vpack.c.bf16 %v17459_v28, %v17452_v52  ;;  %v26410_v21 = vand.u32 4294901760, %v17358_v41 }
 0xe48   : > { %v26407_v34 = vpop.permute.xlu1 %18386  ;;  %v18421_v55 = vpop.permute.xlu0 %18420  ;;  %v17943_v9 = vand.u32 4294901760, %v26402_v24  ;;  %v17965_v5 = vsub.f32 %v26390_v45, %v17964_v60  ;;  %v17955_v32 = vand.u32 4294901760, %v17954_v30 }
 0xe49   : > { %v17971_v12 = vand.u32 4294901760, %v17970_v29  ;;  %v26416_v38 = vsel %vm3515_vm2, %v18474_v13, %v18421_v55  ;;  %22867 = vmatprep.subr.bf16.mxu0 %v22866_v25  ;;  %22887 = vmatprep.subr.bf16.mxu1 %v26405_v53  ;;  %v17438_v10 = vsub.f32 %v17358_v41, %v26410_v21  ;;  %v22894_v47 = vpack.c.bf16 %v17970_v29, %v26390_v45 }
 0xe4a   : > { %22889 = vmatpush3.bf16.msra.mxu1 %v26405_v53  ;;  %v17944_v61 = vsub.f32 %v26402_v24, %v17943_v9  ;;  %v17966_v31 = vand.u32 4294901760, %v17965_v5 }
 0xe4b   : > { %v17972_v57 = vsub.f32 %v17970_v29, %v17971_v12  ;;  %v17439_v58 = vand.u32 4294901760, %v17438_v10  ;;  %v22902_v13 = vpack.c.bf16 %v17971_v12, %v17964_v60 }
 0xe4c   : > { %v26425_v44 = vpop.permute.xlu1 %18418  ;;  %v18393_v39 = vpop.permute.xlu0 %18392  ;;  %v17945_v20 = vand.u32 4294901760, %v17944_v61 }
 0xe4d   : > { %v18476_v17 = vsel %vm1440_vm1, %v25151_v19, %v18393_v39  ;;  %v17973_v43 = vand.u32 4294901760, %v17972_v57  ;;  %v17440_v63 = vsub.f32 %v17438_v10, %v17439_v58  ;;  %v22870_v19 = vpack.c.bf16 %v26364_v35, %v26347_v11  ;;  %v18497_v11 = vld [vmem:[#allocation7] sm:$0xff] }
 0xe4e   : > { %21936 = vmatprep.mubr.f32.mxu1 %v17945_v20  ;;  %v18533_v35 = vand.u32 4294901760, %v18497_v11 }
 0xe4f   : > { %21937 = vmatmul.mubr.f32.vlgmr.msra.gmra.mrb[40].mxu1 %v17955_v32  ;;  %v22890_v15 = vpack.c.bf16 %v17973_v43, %v17966_v31  ;;  %v17441_v33 = vand.u32 4294901760, %v17440_v63 }
 0xe50   : > { %21943 = vmatprep.mubr.f32.mxu1 %v26392_v56  ;;  %v18391_v36 = vpop.permute.xlu1 %18390  ;;  %v18425_v50 = vpop.permute.xlu0 %18424  ;;  %v18683_v29 = vsub.f32 %v18497_v11, %v18533_v35 }
 0xe51   : > { %v18475_v7 = vsel %vm1440_vm1, %v25141_v2, %v18391_v36  ;;  %v26433_v37 = vsel %vm3515_vm2, %v18476_v17, %v18425_v50  ;;  %22891 = vmatprep.subr.bf16.mxu1 %v22890_v15  ;;  %21895 = vmatmul.mubr.f32.vlgmr.msra.gmra.mrb[36].mxu0 %v17441_v33 }
 0xe52   : > { %22893 = vmatpush3.bf16.msra.mxu1 %v22890_v15  ;;  %22869 = vmatpush3.bf16.msra.mxu0 %v22866_v25  ;;  %v18684_v55 = vand.u32 4294901760, %v18683_v29 }
 0xe53   : > { %21901 = vmatprep.mubr.f32.mxu0 %v26349_v4  ;;  %22871 = vmatprep.subr.bf16.mxu0 %v22870_v19 }
 0xe54   : > { %22895 = vmatprep.subr.bf16.mxu1 %v22894_v47  ;;  %v18423_v59 = vpop.permute.xlu1 %18422 }
 0xe55   : > { %v26440_v49 = vsel %vm3515_vm2, %v18475_v7, %v18423_v59 }
 0xe57   : > { %21944 = vmatmul.mubr.f32.vlgmr.msra.gmra.mrb[40].mxu1 %v26373_v8 }
 0xe58   : > { %22897 = vmatpush3.bf16.msra.mxu1 %v22894_v47  ;;  %21950 = vmatprep.mubr.f32.mxu1 %v26402_v24  ;;  %v18395_v2 = vpop.permute.xlu1 %18394 }
 0xe59   : > { %22899 = vmatprep.subr.bf16.mxu1 %v26405_v53  ;;  %v18477_v14 = vsel %vm1440_vm1, %v25149_v23, %v18395_v2  ;;  %21902 = vmatmul.mubr.f32.vlgmr.msra.gmra.mrb[36].mxu0 %v26410_v21  ;;  %v22878_v23 = vpack.c.bf16 %v17457_v26, %v17450_v40  ;;  %v18498_v40 = vld [vmem:[#allocation7 + $0x8] sm:$0xff]  ;;  %v18500_v26 = vld [vmem:[#allocation7 + $0x18] sm:$0xff] }
 0xe5a   : > { %22873 = vmatpush3.bf16.msra.mxu0 %v22870_v19  ;;  %21908 = vmatprep.mubr.f32.mxu0 %v26357_v3  ;;  %v18499_v3 = vld [vmem:[#allocation7 + $0x10] sm:$0xff]  ;;  %v18542_v45 = vand.u32 4294901760, %v18500_v26 }
 0xe5b   : > { %22875 = vmatprep.subr.bf16.mxu0 %v26362_v51 }
 0xe5c   : > { %v18427_v52 = vpop.permute.xlu1 %18426  ;;  %v18704_v57 = vsub.f32 %v18500_v26, %v18542_v45 }
 0xe5d   : > { %v26451_v0 = vsel %vm3515_vm2, %v18477_v14, %v18427_v52 }
 0xe5e   : > { %v18705_v36 = vand.u32 4294901760, %v18704_v57 }
 0xe5f   : > { %21951 = vmatmul.mubr.f32.vlgmr.msra.gmra.mrb[40].mxu1 %v26385_v46  ;;  %v18539_v46 = vand.u32 4294901760, %v18499_v3 }
 0xe60   : > { %22901 = vmatpush3.bf16.msra.mxu1 %v26405_v53  ;;  %21957 = vmatprep.mubr.f32.mxu1 %v17943_v9  ;;  %v26492_v20 = vpop.permute.xlu1 %18398 }
 0xe61   : > { %22903 = vmatprep.subr.bf16.mxu1 %v22902_v13  ;;  %21909 = vmatmul.mubr.f32.vlgmr.msra.gmra.mrb[36].mxu0 %v17438_v10  ;;  %v18697_v10 = vsub.f32 %v18499_v3, %v18539_v46 }
 0xe62   : > { %22877 = vmatpush3.bf16.msra.mxu0 %v26362_v51  ;;  %21915 = vmatprep.mubr.f32.mxu0 %v17429_v1  ;;  %v18536_v1 = vand.u32 4294901760, %v18498_v40 }
 0xe63   : > { %22879 = vmatprep.subr.bf16.mxu0 %v22878_v23  ;;  %v26490_v39 = vpack.c.bf16 %v18704_v57, %v18697_v10  ;;  %v18698_v15 = vand.u32 4294901760, %v18697_v10 }
 0xe64   : > { %v18690_v25 = vsub.f32 %v18498_v40, %v18536_v1 }
 0xe65   : > { %v18699_v33 = vsub.f32 %v18697_v10, %v18698_v15  ;;  %v26530_v3 = vpack.c.bf16 %v18705_v36, %v18698_v15 }
 0xe66   : > { %v18691_v9 = vand.u32 4294901760, %v18690_v25 }
 0xe67   : > { %21958 = vmatmul.mubr.f32.vlgmr.msra.gmra.mrb[40].mxu1 %v17953_v16  ;;  %v26478_v16 = vpack.c.bf16 %v18536_v1, %v18533_v35  ;;  %v18700_v2 = vand.u32 4294901760, %v18699_v33  ;;  %v26532_v35 = vpack.c.bf16 %v18690_v25, %v18683_v29 }
 0xe68   : > { %22905 = vmatpush3.bf16.msra.mxu1 %v22902_v13  ;;  %21964 = vmatprep.mubr.f32.mxu1 %v26392_v56  ;;  %v18692_v5 = vsub.f32 %v18690_v25, %v18691_v9  ;;  %v26525_v52 = vpack.c.bf16 %v18691_v9, %v18684_v55 }
 0xe69   : > { %22907 = vmatprep.subr.bf16.mxu1 %v26405_v53  ;;  %21916 = vmatmul.mubr.f32.vlgmr.msra.gmra.mrb[36].mxu0 %v17439_v58  ;;  %v18472_v58 = vsel %vm1440_vm1, %v25139_v62, %v26352_v54 }
 0xe6a   : > { %22881 = vmatpush3.bf16.msra.mxu0 %v22878_v23  ;;  %21922 = vmatprep.mubr.f32.mxu0 %v26349_v4  ;;  %v18693_v30 = vand.u32 4294901760, %v18692_v5  ;;  %v18480_v31 = vsel %vm3515_vm2, %v18472_v58, %v26371_v22  ;;  %v18706_v22 = vsub.f32 %v18704_v57, %v18705_v36 }
 0xe6b   : > { %22883 = vmatprep.subr.bf16.mxu0 %v26362_v51 }
 0xe6c   : > { %v18707_v14 = vand.u32 4294901760, %v18706_v22 }
 0xe6e   : > { %v22922_v40 = vpack.c.bf16 %v18707_v14, %v18700_v2 }
 0xe6f   : > { %21965 = vmatmul.mubr.f32.vlgmr.msra.gmra.mrb[40].mxu1 %v26373_v8 }
 0xe70   : > { %22909 = vmatpush3.bf16.msra.mxu1 %v26405_v53  ;;  %21971 = vmatprep.mubr.f32.mxu1 %v26392_v56  ;;  %v26480_v56 = vpack.c.bf16 %v18542_v45, %v18539_v46 }
 0xe71   : > { %21923 = vmatmul.mubr.f32.vlgmr.msra.gmra.mrb[36].mxu0 %v26410_v21 }
 0xe72   : > { %22885 = vmatpush3.bf16.msra.mxu0 %v26362_v51  ;;  %21929 = vmatprep.mubr.f32.mxu0 %v26349_v4 }
 0xe73   : > { %22911 = vmatprep.subr.bf16.mxu0 %v26478_v16 }
 0xe77   : > { %21972 = vmatmul.mubr.f32.vlgmr.msra.gmra.mrb[40].mxu1 %v26373_v8 }
 0xe79   : > { %21930 = vmatmul.mubr.f32.vlgmr.msra.gmra.mrb[36].mxu0 %v26410_v21  ;;  %v18685_v21 = vsub.f32 %v18683_v29, %v18684_v55 }
 0xe7a   : > { %22913 = vmatpush3.bf16.msra.mxu0 %v26478_v16 }
 0xe7b   : > { %22915 = vmatprep.subr.bf16.mxu0 %v26480_v56  ;;  %v18686_v12 = vand.u32 4294901760, %v18685_v21 }
 0xe7d   : > { %v22918_v61 = vpack.c.bf16 %v18693_v30, %v18686_v12 }
 0xe7e   : > { %22917 = vmatpush3.bf16.msra.mxu0 %v26480_v56 }
 0xe7f   : > { %22919 = vmatprep.subr.bf16.mxu0 %v22918_v61 }
 0xf08   : > { %v21847_v51 = vpop.f32.mrb[34].mxu0 }
 0xf09   : > { %18450 = vrot.lane.b32.xlu1 %v21847_v51, %s23937_s25  ;;  %v16824_v4 = vpop.f32.mrb[35].mxu0 }
 0xf0a   : > { %18448 = vrot.lane.b32.xlu0 %v16824_v4, %s23937_s25 }
 0xf10   : > { %v21889_v8 = vpop.f32.mrb[38].mxu1 }
 0xf11   : > { %v17338_v60 = vpop.f32.mrb[39].mxu1 }
 0xf4a   : > { %v21973_v28 = vpop.f32.mrb[40].mxu1 }
 0xf4b   : > { %v18366_v24 = vpop.f32.mrb[41].mxu1 }
 0xf4c   : > { %v21931_v41 = vpop.f32.mrb[36].mxu0 }
 0xf4d   : > { %18458 = vrot.lane.b32.xlu1 %v21931_v41, %s23937_s25  ;;  %v17852_v53 = vpop.f32.mrb[37].mxu0 }
 0xf4e   : > { %18456 = vrot.lane.b32.xlu0 %v17852_v53, %s23937_s25 }
 0xf51   : > { %18454 = vrot.lane.b32.xlu1 %v21889_v8, %s23937_s25 }
 0xf52   : > { %18452 = vrot.lane.b32.xlu0 %v17338_v60, %s23937_s25 }
 0xf55   : > { %18430 = vrot.lane.b32.xlu1 %v26159_v48, %s23936_s18  ;;  %v26494_v48 = vpop.permute.xlu0 %18396 }
 0xf56   : > { %18428 = vrot.lane.b32.xlu0 %v26161_v6, %s23936_s18  ;;  %v18473_v6 = vsel %vm1440_vm1, %v25137_v27, %v26407_v34  ;;  %v18478_v10 = vsel %vm1440_vm1, %v25147_v18, %v26494_v48  ;;  %s23837_s18 = scalar_lea.vmem %s26669_s19, 1024 }
 0xf57   : > { %v18481_v17 = vsel %vm3515_vm2, %v18473_v6, %v26425_v44  ;;  %p23838_p3 = scmp.ne.s32.totalorder %s26669_s19, %s23837_s18 }
 0xf59   : > { %18462 = vrot.lane.b32.xlu1 %v21973_v28, %s23937_s25  ;;  %p23839_p5 = pnand %p23838_p3, %p24172_p10 }
 0xf5a   : > { %18460 = vrot.lane.b32.xlu0 %v18366_v24, %s23937_s25  ;;  %s23938_s25 = smov [#allocation11]  }
 0xf5b   : > { %p23840_p7 = pneg %p23839_p5  ;;  %s23841_s13 = sshll.u32 %s23938_s25, 4  ;;  %s23842_s13 = int_to_ptr.vmem [resolvable:$false] %s23841_s13 }
 0xf5c   : > { %s23843_s29 = scalar_lea.vmem %s23842_s13, 2048  ;;  %p23844_p12 = scmp.lt.s32.totalorder %s26669_s19, %s23842_s13 }
 0xf5d   : > { %p23845_p1 = scmp.lt.s32.totalorder %s23843_s29, %s23837_s18 }
 0xf5f   : > { %p23846_p2 = por %p23845_p1, %p23844_p12 }
 0xf61   : > { %p23847_p13 = pnand %p23846_p2, %p23840_p7 }
 0xf7b   : > { %v18451_v32 = vpop.permute.xlu1 %18450 }
 0xf7c   : > { %v18490_v43 = vsel %vm18488_vm3, %v18481_v17, %v18451_v32  ;;  %v18449_v63 = vpop.permute.xlu0 %18448 }
 0xf7d   : > { %v18512_v50 = vsel %vm461_vm0, %v18490_v43, 0  ;;  %v18489_v27 = vsel %vm18488_vm3, %v18480_v31, %v18449_v63 }
 0xf7e   : > { %v26509_v34 = vand.u32 4294901760, %v18512_v50  ;;  %v18509_v62 = vsel %vm461_vm0, %v18489_v27, 0 }
 0xf7f   : > { %v26512_v54 = vand.u32 4294901760, %v18509_v62 }
 0xf80   : > { %v26515_v44 = vsub.f32 %v18512_v50, %v26509_v34 }
 0xf81   : > { %v26518_v7 = vsub.f32 %v18509_v62, %v26512_v54 }
 0xf82   : > { %v18613_v19 = vand.u32 4294901760, %v26515_v44 }
 0xf83   : > { %v18603_v47 = vand.u32 4294901760, %v26518_v7 }
 0xf84   : > { %v18614_v59 = vsub.f32 %v26515_v44, %v18613_v19 }
 0xf85   : > { %v18604_v13 = vsub.f32 %v26518_v7, %v18603_v47 }
 0xf86   : > { %v18615_v11 = vand.u32 4294901760, %v18614_v59 }
 0xf87   : > { %v18605_v23 = vand.u32 4294901760, %v18604_v13 }
 0xf89   : > { %21982 = vmatprep.mubr.f32.mxu0 %v18605_v23 }
 0xf8a   : > { %21983 = vmatmul.mubr.f32.vlgmr.msra.gmra.mrb[38].mxu0 %v18615_v11 }
 0xf8b   : > { %22921 = vmatpush3.bf16.msra.mxu0 %v22918_v61 }
 0xf8c   : > { %22923 = vmatprep.subr.bf16.mxu0 %v22922_v40 }
 0xf8f   : > { %22925 = vmatpush3.bf16.msra.mxu0 %v22922_v40 }
 0xf90   : > { %22927 = vmatprep.subr.bf16.mxu0 %v26532_v35 }
 0xfbf   : > { %v18459_v1 = vpop.permute.xlu1 %18458 }
 0xfc0   : > { %v18494_v26 = vsel %vm18488_vm3, %v26451_v0, %v18459_v1  ;;  %v18457_v46 = vpop.permute.xlu0 %18456 }
 0xfc1   : > { %v18524_v45 = vsel %vm461_vm0, %v18494_v26, 0  ;;  %v18493_v51 = vsel %vm18488_vm3, %v26433_v37, %v18457_v46 }
 0xfc2   : > { %v18521_v4 = vsel %vm461_vm0, %v18493_v51, 0  ;;  %v26543_v28 = vand.u32 4294901760, %v18524_v45 }
 0xfc3   : > { %v26541_v8 = vand.u32 4294901760, %v18521_v4  ;;  %v18455_v60 = vpop.permute.xlu1 %18454 }
 0xfc4   : > { %v18492_v24 = vsel %vm18488_vm3, %v26440_v49, %v18455_v60  ;;  %v18453_v41 = vpop.permute.xlu0 %18452  ;;  %v26559_v21 = vsub.f32 %v18524_v45, %v26543_v28 }
 0xfc5   : > { %v26548_v53 = vsub.f32 %v18521_v4, %v26541_v8  ;;  %v18518_v0 = vsel %vm461_vm0, %v18492_v24, 0  ;;  %v18491_v29 = vsel %vm18488_vm3, %v26416_v38, %v18453_v41  ;;  %v18479_v38 = vsel %vm1440_vm1, %v25145_v42, %v26492_v20 }
 0xfc6   : > { %v26553_v37 = vand.u32 4294901760, %v18518_v0  ;;  %v18515_v25 = vsel %vm461_vm0, %v18491_v29, 0  ;;  %v18653_v20 = vand.u32 4294901760, %v26559_v21 }
 0xfc7   : > { %v26556_v55 = vand.u32 4294901760, %v18515_v25  ;;  %v18431_v9 = vpop.permute.xlu1 %18430  ;;  %v18643_v30 = vand.u32 4294901760, %v26548_v53 }
 0xfc8   : > { %v26562_v49 = vsub.f32 %v18518_v0, %v26553_v37  ;;  %v18429_v5 = vpop.permute.xlu0 %18428  ;;  %v18487_v57 = vsel %vm3515_vm2, %v18479_v38, %v18431_v9  ;;  %v18654_v22 = vsub.f32 %v26559_v21, %v18653_v20 }
 0xfc9   : > { %v26565_v12 = vsub.f32 %v18515_v25, %v26556_v55  ;;  %v18486_v17 = vsel %vm3515_vm2, %v18478_v10, %v18429_v5  ;;  %v18644_v63 = vsub.f32 %v26548_v53, %v18643_v30 }
 0xfca   : > { %v18633_v61 = vand.u32 4294901760, %v26562_v49  ;;  %v18655_v23 = vand.u32 4294901760, %v18654_v22 }
 0xfcb   : > { %v18463_v6 = vpop.permute.xlu1 %18462  ;;  %v18623_v58 = vand.u32 4294901760, %v26565_v12  ;;  %v18645_v2 = vand.u32 4294901760, %v18644_v63 }
 0xfcc   : > { %v18496_v32 = vsel %vm18488_vm3, %v18487_v57, %v18463_v6  ;;  %v18461_v31 = vpop.permute.xlu0 %18460  ;;  %v18634_v42 = vsub.f32 %v26562_v49, %v18633_v61 }
 0xfcd   : > { %v18530_v43 = vsel %vm461_vm0, %v18496_v32, 0  ;;  %v18495_v18 = vsel %vm18488_vm3, %v18486_v17, %v18461_v31  ;;  %v18624_v48 = vsub.f32 %v26565_v12, %v18623_v58 }
 0xfce   : > { %v26589_v15 = vand.u32 4294901760, %v18530_v43  ;;  %v18527_v36 = vsel %vm461_vm0, %v18495_v18, 0  ;;  %v18635_v33 = vand.u32 4294901760, %v18634_v42 }
 0xfcf   : > { %v26592_v50 = vand.u32 4294901760, %v18527_v36  ;;  %v18625_v27 = vand.u32 4294901760, %v18624_v48 }
 0xfd0   : > { %v18672_v62 = vsub.f32 %v18530_v43, %v26589_v15 }
 0xfd1   : > { %v18662_v59 = vsub.f32 %v18527_v36, %v26592_v50  ;;  %21985 = vmatprep.mubr.f32.mxu0 %v18625_v27 }
 0xfd2   : > { %21986 = vmatmul.mubr.f32.gmra.mrb[40].mxu0 %v18635_v33  ;;  %v18673_v14 = vand.u32 4294901760, %v18672_v62 }
 0xfd3   : > { %21988 = vmatprep.mubr.f32.mxu0 %v18645_v2  ;;  %v18663_v13 = vand.u32 4294901760, %v18662_v59 }
 0xfd4   : > { %v18674_v11 = vsub.f32 %v18672_v62, %v18673_v14 }
 0xfd5   : > { %v18664_v40 = vsub.f32 %v18662_v59, %v18663_v13 }
 0xfd6   : > { %21989 = vmatmul.mubr.f32.gmra.mrb[42].mxu0 %v18655_v23  ;;  %v18675_v26 = vand.u32 4294901760, %v18674_v11 }
 0xfd7   : > { %v18665_v1 = vand.u32 4294901760, %v18664_v40 }
 0xfd9   : > { %21991 = vmatprep.mubr.f32.mxu0 %v18665_v1 }
 0xfda   : > { %21992 = vmatmul.mubr.f32.gmra.mrb[44].mxu0 %v18675_v26 }
 0xfdb   : > { %22002 = vmatprep.mubr.f32.mxu0 %v26512_v54 }
 0xfde   : > { %22003 = vmatmul.mubr.f32.vlgmr.msra.gmra.mrb[38].mxu0 %v26509_v34 }
 0xfdf   : > { %22005 = vmatprep.mubr.f32.mxu0 %v26556_v55  ;;  %22929 = vmatpush3.bf16.msra.mxu0 %v26532_v35 }
 0xfe0   : > { %22931 = vmatprep.subr.bf16.mxu0 %v26490_v39 }
 0xfe2   : > { %22006 = vmatmul.mubr.f32.gmra.mrb[40].mxu0 %v26553_v37 }
 0xfe3   : > { %22008 = vmatprep.mubr.f32.mxu0 %v26541_v8  ;;  %22933 = vmatpush3.bf16.msra.mxu0 %v26490_v39 }
 0xfe4   : > { %22935 = vmatprep.subr.bf16.mxu0 %v26478_v16 }
 0xfe6   : > { %22009 = vmatmul.mubr.f32.gmra.mrb[42].mxu0 %v26543_v28 }
 0xfe7   : > { %22011 = vmatprep.mubr.f32.mxu0 %v26592_v50 }
 0xfea   : > { %22012 = vmatmul.mubr.f32.gmra.mrb[44].mxu0 %v26589_v15 }
 0xfeb   : > { %22022 = vmatprep.mubr.f32.mxu0 %v26518_v7 }
 0xfee   : > { %22023 = vmatmul.mubr.f32.vlgmr.msra.gmra.mrb[38].mxu0 %v26515_v44 }
 0xfef   : > { %22025 = vmatprep.mubr.f32.mxu0 %v26565_v12  ;;  %22937 = vmatpush3.bf16.msra.mxu0 %v26478_v16 }
 0xff0   : > { %22939 = vmatprep.subr.bf16.mxu0 %v26480_v56 }
 0xff2   : > { %22026 = vmatmul.mubr.f32.gmra.mrb[40].mxu0 %v26562_v49 }
 0xff3   : > { %22028 = vmatprep.mubr.f32.mxu0 %v26548_v53  ;;  %22941 = vmatpush3.bf16.msra.mxu0 %v26480_v56 }
 0xff4   : > { %22943 = vmatprep.subr.bf16.mxu0 %v26525_v52 }
 0xff6   : > { %22029 = vmatmul.mubr.f32.gmra.mrb[42].mxu0 %v26559_v21 }
 0xff7   : > { %22031 = vmatprep.mubr.f32.mxu0 %v18662_v59 }
 0xffa   : > { %22032 = vmatmul.mubr.f32.gmra.mrb[44].mxu0 %v18672_v62 }
 0xffb   : > { %22042 = vmatprep.mubr.f32.mxu0 %v18603_v47 }
 0xffe   : > { %22043 = vmatmul.mubr.f32.vlgmr.msra.gmra.mrb[38].mxu0 %v18613_v19 }
 0xfff   : > { %22045 = vmatprep.mubr.f32.mxu0 %v18623_v58  ;;  %22945 = vmatpush3.bf16.msra.mxu0 %v26525_v52 }
0x1000   : > { %22947 = vmatprep.subr.bf16.mxu0 %v26530_v3 }
0x1002   : > { %22046 = vmatmul.mubr.f32.gmra.mrb[40].mxu0 %v18633_v61 }
0x1003   : > { %22048 = vmatprep.mubr.f32.mxu0 %v18643_v30  ;;  %22949 = vmatpush3.bf16.msra.mxu0 %v26530_v3 }
0x1004   : > { %22951 = vmatprep.subr.bf16.mxu0 %v26478_v16 }
0x1006   : > { %22049 = vmatmul.mubr.f32.gmra.mrb[42].mxu0 %v18653_v20 }
0x1007   : > { %22051 = vmatprep.mubr.f32.mxu0 %v18663_v13 }
0x100a   : > { %22052 = vmatmul.mubr.f32.gmra.mrb[44].mxu0 %v18673_v14 }
0x100b   : > { %22062 = vmatprep.mubr.f32.mxu0 %v26512_v54 }
0x100e   : > { %22063 = vmatmul.mubr.f32.vlgmr.msra.gmra.mrb[38].mxu0 %v26509_v34 }
0x100f   : > { %22065 = vmatprep.mubr.f32.mxu0 %v26556_v55  ;;  %22953 = vmatpush3.bf16.msra.mxu0 %v26478_v16  ;;  %v19581_v16 = vld [vmem:[%s26743_s6] ss:$0 sm:$0xff] }
0x1010   : > { %22955 = vmatprep.subr.bf16.mxu0 %v26480_v56 }
0x1012   : > { %22066 = vmatmul.mubr.f32.gmra.mrb[40].mxu0 %v26553_v37 }
0x1013   : > { %22068 = vmatprep.mubr.f32.mxu0 %v26541_v8  ;;  %22957 = vmatpush3.bf16.msra.mxu0 %v26480_v56 }
0x1016   : > { %22069 = vmatmul.mubr.f32.gmra.mrb[42].mxu0 %v26543_v28 }
0x1017   : > { %22071 = vmatprep.mubr.f32.mxu0 %v26592_v50 }
0x101a   : > { %22072 = vmatmul.mubr.f32.gmra.mrb[44].mxu0 %v26589_v15 }
0x101b   : > { %22082 = vmatprep.mubr.f32.mxu0 %v26512_v54 }
0x101e   : > { %22083 = vmatmul.mubr.f32.vlgmr.msra.gmra.mrb[38].mxu0 %v26509_v34 }
0x101f   : > { %22085 = vmatprep.mubr.f32.mxu0 %v26556_v55 }
0x1022   : > { %22086 = vmatmul.mubr.f32.gmra.mrb[40].mxu0 %v26553_v37 }
0x1023   : > { %22088 = vmatprep.mubr.f32.mxu0 %v26541_v8 }
0x1026   : > { %22089 = vmatmul.mubr.f32.gmra.mrb[42].mxu0 %v26543_v28 }
0x1027   : > { %22091 = vmatprep.mubr.f32.mxu0 %v26592_v50 }
0x102a   : > { %22092 = vmatmul.mubr.f32.gmra.mrb[44].mxu0 %v26589_v15 }
0x10f1   : > { %v22084_v56 = vpop.f32.mrb[38].mxu0 }
0x10f2   : > { %v23006_v39 = vadd.f32 %v22084_v56, %v19581_v16  ;;  %v19272_v34 = vpop.f32.mrb[39].mxu0 }
0x10f3   : > { %v23007_v54 = vadd.f32 %v19581_v16, %v19272_v34 }
0x10f4   : > { %19319 = vst.msk [vmem:[%s440_s9 + $0x8] sm:$0xff] %vm461_vm0, %v23006_v39 }
0x10f5   : > { %19318 = vst.msk [vmem:[%s440_s9] sm:$0xff] %vm461_vm0, %v23007_v54  ;;  %v22087_v44 = vpop.f32.mrb[40].mxu0 }
0x10f6   : > { %v23008_v7 = vadd.f32 %v22087_v44, %v19581_v16  ;;  %v19284_v19 = vpop.f32.mrb[41].mxu0 }
0x10f7   : > { %v23009_v47 = vadd.f32 %v19581_v16, %v19284_v19 }
0x10f8   : > { %19321 = vst.msk [vmem:[%s440_s9 + $0x18] sm:$0xff] %vm461_vm0, %v23008_v7 }
0x10f9   : > { %19320 = vst.msk [vmem:[%s440_s9 + $0x10] sm:$0xff] %vm461_vm0, %v23009_v47  ;;  %v22090_v52 = vpop.f32.mrb[42].mxu0 }
0x10fa   : > { %v23010_v3 = vadd.f32 %v22090_v52, %v19581_v16  ;;  %v19296_v35 = vpop.f32.mrb[43].mxu0 }
0x10fb   : > { %v23011_v46 = vadd.f32 %v19581_v16, %v19296_v35 }
0x10fc   : > { %19323 = vst.msk [vmem:[%s440_s9 + $0x28] sm:$0xff] %vm461_vm0, %v23010_v3 }
0x10fd   : > { %19322 = vst.msk [vmem:[%s440_s9 + $0x20] sm:$0xff] %vm461_vm0, %v23011_v46  ;;  %v22093_v45 = vpop.f32.mrb[44].mxu0 }
0x10fe   : > { %v23012_v51 = vadd.f32 %v22093_v45, %v19581_v16  ;;  %v19308_v4 = vpop.f32.mrb[45].mxu0 }
0x10ff   : > { %v23013_v8 = vadd.f32 %v19581_v16, %v19308_v4 }
0x1100   : > { %19325 = vst.msk [vmem:[%s440_s9 + $0x38] sm:$0xff] %vm461_vm0, %v23012_v51 }
0x1101   : > { %19324 = vst.msk [vmem:[%s440_s9 + $0x30] sm:$0xff] %vm461_vm0, %v23013_v8 }
0x1102   : > { %23850 = shalt.err (!%p23847_p13)
}
0x1103   : > { %s23851_s9 = scalar_lea.hbm %s26667_s23, 1024  ;;  %s23855_s25 = scalar_lea.hbm %s26775_s11, 2048 }
0x1104   : > { %p23852_p9 = scmp.ne.s32.totalorder %s26667_s23, %s23851_s9  ;;  %p23856_p4 = scmp.lt.u32.totalorder %s26667_s23, %s26775_s11 }
0x1105   : > { %p23857_p8 = scmp.lt.u32.totalorder %s23855_s25, %s23851_s9  ;;  %p23859_p3 = scmp.lt.u32.totalorder %s23851_s9, %s26667_s23 }
0x1106   : > { %p23853_p0 = pnand %p23852_p9, %p24172_p10 }
0x1107   : > { %p23858_p6 = por %p23857_p8, %p23856_p4 }
0x1108   : > { %p23854_p11 = pneg %p23853_p0 }
0x1109   : > { %p23860_p5 = por %p23859_p3, %p23858_p6 }
0x110b   : > { %p23861_p7 = pnand %p23860_p5, %p23854_p11 }
0x110d   : > { %23864 = shalt.err (!%p23861_p7)
}
0x110e   : > { %s23939_s18 = smov 128   ;;  %s19332_s29 = scalar_lea.sflag [#allocation13], %s24227_s10 }
0x110f   : > { %23424 = dma.vmem_to_hbm [thread:$0]  (%p24172_p10), %s26669_s19, 1024, %s26667_s23, %s19327_s26, %s23939_s18, %s23939_s18, %s23935_s24  }
0x1110   : > { %s26776_s27 = sshll.u32 %s24022_s17, 10  ;;  %s26777_s25 = sld [smem:[#allocation25_spill]] }
0x1111   : > { %s19379_s13 = sshll.u32 %s24704_s28, 4  ;;  %s23940_s0 = smov 1024   ;;  %s19380_s13 = int_to_ptr.vmem [resolvable:$true] %s19379_s13 }
0x1112   : > { %23425 = sst [smem:[#allocation15]] (%p24172_p10), %s23940_s0  ;;  %s23941_s10 = smov 2048  }
0x1113   : > { %23426 = sst [smem:[#allocation15 + $0x1]] (%p24172_p10), %s23941_s10  ;;  %s23942_s17 = smov 8  }
0x1114   : > { %23427 = sst [smem:[#allocation15 + $0x2]] (%p24172_p10), %s23942_s17  ;;  %s23943_s24 = smov 128  }
0x1115   : > { %23428 = sst [smem:[#allocation15 + $0x3]] (%p24172_p10), %s23943_s24  ;;  %s23944_s19 = smov [#allocation14]  }
0x1116   : > { %s19362_s9 = scalar_lea.hbm %s26777_s25, %s26776_s27  ;;  %23429 = sst [smem:[#allocation15 + $0x4]] (%p24172_p10), %s23943_s24 }
0x1117   : > { %23430 = sst [smem:[#allocation15 + $0x5]] (%p24172_p10), %s23942_s17  ;;  %s23945_s23 = smov 0  }
0x1118   : > { %23431 = dma.general (%p24172_p10), %s19380_s13, 4096, %s19362_s9, %s19332_s29, %s23944_s19, [#allocation15], %s23945_s23, 0  }
0x1119 PF: > { %s26778_s28 = sld [smem:[#allocation21_spill]]  ;;  %s26779_s0 = sld [smem:[#allocation22_spill]] }
0x111a   : > { %p26781_p1 = scmp.ge.s32.totalorder %s23915_s16, 2 }
0x111f   : > { %s19407_s26 = sand.u32 1, %s26778_s28   ;;  %p26780_p12 = scmp.ne.s32.totalorder %s26779_s0, 0 }
0x1120   : > { %s19408_s18 = scalar_lea.sflag [#allocation4], %s19407_s26 }
0x1121   : > { %p23452_p2 = pnand %p26781_p1, %p26780_p12 }
0x1123   : > { %23894 = dma.done.wait (!%p23452_p2), %s19408_s18, 1024  }
0x1124   : > { %23896 = vsyncadd (!%p23452_p2), %s19408_s18, 4294966272  ;;  %s19417_s27 = scalar_lea.sflag [#allocation13], %s19407_s26 }
0x1125   : > { %23898 = dma.done.wait (!%p23452_p2), %s19417_s27, 4096  }
0x1126   : > { %23900 = vsyncadd (!%p23452_p2), %s19417_s27, 4294963200  ;;  %p29_p10 = scmp.ge.s32.totalorder %s24162_s22, 4   ;;  %s26782_s13 = smov %s23907_s14 }
0x1127   : > { %s26783_s14 = smov %s23911_s15  ;;  %s26784_s15 = smov %s24178_s12 }
0x1128   : > { %s26785_s16 = smov %s24162_s22  ;;  %31 = sbr.rel (!%p29_p10) target bundleno = 13 (0xd), region = 145 }
0x112f   :  { %19422 = vsyncpa [#allocation3], 1 }
0x1130   :  { %19424 = vsyncpa [#allocation3 + $0x1], 1 }
0x1131   :  { %19425 = vsyncpa [#allocation6], 1 }
0x1132   :  { %19426 = vsyncpa [#allocation9], 1 }
0x1133   :  { %19427 = vsyncpa [#allocation4], 1 }
0x1134   :  { %19429 = vsyncpa [#allocation4 + $0x1], 1 }
0x1135   :  { %19430 = vsyncpa [#allocation13], 1 }
0x1136   :  { %19432 = vsyncpa [#allocation13 + $0x1], 1 }

</bundles_post_ra>
